<compile_context>
chip_gen: v5e
topology: v5e:2x2
jax: 0.10.0
libtpu: 0.0.40
codegen_flags: <defaults>
</compile_context>

<pallas_src>
import jax
import jax.numpy as jnp
from jax.experimental import pallas as pl
from jax.experimental.pallas import tpu as pltpu

K5 = 25          # 5x5 spline kernels (dim=2, kernel_size=5)
CP = 128         # lane-dense padded channel width (one full lane tile)
BN_EPS = 1e-5


# ----------------------------------------------------------------------------
# Pallas kernel: the whole residual block, single block resident in VMEM.
# ----------------------------------------------------------------------------
def residual_block_kernel(
    x_ref,        # (N, CP)       bf16  node features (channel-padded)
    b5_ref,       # (K5*N, N)     bf16  stacked dense basis-aggregation matrices
    b1_ref,       # (N, N)        bf16  kernel_size=1 shortcut aggregation matrix
    w1_ref,       # (K5*CP, CP)   bf16  left_conv1 spline weights, rows fuse (k, cin)
    r1_ref,       # (CP, CP)      bf16  left_conv1 root weight
    w2_ref,       # (K5*CP, CP)   bf16  left_conv2 spline weights
    r2_ref,       # (CP, CP)      bf16  left_conv2 root weight
    wsc_ref,      # (CP, CP)      bf16  shortcut_conv spline weight (K=1)
    rsc_ref,      # (CP, CP)      bf16  shortcut_conv root weight
    aff_ref,      # (16, CP)      f32   packed bias/gamma/beta rows (9 used)
    out_ref,      # (N, CP)       f32
    wide_ref,     # (N, K5*CP)    bf16  scratch: lane-dense (k, channel) staging buffer
):
    n = out_ref.shape[0]
    aff = aff_ref[...]
    x_bf = x_ref[...]

    def spline_conv_k25(h_bf, w_flat_ref, root_ref, bias):
        # (1) ONE MXU op aggregates the neighborhoods of all 25 spline kernels:
        #     (K*N, N) @ (N, CP) with f32 accumulation.  b5_ref is fed straight into
        #     the dot (never materialized and then indexed per k).
        agg = jnp.dot(b5_ref[...], h_bf, preferred_element_type=jnp.float32)
        # (2) Rearrange (K*N, CP) -> (N, K*CP) with 25 tile-aligned VMEM stores
        #     (row offsets are multiples of 16, columns are whole 128-lane tiles),
        #     so no sublane<->lane reshape/transpose relayout is needed.
        for k in range(K5):
            wide_ref[:, k * CP:(k + 1) * CP] = (
                agg[k * n:(k + 1) * n, :].astype(jnp.bfloat16))
        # (3) ONE MXU op applies all 25 spline weight matrices: contraction over the
        #     fused (k, cin) axis of length K*CP.
        out = jnp.dot(wide_ref[...], w_flat_ref[...],
                      preferred_element_type=jnp.float32)
        # Root weight + bias.
        out = out + jnp.dot(h_bf, root_ref[...], preferred_element_type=jnp.float32)
        return out + bias

    def spline_conv_k1(h_bf, w_ref_, root_ref, bias):
        agg = jnp.dot(b1_ref[...], h_bf, preferred_element_type=jnp.float32)
        out = jnp.dot(agg.astype(jnp.bfloat16), w_ref_[...],
                      preferred_element_type=jnp.float32)
        out = out + jnp.dot(h_bf, root_ref[...], preferred_element_type=jnp.float32)
        return out + bias

    def batchnorm(h, gamma, beta):
        mu = jnp.mean(h, axis=0, keepdims=True)
        var = jnp.mean(jnp.square(h - mu), axis=0, keepdims=True)  # biased (train mode)
        return gamma * (h - mu) * jax.lax.rsqrt(var + BN_EPS) + beta

    def elu(h):
        # Negative branch evaluated on exp(min(h, 0)) only: no transcendental work or
        # overflow on the lanes the where() discards.
        return jnp.where(h > 0, h, jnp.exp(jnp.minimum(h, 0.0)) - 1.0)

    h1 = elu(batchnorm(spline_conv_k25(x_bf, w1_ref, r1_ref, aff[0:1]),
                       aff[1:2], aff[2:3]))
    h2 = batchnorm(spline_conv_k25(h1.astype(jnp.bfloat16), w2_ref, r2_ref, aff[3:4]),
                   aff[4:5], aff[5:6])
    sc = batchnorm(spline_conv_k1(x_bf, wsc_ref, rsc_ref, aff[6:7]),
                   aff[7:8], aff[8:9])
    out_ref[...] = elu(h2 + sc).astype(out_ref.dtype)


# ----------------------------------------------------------------------------
# Wrapper: channel padding, bf16 casts, weight flattening, packed affine params.
# ----------------------------------------------------------------------------
def _pad_to(a, shape):
    pads = [(0, s - d) for d, s in zip(a.shape, shape)]
    return jnp.pad(a, pads)


@jax.jit
def residual_block_forward(x, b5, b1, params):
    n, cin = x.shape
    cout = params["w1"].shape[-1]
    if cin > CP or cout > CP:
        raise NotImplementedError("channel counts above 128 need channel tiling")
    if n % 16 != 0:
        raise NotImplementedError("pad node count to a multiple of 16")

    # bf16 matmul operands (f32 accumulation happens inside the kernel).
    x_p = _pad_to(x, (n, CP)).astype(jnp.bfloat16)
    b5_flat = b5.reshape(K5 * n, n).astype(jnp.bfloat16)     # (K*N, N)
    b1_2d = b1.reshape(n, n).astype(jnp.bfloat16)

    def pack_w(w):   # (K, ci, co) -> (K*CP, CP); row index fuses (k, cin)
        kk = w.shape[0]
        return _pad_to(w, (kk, CP, CP)).reshape(kk * CP, CP).astype(jnp.bfloat16)

    def pack_r(r):   # (ci, co) -> (CP, CP)
        return _pad_to(r, (CP, CP)).astype(jnp.bfloat16)

    w1f, r1p = pack_w(params["w1"]), pack_r(params["r1"])
    w2f, r2p = pack_w(params["w2"]), pack_r(params["r2"])
    wscp, rscp = pack_r(params["wsc"][0]), pack_r(params["rsc"])

    # Pack the 9 tiny (1, cout) bias/gamma/beta vectors into ONE (16, CP) input.
    rows = [params["b1"], params["g1"], params["be1"],
            params["b2"], params["g2"], params["be2"],
            params["bsc"], params["gsc"], params["besc"]]
    aff = jnp.zeros((16, CP), jnp.float32)
    for i, r in enumerate(rows):
        aff = aff.at[i, :cout].set(r.reshape(-1).astype(jnp.float32))

    vmem = pl.BlockSpec(memory_space=pltpu.MemorySpace.VMEM)
    args = (x_p, b5_flat, b1_2d, w1f, r1p, w2f, r2p, wscp, rscp, aff)
    out_p = pl.pallas_call(
        residual_block_kernel,
        out_shape=jax.ShapeDtypeStruct((n, CP), jnp.float32),
        in_specs=[vmem] * len(args),
        out_specs=vmem,
        scratch_shapes=[pltpu.VMEM((n, K5 * CP), jnp.bfloat16)],
        compiler_params=pltpu.CompilerParams(vmem_limit_bytes=32 * 1024 * 1024),
    )(*args)
    return out_p[:, :cout]


# ----------------------------------------------------------------------------
# JAX glue: degree-1 open B-spline basis + dense basis-aggregation matrices.
# (Data-dependent edge scatter -- kept outside the kernel.)
# ----------------------------------------------------------------------------
def spline_basis_deg1(edge_attr, kernel_size):
    """edge_attr: (E, 2) pseudo-coords in [0,1].  Returns basis (E,4), kernel idx (E,4)."""
    ks = kernel_size
    v = edge_attr * (ks - 1)                       # open spline scaling
    lo = jnp.clip(jnp.floor(v), 0, ks - 1).astype(jnp.int32)
    frac = v - lo.astype(v.dtype)
    bases, idxs = [], []
    for s1 in (0, 1):                              # dim 1 (more significant)
        for s0 in (0, 1):                          # dim 0 (least significant)
            b0 = frac[:, 0] if s0 else (1.0 - frac[:, 0])
            b1 = frac[:, 1] if s1 else (1.0 - frac[:, 1])
            i0 = jnp.clip(lo[:, 0] + s0, 0, ks - 1)
            i1 = jnp.clip(lo[:, 1] + s1, 0, ks - 1)
            bases.append(b0 * b1)
            idxs.append(i0 + i1 * ks)
    return jnp.stack(bases, axis=1), jnp.stack(idxs, axis=1)


def build_dense_basis(edge_index, basis, wi, num_nodes, num_kernels):
    """B[k, i, j] = sum over edges j->i of basis / in_degree(i)  (mean aggregation)."""
    src, dst = edge_index[0], edge_index[1]
    deg = jnp.zeros((num_nodes,), jnp.float32).at[dst].add(1.0)
    inv_deg = 1.0 / jnp.maximum(deg, 1.0)
    e, s = basis.shape
    vals = basis * inv_deg[dst][:, None]
    dst_b = jnp.broadcast_to(dst[:, None], (e, s))
    src_b = jnp.broadcast_to(src[:, None], (e, s))
    return jnp.zeros((num_kernels, num_nodes, num_nodes), jnp.float32).at[
        wi, dst_b, src_b
    ].add(vals)


def init_params(key, cin, cout, k5=K5):
    ks = jax.random.split(key, 8)
    u = lambda k, shape: jax.random.uniform(k, shape, jnp.float32, -0.3, 0.3)
    zeros = jnp.zeros((1, cout), jnp.float32)
    ones = jnp.ones((1, cout), jnp.float32)
    return {
        # left_conv1 / left_bn1
        "w1": u(ks[0], (k5, cin, cout)), "r1": u(ks[1], (cin, cout)),
        "b1": zeros, "g1": ones, "be1": zeros,
        # left_conv2 / left_bn2
        "w2": u(ks[2], (k5, cout, cout)), "r2": u(ks[3], (cout, cout)),
        "b2": zeros, "g2": ones, "be2": zeros,
        # shortcut_conv (kernel_size=1 -> K=1) / shortcut_bn
        "wsc": u(ks[4], (1, cin, cout)), "rsc": u(ks[5], (cin, cout)),
        "bsc": zeros, "gsc": ones, "besc": zeros,
    }


if __name__ == "__main__":
    key = jax.random.PRNGKey(0)
    k_x, k_ei, k_ea, k_p = jax.random.split(key, 4)

    num_nodes, num_edges = 16, 48
    cin, cout = 4, 8

    x = jax.random.normal(k_x, (num_nodes, cin), jnp.float32)
    edge_index = jax.random.randint(k_ei, (2, num_edges), 0, num_nodes, jnp.int32)
    edge_attr = jax.random.uniform(k_ea, (num_edges, 2), jnp.float32)

    # Dense basis-aggregation matrices (shared by both kernel_size=5 convs).
    basis5, wi5 = spline_basis_deg1(edge_attr, kernel_size=5)
    b5 = build_dense_basis(edge_index, basis5, wi5, num_nodes, K5)
    # kernel_size=1 shortcut conv: single spline kernel with basis == 1.
    b1 = build_dense_basis(
        edge_index,
        jnp.ones((num_edges, 1), jnp.float32),
        jnp.zeros((num_edges, 1), jnp.int32),
        num_nodes, 1,
    )

    params = init_params(k_p, cin, cout)

    out = residual_block_forward(x, b5, b1, params)
    out = jax.block_until_ready(out)
    assert out.shape == (num_nodes, cout) and out.dtype == jnp.float32
    assert bool(jnp.all(jnp.isfinite(out)))
    print("KERNEL_OK")
</pallas_src>

<mosaic_0001>
module attributes {stable_mosaic.version = 11 : i64} {
  func.func @residual_block_kernel(%arg0: memref<16x128xbf16, #tpu.memory_space<vmem>>, %arg1: memref<400x16xbf16, #tpu.memory_space<vmem>>, %arg2: memref<16x16xbf16, #tpu.memory_space<vmem>>, %arg3: memref<3200x128xbf16, #tpu.memory_space<vmem>>, %arg4: memref<128x128xbf16, #tpu.memory_space<vmem>>, %arg5: memref<3200x128xbf16, #tpu.memory_space<vmem>>, %arg6: memref<128x128xbf16, #tpu.memory_space<vmem>>, %arg7: memref<128x128xbf16, #tpu.memory_space<vmem>>, %arg8: memref<128x128xbf16, #tpu.memory_space<vmem>>, %arg9: memref<16x128xf32, #tpu.memory_space<vmem>>, %arg10: memref<16x128xf32, #tpu.memory_space<vmem>>, %arg11: memref<16x3200xbf16, #tpu.memory_space<vmem>>) attributes {dimension_semantics = [], scalar_prefetch = 0 : i64, scratch_operands = 1 : i64, tpu.core_type = #tpu.core_type<tc>} {
    %c0 = arith.constant 0 : index
    %c0_0 = arith.constant 0 : index
    %0 = vector.load %arg9[%c0, %c0_0] : memref<16x128xf32, #tpu.memory_space<vmem>>, vector<16x128xf32>
    %c0_1 = arith.constant 0 : index
    %c0_2 = arith.constant 0 : index
    %1 = vector.load %arg0[%c0_1, %c0_2] : memref<16x128xbf16, #tpu.memory_space<vmem>>, vector<16x128xbf16>
    %2 = vector.extract_strided_slice %0 {offsets = [0, 0], sizes = [1, 128], strides = [1, 1]} : vector<16x128xf32> to vector<1x128xf32>
    %c0_3 = arith.constant 0 : index
    %c0_4 = arith.constant 0 : index
    %3 = vector.load %arg1[%c0_3, %c0_4] : memref<400x16xbf16, #tpu.memory_space<vmem>>, vector<400x16xbf16>
    %cst = arith.constant dense<0.000000e+00> : vector<400x128xf32>
    %4 = tpu.matmul %3, %1, %cst {dimension_numbers = #tpu.dot_dimension_numbers<[1], [0], [0], [1], [0, 0, 1, 1], [], []>} : vector<400x16xbf16>, vector<16x128xbf16>, vector<400x128xf32> -> vector<400x128xf32>
    %5 = vector.extract_strided_slice %4 {offsets = [0, 0], sizes = [16, 128], strides = [1, 1]} : vector<400x128xf32> to vector<16x128xf32>
    %6 = arith.truncf %5 : vector<16x128xf32> to vector<16x128xbf16>
    %c0_5 = arith.constant 0 : index
    %c0_6 = arith.constant 0 : index
    %7 = vector.load %arg11[%c0_5, %c0_6] : memref<16x3200xbf16, #tpu.memory_space<vmem>>, vector<16x128xbf16>
    tpu.vector_store %arg11[%c0_5, %c0_6], %6 {strides = array<i32>} : memref<16x3200xbf16, #tpu.memory_space<vmem>>, vector<16x128xbf16>,
    %8 = vector.extract_strided_slice %4 {offsets = [16, 0], sizes = [16, 128], strides = [1, 1]} : vector<400x128xf32> to vector<16x128xf32>
    %9 = arith.truncf %8 : vector<16x128xf32> to vector<16x128xbf16>
    %c0_7 = arith.constant 0 : index
    %c128 = arith.constant 128 : index
    %10 = vector.load %arg11[%c0_7, %c128] : memref<16x3200xbf16, #tpu.memory_space<vmem>>, vector<16x128xbf16>
    tpu.vector_store %arg11[%c0_7, %c128], %9 {strides = array<i32>} : memref<16x3200xbf16, #tpu.memory_space<vmem>>, vector<16x128xbf16>,
    %11 = vector.extract_strided_slice %4 {offsets = [32, 0], sizes = [16, 128], strides = [1, 1]} : vector<400x128xf32> to vector<16x128xf32>
    %12 = arith.truncf %11 : vector<16x128xf32> to vector<16x128xbf16>
    %c0_8 = arith.constant 0 : index
    %c256 = arith.constant 256 : index
    %13 = vector.load %arg11[%c0_8, %c256] : memref<16x3200xbf16, #tpu.memory_space<vmem>>, vector<16x128xbf16>
    tpu.vector_store %arg11[%c0_8, %c256], %12 {strides = array<i32>} : memref<16x3200xbf16, #tpu.memory_space<vmem>>, vector<16x128xbf16>,
    %14 = vector.extract_strided_slice %4 {offsets = [48, 0], sizes = [16, 128], strides = [1, 1]} : vector<400x128xf32> to vector<16x128xf32>
    %15 = arith.truncf %14 : vector<16x128xf32> to vector<16x128xbf16>
    %c0_9 = arith.constant 0 : index
    %c384 = arith.constant 384 : index
    %16 = vector.load %arg11[%c0_9, %c384] : memref<16x3200xbf16, #tpu.memory_space<vmem>>, vector<16x128xbf16>
    tpu.vector_store %arg11[%c0_9, %c384], %15 {strides = array<i32>} : memref<16x3200xbf16, #tpu.memory_space<vmem>>, vector<16x128xbf16>,
    %17 = vector.extract_strided_slice %4 {offsets = [64, 0], sizes = [16, 128], strides = [1, 1]} : vector<400x128xf32> to vector<16x128xf32>
    %18 = arith.truncf %17 : vector<16x128xf32> to vector<16x128xbf16>
    %c0_10 = arith.constant 0 : index
    %c512 = arith.constant 512 : index
    %19 = vector.load %arg11[%c0_10, %c512] : memref<16x3200xbf16, #tpu.memory_space<vmem>>, vector<16x128xbf16>
    tpu.vector_store %arg11[%c0_10, %c512], %18 {strides = array<i32>} : memref<16x3200xbf16, #tpu.memory_space<vmem>>, vector<16x128xbf16>,
    %20 = vector.extract_strided_slice %4 {offsets = [80, 0], sizes = [16, 128], strides = [1, 1]} : vector<400x128xf32> to vector<16x128xf32>
    %21 = arith.truncf %20 : vector<16x128xf32> to vector<16x128xbf16>
    %c0_11 = arith.constant 0 : index
    %c640 = arith.constant 640 : index
    %22 = vector.load %arg11[%c0_11, %c640] : memref<16x3200xbf16, #tpu.memory_space<vmem>>, vector<16x128xbf16>
    tpu.vector_store %arg11[%c0_11, %c640], %21 {strides = array<i32>} : memref<16x3200xbf16, #tpu.memory_space<vmem>>, vector<16x128xbf16>,
    %23 = vector.extract_strided_slice %4 {offsets = [96, 0], sizes = [16, 128], strides = [1, 1]} : vector<400x128xf32> to vector<16x128xf32>
    %24 = arith.truncf %23 : vector<16x128xf32> to vector<16x128xbf16>
    %c0_12 = arith.constant 0 : index
    %c768 = arith.constant 768 : index
    %25 = vector.load %arg11[%c0_12, %c768] : memref<16x3200xbf16, #tpu.memory_space<vmem>>, vector<16x128xbf16>
    tpu.vector_store %arg11[%c0_12, %c768], %24 {strides = array<i32>} : memref<16x3200xbf16, #tpu.memory_space<vmem>>, vector<16x128xbf16>,
    %26 = vector.extract_strided_slice %4 {offsets = [112, 0], sizes = [16, 128], strides = [1, 1]} : vector<400x128xf32> to vector<16x128xf32>
    %27 = arith.truncf %26 : vector<16x128xf32> to vector<16x128xbf16>
    %c0_13 = arith.constant 0 : index
    %c896 = arith.constant 896 : index
    %28 = vector.load %arg11[%c0_13, %c896] : memref<16x3200xbf16, #tpu.memory_space<vmem>>, vector<16x128xbf16>
    tpu.vector_store %arg11[%c0_13, %c896], %27 {strides = array<i32>} : memref<16x3200xbf16, #tpu.memory_space<vmem>>, vector<16x128xbf16>,
    %29 = vector.extract_strided_slice %4 {offsets = [128, 0], sizes = [16, 128], strides = [1, 1]} : vector<400x128xf32> to vector<16x128xf32>
    %30 = arith.truncf %29 : vector<16x128xf32> to vector<16x128xbf16>
    %c0_14 = arith.constant 0 : index
    %c1024 = arith.constant 1024 : index
    %31 = vector.load %arg11[%c0_14, %c1024] : memref<16x3200xbf16, #tpu.memory_space<vmem>>, vector<16x128xbf16>
    tpu.vector_store %arg11[%c0_14, %c1024], %30 {strides = array<i32>} : memref<16x3200xbf16, #tpu.memory_space<vmem>>, vector<16x128xbf16>,
    %32 = vector.extract_strided_slice %4 {offsets = [144, 0], sizes = [16, 128], strides = [1, 1]} : vector<400x128xf32> to vector<16x128xf32>
    %33 = arith.truncf %32 : vector<16x128xf32> to vector<16x128xbf16>
    %c0_15 = arith.constant 0 : index
    %c1152 = arith.constant 1152 : index
    %34 = vector.load %arg11[%c0_15, %c1152] : memref<16x3200xbf16, #tpu.memory_space<vmem>>, vector<16x128xbf16>
    tpu.vector_store %arg11[%c0_15, %c1152], %33 {strides = array<i32>} : memref<16x3200xbf16, #tpu.memory_space<vmem>>, vector<16x128xbf16>,
    %35 = vector.extract_strided_slice %4 {offsets = [160, 0], sizes = [16, 128], strides = [1, 1]} : vector<400x128xf32> to vector<16x128xf32>
    %36 = arith.truncf %35 : vector<16x128xf32> to vector<16x128xbf16>
    %c0_16 = arith.constant 0 : index
    %c1280 = arith.constant 1280 : index
    %37 = vector.load %arg11[%c0_16, %c1280] : memref<16x3200xbf16, #tpu.memory_space<vmem>>, vector<16x128xbf16>
    tpu.vector_store %arg11[%c0_16, %c1280], %36 {strides = array<i32>} : memref<16x3200xbf16, #tpu.memory_space<vmem>>, vector<16x128xbf16>,
    %38 = vector.extract_strided_slice %4 {offsets = [176, 0], sizes = [16, 128], strides = [1, 1]} : vector<400x128xf32> to vector<16x128xf32>
    %39 = arith.truncf %38 : vector<16x128xf32> to vector<16x128xbf16>
    %c0_17 = arith.constant 0 : index
    %c1408 = arith.constant 1408 : index
    %40 = vector.load %arg11[%c0_17, %c1408] : memref<16x3200xbf16, #tpu.memory_space<vmem>>, vector<16x128xbf16>
    tpu.vector_store %arg11[%c0_17, %c1408], %39 {strides = array<i32>} : memref<16x3200xbf16, #tpu.memory_space<vmem>>, vector<16x128xbf16>,
    %41 = vector.extract_strided_slice %4 {offsets = [192, 0], sizes = [16, 128], strides = [1, 1]} : vector<400x128xf32> to vector<16x128xf32>
    %42 = arith.truncf %41 : vector<16x128xf32> to vector<16x128xbf16>
    %c0_18 = arith.constant 0 : index
    %c1536 = arith.constant 1536 : index
    %43 = vector.load %arg11[%c0_18, %c1536] : memref<16x3200xbf16, #tpu.memory_space<vmem>>, vector<16x128xbf16>
    tpu.vector_store %arg11[%c0_18, %c1536], %42 {strides = array<i32>} : memref<16x3200xbf16, #tpu.memory_space<vmem>>, vector<16x128xbf16>,
    %44 = vector.extract_strided_slice %4 {offsets = [208, 0], sizes = [16, 128], strides = [1, 1]} : vector<400x128xf32> to vector<16x128xf32>
    %45 = arith.truncf %44 : vector<16x128xf32> to vector<16x128xbf16>
    %c0_19 = arith.constant 0 : index
    %c1664 = arith.constant 1664 : index
    %46 = vector.load %arg11[%c0_19, %c1664] : memref<16x3200xbf16, #tpu.memory_space<vmem>>, vector<16x128xbf16>
    tpu.vector_store %arg11[%c0_19, %c1664], %45 {strides = array<i32>} : memref<16x3200xbf16, #tpu.memory_space<vmem>>, vector<16x128xbf16>,
    %47 = vector.extract_strided_slice %4 {offsets = [224, 0], sizes = [16, 128], strides = [1, 1]} : vector<400x128xf32> to vector<16x128xf32>
    %48 = arith.truncf %47 : vector<16x128xf32> to vector<16x128xbf16>
    %c0_20 = arith.constant 0 : index
    %c1792 = arith.constant 1792 : index
    %49 = vector.load %arg11[%c0_20, %c1792] : memref<16x3200xbf16, #tpu.memory_space<vmem>>, vector<16x128xbf16>
    tpu.vector_store %arg11[%c0_20, %c1792], %48 {strides = array<i32>} : memref<16x3200xbf16, #tpu.memory_space<vmem>>, vector<16x128xbf16>,
    %50 = vector.extract_strided_slice %4 {offsets = [240, 0], sizes = [16, 128], strides = [1, 1]} : vector<400x128xf32> to vector<16x128xf32>
    %51 = arith.truncf %50 : vector<16x128xf32> to vector<16x128xbf16>
    %c0_21 = arith.constant 0 : index
    %c1920 = arith.constant 1920 : index
    %52 = vector.load %arg11[%c0_21, %c1920] : memref<16x3200xbf16, #tpu.memory_space<vmem>>, vector<16x128xbf16>
    tpu.vector_store %arg11[%c0_21, %c1920], %51 {strides = array<i32>} : memref<16x3200xbf16, #tpu.memory_space<vmem>>, vector<16x128xbf16>,
    %53 = vector.extract_strided_slice %4 {offsets = [256, 0], sizes = [16, 128], strides = [1, 1]} : vector<400x128xf32> to vector<16x128xf32>
    %54 = arith.truncf %53 : vector<16x128xf32> to vector<16x128xbf16>
    %c0_22 = arith.constant 0 : index
    %c2048 = arith.constant 2048 : index
    %55 = vector.load %arg11[%c0_22, %c2048] : memref<16x3200xbf16, #tpu.memory_space<vmem>>, vector<16x128xbf16>
    tpu.vector_store %arg11[%c0_22, %c2048], %54 {strides = array<i32>} : memref<16x3200xbf16, #tpu.memory_space<vmem>>, vector<16x128xbf16>,
    %56 = vector.extract_strided_slice %4 {offsets = [272, 0], sizes = [16, 128], strides = [1, 1]} : vector<400x128xf32> to vector<16x128xf32>
    %57 = arith.truncf %56 : vector<16x128xf32> to vector<16x128xbf16>
    %c0_23 = arith.constant 0 : index
    %c2176 = arith.constant 2176 : index
    %58 = vector.load %arg11[%c0_23, %c2176] : memref<16x3200xbf16, #tpu.memory_space<vmem>>, vector<16x128xbf16>
    tpu.vector_store %arg11[%c0_23, %c2176], %57 {strides = array<i32>} : memref<16x3200xbf16, #tpu.memory_space<vmem>>, vector<16x128xbf16>,
    %59 = vector.extract_strided_slice %4 {offsets = [288, 0], sizes = [16, 128], strides = [1, 1]} : vector<400x128xf32> to vector<16x128xf32>
    %60 = arith.truncf %59 : vector<16x128xf32> to vector<16x128xbf16>
    %c0_24 = arith.constant 0 : index
    %c2304 = arith.constant 2304 : index
    %61 = vector.load %arg11[%c0_24, %c2304] : memref<16x3200xbf16, #tpu.memory_space<vmem>>, vector<16x128xbf16>
    tpu.vector_store %arg11[%c0_24, %c2304], %60 {strides = array<i32>} : memref<16x3200xbf16, #tpu.memory_space<vmem>>, vector<16x128xbf16>,
    %62 = vector.extract_strided_slice %4 {offsets = [304, 0], sizes = [16, 128], strides = [1, 1]} : vector<400x128xf32> to vector<16x128xf32>
    %63 = arith.truncf %62 : vector<16x128xf32> to vector<16x128xbf16>
    %c0_25 = arith.constant 0 : index
    %c2432 = arith.constant 2432 : index
    %64 = vector.load %arg11[%c0_25, %c2432] : memref<16x3200xbf16, #tpu.memory_space<vmem>>, vector<16x128xbf16>
    tpu.vector_store %arg11[%c0_25, %c2432], %63 {strides = array<i32>} : memref<16x3200xbf16, #tpu.memory_space<vmem>>, vector<16x128xbf16>,
    %65 = vector.extract_strided_slice %4 {offsets = [320, 0], sizes = [16, 128], strides = [1, 1]} : vector<400x128xf32> to vector<16x128xf32>
    %66 = arith.truncf %65 : vector<16x128xf32> to vector<16x128xbf16>
    %c0_26 = arith.constant 0 : index
    %c2560 = arith.constant 2560 : index
    %67 = vector.load %arg11[%c0_26, %c2560] : memref<16x3200xbf16, #tpu.memory_space<vmem>>, vector<16x128xbf16>
    tpu.vector_store %arg11[%c0_26, %c2560], %66 {strides = array<i32>} : memref<16x3200xbf16, #tpu.memory_space<vmem>>, vector<16x128xbf16>,
    %68 = vector.extract_strided_slice %4 {offsets = [336, 0], sizes = [16, 128], strides = [1, 1]} : vector<400x128xf32> to vector<16x128xf32>
    %69 = arith.truncf %68 : vector<16x128xf32> to vector<16x128xbf16>
    %c0_27 = arith.constant 0 : index
    %c2688 = arith.constant 2688 : index
    %70 = vector.load %arg11[%c0_27, %c2688] : memref<16x3200xbf16, #tpu.memory_space<vmem>>, vector<16x128xbf16>
    tpu.vector_store %arg11[%c0_27, %c2688], %69 {strides = array<i32>} : memref<16x3200xbf16, #tpu.memory_space<vmem>>, vector<16x128xbf16>,
    %71 = vector.extract_strided_slice %4 {offsets = [352, 0], sizes = [16, 128], strides = [1, 1]} : vector<400x128xf32> to vector<16x128xf32>
    %72 = arith.truncf %71 : vector<16x128xf32> to vector<16x128xbf16>
    %c0_28 = arith.constant 0 : index
    %c2816 = arith.constant 2816 : index
    %73 = vector.load %arg11[%c0_28, %c2816] : memref<16x3200xbf16, #tpu.memory_space<vmem>>, vector<16x128xbf16>
    tpu.vector_store %arg11[%c0_28, %c2816], %72 {strides = array<i32>} : memref<16x3200xbf16, #tpu.memory_space<vmem>>, vector<16x128xbf16>,
    %74 = vector.extract_strided_slice %4 {offsets = [368, 0], sizes = [16, 128], strides = [1, 1]} : vector<400x128xf32> to vector<16x128xf32>
    %75 = arith.truncf %74 : vector<16x128xf32> to vector<16x128xbf16>
    %c0_29 = arith.constant 0 : index
    %c2944 = arith.constant 2944 : index
    %76 = vector.load %arg11[%c0_29, %c2944] : memref<16x3200xbf16, #tpu.memory_space<vmem>>, vector<16x128xbf16>
    tpu.vector_store %arg11[%c0_29, %c2944], %75 {strides = array<i32>} : memref<16x3200xbf16, #tpu.memory_space<vmem>>, vector<16x128xbf16>,
    %77 = vector.extract_strided_slice %4 {offsets = [384, 0], sizes = [16, 128], strides = [1, 1]} : vector<400x128xf32> to vector<16x128xf32>
    %78 = arith.truncf %77 : vector<16x128xf32> to vector<16x128xbf16>
    %c0_30 = arith.constant 0 : index
    %c3072 = arith.constant 3072 : index
    %79 = vector.load %arg11[%c0_30, %c3072] : memref<16x3200xbf16, #tpu.memory_space<vmem>>, vector<16x128xbf16>
    tpu.vector_store %arg11[%c0_30, %c3072], %78 {strides = array<i32>} : memref<16x3200xbf16, #tpu.memory_space<vmem>>, vector<16x128xbf16>,
    %c0_31 = arith.constant 0 : index
    %c0_32 = arith.constant 0 : index
    %80 = vector.load %arg11[%c0_31, %c0_32] : memref<16x3200xbf16, #tpu.memory_space<vmem>>, vector<16x3200xbf16>
    %c0_33 = arith.constant 0 : index
    %c0_34 = arith.constant 0 : index
    %81 = vector.load %arg3[%c0_33, %c0_34] : memref<3200x128xbf16, #tpu.memory_space<vmem>>, vector<3200x128xbf16>
    %cst_35 = arith.constant dense<0.000000e+00> : vector<16x128xf32>
    %82 = tpu.matmul %80, %81, %cst_35 {dimension_numbers = #tpu.dot_dimension_numbers<[1], [0], [0], [1], [0, 0, 1, 1], [], []>} : vector<16x3200xbf16>, vector<3200x128xbf16>, vector<16x128xf32> -> vector<16x128xf32>
    %c0_36 = arith.constant 0 : index
    %c0_37 = arith.constant 0 : index
    %83 = vector.load %arg4[%c0_36, %c0_37] : memref<128x128xbf16, #tpu.memory_space<vmem>>, vector<128x128xbf16>
    %cst_38 = arith.constant dense<0.000000e+00> : vector<16x128xf32>
    %84 = tpu.matmul %1, %83, %cst_38 {dimension_numbers = #tpu.dot_dimension_numbers<[1], [0], [0], [1], [0, 0, 1, 1], [], []>} : vector<16x128xbf16>, vector<128x128xbf16>, vector<16x128xf32> -> vector<16x128xf32>
    %85 = arith.addf %82, %84 : vector<16x128xf32>
    %86 = vector.broadcast %2 : vector<1x128xf32> to vector<16x128xf32>
    %87 = arith.addf %85, %86 : vector<16x128xf32>
    %88 = vector.extract_strided_slice %0 {offsets = [1, 0], sizes = [1, 128], strides = [1, 1]} : vector<16x128xf32> to vector<1x128xf32>
    %89 = vector.extract_strided_slice %0 {offsets = [2, 0], sizes = [1, 128], strides = [1, 1]} : vector<16x128xf32> to vector<1x128xf32>
    %cst_39 = arith.constant dense<0.000000e+00> : vector<128xf32>
    %90 = vector.multi_reduction <add>, %87, %cst_39 [0] : vector<16x128xf32> to vector<128xf32>
    %91 = vector.shape_cast %90 : vector<128xf32> to vector<1x128xf32>
    %cst_40 = arith.constant 1.600000e+01 : f32
    %92 = vector.broadcast %cst_40 : f32 to vector<1x128xf32>
    %93 = arith.divf %91, %92 : vector<1x128xf32>
    %94 = vector.broadcast %93 : vector<1x128xf32> to vector<16x128xf32>
    %95 = arith.subf %87, %94 : vector<16x128xf32>
    %96 = arith.mulf %95, %95 : vector<16x128xf32>
    %cst_41 = arith.constant dense<0.000000e+00> : vector<128xf32>
    %97 = vector.multi_reduction <add>, %96, %cst_41 [0] : vector<16x128xf32> to vector<128xf32>
    %98 = vector.shape_cast %97 : vector<128xf32> to vector<1x128xf32>
    %cst_42 = arith.constant 1.600000e+01 : f32
    %99 = vector.broadcast %cst_42 : f32 to vector<1x128xf32>
    %100 = arith.divf %98, %99 : vector<1x128xf32>
    %101 = vector.broadcast %93 : vector<1x128xf32> to vector<16x128xf32>
    %102 = arith.subf %87, %101 : vector<16x128xf32>
    %103 = vector.broadcast %88 : vector<1x128xf32> to vector<16x128xf32>
    %104 = arith.mulf %103, %102 : vector<16x128xf32>
    %cst_43 = arith.constant 9.99999974E-6 : f32
    %105 = vector.broadcast %cst_43 : f32 to vector<1x128xf32>
    %106 = arith.addf %100, %105 : vector<1x128xf32>
    %107 = math.rsqrt %106 : vector<1x128xf32>
    %108 = vector.broadcast %107 : vector<1x128xf32> to vector<16x128xf32>
    %109 = arith.mulf %104, %108 : vector<16x128xf32>
    %110 = vector.broadcast %89 : vector<1x128xf32> to vector<16x128xf32>
    %111 = arith.addf %109, %110 : vector<16x128xf32>
    %cst_44 = arith.constant 0.000000e+00 : f32
    %112 = vector.broadcast %cst_44 : f32 to vector<16x128xf32>
    %113 = arith.cmpf ogt, %111, %112 : vector<16x128xf32>
    %cst_45 = arith.constant 0.000000e+00 : f32
    %114 = vector.broadcast %cst_45 : f32 to vector<16x128xf32>
    %115 = arith.minimumf %111, %114 : vector<16x128xf32>
    %116 = math.exp %115 : vector<16x128xf32>
    %cst_46 = arith.constant 1.000000e+00 : f32
    %117 = vector.broadcast %cst_46 : f32 to vector<16x128xf32>
    %118 = arith.subf %116, %117 : vector<16x128xf32>
    %119 = arith.select %113, %111, %118 : vector<16x128xi1>, vector<16x128xf32>
    %120 = arith.truncf %119 : vector<16x128xf32> to vector<16x128xbf16>
    %121 = vector.extract_strided_slice %0 {offsets = [3, 0], sizes = [1, 128], strides = [1, 1]} : vector<16x128xf32> to vector<1x128xf32>
    %c0_47 = arith.constant 0 : index
    %c0_48 = arith.constant 0 : index
    %122 = vector.load %arg1[%c0_47, %c0_48] : memref<400x16xbf16, #tpu.memory_space<vmem>>, vector<400x16xbf16>
    %cst_49 = arith.constant dense<0.000000e+00> : vector<400x128xf32>
    %123 = tpu.matmul %122, %120, %cst_49 {dimension_numbers = #tpu.dot_dimension_numbers<[1], [0], [0], [1], [0, 0, 1, 1], [], []>} : vector<400x16xbf16>, vector<16x128xbf16>, vector<400x128xf32> -> vector<400x128xf32>
    %124 = vector.extract_strided_slice %123 {offsets = [0, 0], sizes = [16, 128], strides = [1, 1]} : vector<400x128xf32> to vector<16x128xf32>
    %125 = arith.truncf %124 : vector<16x128xf32> to vector<16x128xbf16>
    %c0_50 = arith.constant 0 : index
    %c0_51 = arith.constant 0 : index
    %126 = vector.load %arg11[%c0_50, %c0_51] : memref<16x3200xbf16, #tpu.memory_space<vmem>>, vector<16x128xbf16>
    tpu.vector_store %arg11[%c0_50, %c0_51], %125 {strides = array<i32>} : memref<16x3200xbf16, #tpu.memory_space<vmem>>, vector<16x128xbf16>,
    %127 = vector.extract_strided_slice %123 {offsets = [16, 0], sizes = [16, 128], strides = [1, 1]} : vector<400x128xf32> to vector<16x128xf32>
    %128 = arith.truncf %127 : vector<16x128xf32> to vector<16x128xbf16>
    %c0_52 = arith.constant 0 : index
    %c128_53 = arith.constant 128 : index
    %129 = vector.load %arg11[%c0_52, %c128_53] : memref<16x3200xbf16, #tpu.memory_space<vmem>>, vector<16x128xbf16>
    tpu.vector_store %arg11[%c0_52, %c128_53], %128 {strides = array<i32>} : memref<16x3200xbf16, #tpu.memory_space<vmem>>, vector<16x128xbf16>,
    %130 = vector.extract_strided_slice %123 {offsets = [32, 0], sizes = [16, 128], strides = [1, 1]} : vector<400x128xf32> to vector<16x128xf32>
    %131 = arith.truncf %130 : vector<16x128xf32> to vector<16x128xbf16>
    %c0_54 = arith.constant 0 : index
    %c256_55 = arith.constant 256 : index
    %132 = vector.load %arg11[%c0_54, %c256_55] : memref<16x3200xbf16, #tpu.memory_space<vmem>>, vector<16x128xbf16>
    tpu.vector_store %arg11[%c0_54, %c256_55], %131 {strides = array<i32>} : memref<16x3200xbf16, #tpu.memory_space<vmem>>, vector<16x128xbf16>,
    %133 = vector.extract_strided_slice %123 {offsets = [48, 0], sizes = [16, 128], strides = [1, 1]} : vector<400x128xf32> to vector<16x128xf32>
    %134 = arith.truncf %133 : vector<16x128xf32> to vector<16x128xbf16>
    %c0_56 = arith.constant 0 : index
    %c384_57 = arith.constant 384 : index
    %135 = vector.load %arg11[%c0_56, %c384_57] : memref<16x3200xbf16, #tpu.memory_space<vmem>>, vector<16x128xbf16>
    tpu.vector_store %arg11[%c0_56, %c384_57], %134 {strides = array<i32>} : memref<16x3200xbf16, #tpu.memory_space<vmem>>, vector<16x128xbf16>,
    %136 = vector.extract_strided_slice %123 {offsets = [64, 0], sizes = [16, 128], strides = [1, 1]} : vector<400x128xf32> to vector<16x128xf32>
    %137 = arith.truncf %136 : vector<16x128xf32> to vector<16x128xbf16>
    %c0_58 = arith.constant 0 : index
    %c512_59 = arith.constant 512 : index
    %138 = vector.load %arg11[%c0_58, %c512_59] : memref<16x3200xbf16, #tpu.memory_space<vmem>>, vector<16x128xbf16>
    tpu.vector_store %arg11[%c0_58, %c512_59], %137 {strides = array<i32>} : memref<16x3200xbf16, #tpu.memory_space<vmem>>, vector<16x128xbf16>,
    %139 = vector.extract_strided_slice %123 {offsets = [80, 0], sizes = [16, 128], strides = [1, 1]} : vector<400x128xf32> to vector<16x128xf32>
    %140 = arith.truncf %139 : vector<16x128xf32> to vector<16x128xbf16>
    %c0_60 = arith.constant 0 : index
    %c640_61 = arith.constant 640 : index
    %141 = vector.load %arg11[%c0_60, %c640_61] : memref<16x3200xbf16, #tpu.memory_space<vmem>>, vector<16x128xbf16>
    tpu.vector_store %arg11[%c0_60, %c640_61], %140 {strides = array<i32>} : memref<16x3200xbf16, #tpu.memory_space<vmem>>, vector<16x128xbf16>,
    %142 = vector.extract_strided_slice %123 {offsets = [96, 0], sizes = [16, 128], strides = [1, 1]} : vector<400x128xf32> to vector<16x128xf32>
    %143 = arith.truncf %142 : vector<16x128xf32> to vector<16x128xbf16>
    %c0_62 = arith.constant 0 : index
    %c768_63 = arith.constant 768 : index
    %144 = vector.load %arg11[%c0_62, %c768_63] : memref<16x3200xbf16, #tpu.memory_space<vmem>>, vector<16x128xbf16>
    tpu.vector_store %arg11[%c0_62, %c768_63], %143 {strides = array<i32>} : memref<16x3200xbf16, #tpu.memory_space<vmem>>, vector<16x128xbf16>,
    %145 = vector.extract_strided_slice %123 {offsets = [112, 0], sizes = [16, 128], strides = [1, 1]} : vector<400x128xf32> to vector<16x128xf32>
    %146 = arith.truncf %145 : vector<16x128xf32> to vector<16x128xbf16>
    %c0_64 = arith.constant 0 : index
    %c896_65 = arith.constant 896 : index
    %147 = vector.load %arg11[%c0_64, %c896_65] : memref<16x3200xbf16, #tpu.memory_space<vmem>>, vector<16x128xbf16>
    tpu.vector_store %arg11[%c0_64, %c896_65], %146 {strides = array<i32>} : memref<16x3200xbf16, #tpu.memory_space<vmem>>, vector<16x128xbf16>,
    %148 = vector.extract_strided_slice %123 {offsets = [128, 0], sizes = [16, 128], strides = [1, 1]} : vector<400x128xf32> to vector<16x128xf32>
    %149 = arith.truncf %148 : vector<16x128xf32> to vector<16x128xbf16>
    %c0_66 = arith.constant 0 : index
    %c1024_67 = arith.constant 1024 : index
    %150 = vector.load %arg11[%c0_66, %c1024_67] : memref<16x3200xbf16, #tpu.memory_space<vmem>>, vector<16x128xbf16>
    tpu.vector_store %arg11[%c0_66, %c1024_67], %149 {strides = array<i32>} : memref<16x3200xbf16, #tpu.memory_space<vmem>>, vector<16x128xbf16>,
    %151 = vector.extract_strided_slice %123 {offsets = [144, 0], sizes = [16, 128], strides = [1, 1]} : vector<400x128xf32> to vector<16x128xf32>
    %152 = arith.truncf %151 : vector<16x128xf32> to vector<16x128xbf16>
    %c0_68 = arith.constant 0 : index
    %c1152_69 = arith.constant 1152 : index
    %153 = vector.load %arg11[%c0_68, %c1152_69] : memref<16x3200xbf16, #tpu.memory_space<vmem>>, vector<16x128xbf16>
    tpu.vector_store %arg11[%c0_68, %c1152_69], %152 {strides = array<i32>} : memref<16x3200xbf16, #tpu.memory_space<vmem>>, vector<16x128xbf16>,
    %154 = vector.extract_strided_slice %123 {offsets = [160, 0], sizes = [16, 128], strides = [1, 1]} : vector<400x128xf32> to vector<16x128xf32>
    %155 = arith.truncf %154 : vector<16x128xf32> to vector<16x128xbf16>
    %c0_70 = arith.constant 0 : index
    %c1280_71 = arith.constant 1280 : index
    %156 = vector.load %arg11[%c0_70, %c1280_71] : memref<16x3200xbf16, #tpu.memory_space<vmem>>, vector<16x128xbf16>
    tpu.vector_store %arg11[%c0_70, %c1280_71], %155 {strides = array<i32>} : memref<16x3200xbf16, #tpu.memory_space<vmem>>, vector<16x128xbf16>,
    %157 = vector.extract_strided_slice %123 {offsets = [176, 0], sizes = [16, 128], strides = [1, 1]} : vector<400x128xf32> to vector<16x128xf32>
    %158 = arith.truncf %157 : vector<16x128xf32> to vector<16x128xbf16>
    %c0_72 = arith.constant 0 : index
    %c1408_73 = arith.constant 1408 : index
    %159 = vector.load %arg11[%c0_72, %c1408_73] : memref<16x3200xbf16, #tpu.memory_space<vmem>>, vector<16x128xbf16>
    tpu.vector_store %arg11[%c0_72, %c1408_73], %158 {strides = array<i32>} : memref<16x3200xbf16, #tpu.memory_space<vmem>>, vector<16x128xbf16>,
    %160 = vector.extract_strided_slice %123 {offsets = [192, 0], sizes = [16, 128], strides = [1, 1]} : vector<400x128xf32> to vector<16x128xf32>
    %161 = arith.truncf %160 : vector<16x128xf32> to vector<16x128xbf16>
    %c0_74 = arith.constant 0 : index
    %c1536_75 = arith.constant 1536 : index
    %162 = vector.load %arg11[%c0_74, %c1536_75] : memref<16x3200xbf16, #tpu.memory_space<vmem>>, vector<16x128xbf16>
    tpu.vector_store %arg11[%c0_74, %c1536_75], %161 {strides = array<i32>} : memref<16x3200xbf16, #tpu.memory_space<vmem>>, vector<16x128xbf16>,
    %163 = vector.extract_strided_slice %123 {offsets = [208, 0], sizes = [16, 128], strides = [1, 1]} : vector<400x128xf32> to vector<16x128xf32>
    %164 = arith.truncf %163 : vector<16x128xf32> to vector<16x128xbf16>
    %c0_76 = arith.constant 0 : index
    %c1664_77 = arith.constant 1664 : index
    %165 = vector.load %arg11[%c0_76, %c1664_77] : memref<16x3200xbf16, #tpu.memory_space<vmem>>, vector<16x128xbf16>
    tpu.vector_store %arg11[%c0_76, %c1664_77], %164 {strides = array<i32>} : memref<16x3200xbf16, #tpu.memory_space<vmem>>, vector<16x128xbf16>,
    %166 = vector.extract_strided_slice %123 {offsets = [224, 0], sizes = [16, 128], strides = [1, 1]} : vector<400x128xf32> to vector<16x128xf32>
    %167 = arith.truncf %166 : vector<16x128xf32> to vector<16x128xbf16>
    %c0_78 = arith.constant 0 : index
    %c1792_79 = arith.constant 1792 : index
    %168 = vector.load %arg11[%c0_78, %c1792_79] : memref<16x3200xbf16, #tpu.memory_space<vmem>>, vector<16x128xbf16>
    tpu.vector_store %arg11[%c0_78, %c1792_79], %167 {strides = array<i32>} : memref<16x3200xbf16, #tpu.memory_space<vmem>>, vector<16x128xbf16>,
    %169 = vector.extract_strided_slice %123 {offsets = [240, 0], sizes = [16, 128], strides = [1, 1]} : vector<400x128xf32> to vector<16x128xf32>
    %170 = arith.truncf %169 : vector<16x128xf32> to vector<16x128xbf16>
    %c0_80 = arith.constant 0 : index
    %c1920_81 = arith.constant 1920 : index
    %171 = vector.load %arg11[%c0_80, %c1920_81] : memref<16x3200xbf16, #tpu.memory_space<vmem>>, vector<16x128xbf16>
    tpu.vector_store %arg11[%c0_80, %c1920_81], %170 {strides = array<i32>} : memref<16x3200xbf16, #tpu.memory_space<vmem>>, vector<16x128xbf16>,
    %172 = vector.extract_strided_slice %123 {offsets = [256, 0], sizes = [16, 128], strides = [1, 1]} : vector<400x128xf32> to vector<16x128xf32>
    %173 = arith.truncf %172 : vector<16x128xf32> to vector<16x128xbf16>
    %c0_82 = arith.constant 0 : index
    %c2048_83 = arith.constant 2048 : index
    %174 = vector.load %arg11[%c0_82, %c2048_83] : memref<16x3200xbf16, #tpu.memory_space<vmem>>, vector<16x128xbf16>
    tpu.vector_store %arg11[%c0_82, %c2048_83], %173 {strides = array<i32>} : memref<16x3200xbf16, #tpu.memory_space<vmem>>, vector<16x128xbf16>,
    %175 = vector.extract_strided_slice %123 {offsets = [272, 0], sizes = [16, 128], strides = [1, 1]} : vector<400x128xf32> to vector<16x128xf32>
    %176 = arith.truncf %175 : vector<16x128xf32> to vector<16x128xbf16>
    %c0_84 = arith.constant 0 : index
    %c2176_85 = arith.constant 2176 : index
    %177 = vector.load %arg11[%c0_84, %c2176_85] : memref<16x3200xbf16, #tpu.memory_space<vmem>>, vector<16x128xbf16>
    tpu.vector_store %arg11[%c0_84, %c2176_85], %176 {strides = array<i32>} : memref<16x3200xbf16, #tpu.memory_space<vmem>>, vector<16x128xbf16>,
    %178 = vector.extract_strided_slice %123 {offsets = [288, 0], sizes = [16, 128], strides = [1, 1]} : vector<400x128xf32> to vector<16x128xf32>
    %179 = arith.truncf %178 : vector<16x128xf32> to vector<16x128xbf16>
    %c0_86 = arith.constant 0 : index
    %c2304_87 = arith.constant 2304 : index
    %180 = vector.load %arg11[%c0_86, %c2304_87] : memref<16x3200xbf16, #tpu.memory_space<vmem>>, vector<16x128xbf16>
    tpu.vector_store %arg11[%c0_86, %c2304_87], %179 {strides = array<i32>} : memref<16x3200xbf16, #tpu.memory_space<vmem>>, vector<16x128xbf16>,
    %181 = vector.extract_strided_slice %123 {offsets = [304, 0], sizes = [16, 128], strides = [1, 1]} : vector<400x128xf32> to vector<16x128xf32>
    %182 = arith.truncf %181 : vector<16x128xf32> to vector<16x128xbf16>
    %c0_88 = arith.constant 0 : index
    %c2432_89 = arith.constant 2432 : index
    %183 = vector.load %arg11[%c0_88, %c2432_89] : memref<16x3200xbf16, #tpu.memory_space<vmem>>, vector<16x128xbf16>
    tpu.vector_store %arg11[%c0_88, %c2432_89], %182 {strides = array<i32>} : memref<16x3200xbf16, #tpu.memory_space<vmem>>, vector<16x128xbf16>,
    %184 = vector.extract_strided_slice %123 {offsets = [320, 0], sizes = [16, 128], strides = [1, 1]} : vector<400x128xf32> to vector<16x128xf32>
    %185 = arith.truncf %184 : vector<16x128xf32> to vector<16x128xbf16>
    %c0_90 = arith.constant 0 : index
    %c2560_91 = arith.constant 2560 : index
    %186 = vector.load %arg11[%c0_90, %c2560_91] : memref<16x3200xbf16, #tpu.memory_space<vmem>>, vector<16x128xbf16>
    tpu.vector_store %arg11[%c0_90, %c2560_91], %185 {strides = array<i32>} : memref<16x3200xbf16, #tpu.memory_space<vmem>>, vector<16x128xbf16>,
    %187 = vector.extract_strided_slice %123 {offsets = [336, 0], sizes = [16, 128], strides = [1, 1]} : vector<400x128xf32> to vector<16x128xf32>
    %188 = arith.truncf %187 : vector<16x128xf32> to vector<16x128xbf16>
    %c0_92 = arith.constant 0 : index
    %c2688_93 = arith.constant 2688 : index
    %189 = vector.load %arg11[%c0_92, %c2688_93] : memref<16x3200xbf16, #tpu.memory_space<vmem>>, vector<16x128xbf16>
    tpu.vector_store %arg11[%c0_92, %c2688_93], %188 {strides = array<i32>} : memref<16x3200xbf16, #tpu.memory_space<vmem>>, vector<16x128xbf16>,
    %190 = vector.extract_strided_slice %123 {offsets = [352, 0], sizes = [16, 128], strides = [1, 1]} : vector<400x128xf32> to vector<16x128xf32>
    %191 = arith.truncf %190 : vector<16x128xf32> to vector<16x128xbf16>
    %c0_94 = arith.constant 0 : index
    %c2816_95 = arith.constant 2816 : index
    %192 = vector.load %arg11[%c0_94, %c2816_95] : memref<16x3200xbf16, #tpu.memory_space<vmem>>, vector<16x128xbf16>
    tpu.vector_store %arg11[%c0_94, %c2816_95], %191 {strides = array<i32>} : memref<16x3200xbf16, #tpu.memory_space<vmem>>, vector<16x128xbf16>,
    %193 = vector.extract_strided_slice %123 {offsets = [368, 0], sizes = [16, 128], strides = [1, 1]} : vector<400x128xf32> to vector<16x128xf32>
    %194 = arith.truncf %193 : vector<16x128xf32> to vector<16x128xbf16>
    %c0_96 = arith.constant 0 : index
    %c2944_97 = arith.constant 2944 : index
    %195 = vector.load %arg11[%c0_96, %c2944_97] : memref<16x3200xbf16, #tpu.memory_space<vmem>>, vector<16x128xbf16>
    tpu.vector_store %arg11[%c0_96, %c2944_97], %194 {strides = array<i32>} : memref<16x3200xbf16, #tpu.memory_space<vmem>>, vector<16x128xbf16>,
    %196 = vector.extract_strided_slice %123 {offsets = [384, 0], sizes = [16, 128], strides = [1, 1]} : vector<400x128xf32> to vector<16x128xf32>
    %197 = arith.truncf %196 : vector<16x128xf32> to vector<16x128xbf16>
    %c0_98 = arith.constant 0 : index
    %c3072_99 = arith.constant 3072 : index
    %198 = vector.load %arg11[%c0_98, %c3072_99] : memref<16x3200xbf16, #tpu.memory_space<vmem>>, vector<16x128xbf16>
    tpu.vector_store %arg11[%c0_98, %c3072_99], %197 {strides = array<i32>} : memref<16x3200xbf16, #tpu.memory_space<vmem>>, vector<16x128xbf16>,
    %c0_100 = arith.constant 0 : index
    %c0_101 = arith.constant 0 : index
    %199 = vector.load %arg11[%c0_100, %c0_101] : memref<16x3200xbf16, #tpu.memory_space<vmem>>, vector<16x3200xbf16>
    %c0_102 = arith.constant 0 : index
    %c0_103 = arith.constant 0 : index
    %200 = vector.load %arg5[%c0_102, %c0_103] : memref<3200x128xbf16, #tpu.memory_space<vmem>>, vector<3200x128xbf16>
    %cst_104 = arith.constant dense<0.000000e+00> : vector<16x128xf32>
    %201 = tpu.matmul %199, %200, %cst_104 {dimension_numbers = #tpu.dot_dimension_numbers<[1], [0], [0], [1], [0, 0, 1, 1], [], []>} : vector<16x3200xbf16>, vector<3200x128xbf16>, vector<16x128xf32> -> vector<16x128xf32>
    %c0_105 = arith.constant 0 : index
    %c0_106 = arith.constant 0 : index
    %202 = vector.load %arg6[%c0_105, %c0_106] : memref<128x128xbf16, #tpu.memory_space<vmem>>, vector<128x128xbf16>
    %cst_107 = arith.constant dense<0.000000e+00> : vector<16x128xf32>
    %203 = tpu.matmul %120, %202, %cst_107 {dimension_numbers = #tpu.dot_dimension_numbers<[1], [0], [0], [1], [0, 0, 1, 1], [], []>} : vector<16x128xbf16>, vector<128x128xbf16>, vector<16x128xf32> -> vector<16x128xf32>
    %204 = arith.addf %201, %203 : vector<16x128xf32>
    %205 = vector.broadcast %121 : vector<1x128xf32> to vector<16x128xf32>
    %206 = arith.addf %204, %205 : vector<16x128xf32>
    %207 = vector.extract_strided_slice %0 {offsets = [4, 0], sizes = [1, 128], strides = [1, 1]} : vector<16x128xf32> to vector<1x128xf32>
    %208 = vector.extract_strided_slice %0 {offsets = [5, 0], sizes = [1, 128], strides = [1, 1]} : vector<16x128xf32> to vector<1x128xf32>
    %cst_108 = arith.constant dense<0.000000e+00> : vector<128xf32>
    %209 = vector.multi_reduction <add>, %206, %cst_108 [0] : vector<16x128xf32> to vector<128xf32>
    %210 = vector.shape_cast %209 : vector<128xf32> to vector<1x128xf32>
    %cst_109 = arith.constant 1.600000e+01 : f32
    %211 = vector.broadcast %cst_109 : f32 to vector<1x128xf32>
    %212 = arith.divf %210, %211 : vector<1x128xf32>
    %213 = vector.broadcast %212 : vector<1x128xf32> to vector<16x128xf32>
    %214 = arith.subf %206, %213 : vector<16x128xf32>
    %215 = arith.mulf %214, %214 : vector<16x128xf32>
    %cst_110 = arith.constant dense<0.000000e+00> : vector<128xf32>
    %216 = vector.multi_reduction <add>, %215, %cst_110 [0] : vector<16x128xf32> to vector<128xf32>
    %217 = vector.shape_cast %216 : vector<128xf32> to vector<1x128xf32>
    %cst_111 = arith.constant 1.600000e+01 : f32
    %218 = vector.broadcast %cst_111 : f32 to vector<1x128xf32>
    %219 = arith.divf %217, %218 : vector<1x128xf32>
    %220 = vector.broadcast %212 : vector<1x128xf32> to vector<16x128xf32>
    %221 = arith.subf %206, %220 : vector<16x128xf32>
    %222 = vector.broadcast %207 : vector<1x128xf32> to vector<16x128xf32>
    %223 = arith.mulf %222, %221 : vector<16x128xf32>
    %cst_112 = arith.constant 9.99999974E-6 : f32
    %224 = vector.broadcast %cst_112 : f32 to vector<1x128xf32>
    %225 = arith.addf %219, %224 : vector<1x128xf32>
    %226 = math.rsqrt %225 : vector<1x128xf32>
    %227 = vector.broadcast %226 : vector<1x128xf32> to vector<16x128xf32>
    %228 = arith.mulf %223, %227 : vector<16x128xf32>
    %229 = vector.broadcast %208 : vector<1x128xf32> to vector<16x128xf32>
    %230 = arith.addf %228, %229 : vector<16x128xf32>
    %231 = vector.extract_strided_slice %0 {offsets = [6, 0], sizes = [1, 128], strides = [1, 1]} : vector<16x128xf32> to vector<1x128xf32>
    %c0_113 = arith.constant 0 : index
    %c0_114 = arith.constant 0 : index
    %232 = vector.load %arg2[%c0_113, %c0_114] : memref<16x16xbf16, #tpu.memory_space<vmem>>, vector<16x16xbf16>
    %cst_115 = arith.constant dense<0.000000e+00> : vector<16x128xf32>
    %233 = tpu.matmul %232, %1, %cst_115 {dimension_numbers = #tpu.dot_dimension_numbers<[1], [0], [0], [1], [0, 0, 1, 1], [], []>} : vector<16x16xbf16>, vector<16x128xbf16>, vector<16x128xf32> -> vector<16x128xf32>
    %234 = arith.truncf %233 : vector<16x128xf32> to vector<16x128xbf16>
    %c0_116 = arith.constant 0 : index
    %c0_117 = arith.constant 0 : index
    %235 = vector.load %arg7[%c0_116, %c0_117] : memref<128x128xbf16, #tpu.memory_space<vmem>>, vector<128x128xbf16>
    %cst_118 = arith.constant dense<0.000000e+00> : vector<16x128xf32>
    %236 = tpu.matmul %234, %235, %cst_118 {dimension_numbers = #tpu.dot_dimension_numbers<[1], [0], [0], [1], [0, 0, 1, 1], [], []>} : vector<16x128xbf16>, vector<128x128xbf16>, vector<16x128xf32> -> vector<16x128xf32>
    %c0_119 = arith.constant 0 : index
    %c0_120 = arith.constant 0 : index
    %237 = vector.load %arg8[%c0_119, %c0_120] : memref<128x128xbf16, #tpu.memory_space<vmem>>, vector<128x128xbf16>
    %cst_121 = arith.constant dense<0.000000e+00> : vector<16x128xf32>
    %238 = tpu.matmul %1, %237, %cst_121 {dimension_numbers = #tpu.dot_dimension_numbers<[1], [0], [0], [1], [0, 0, 1, 1], [], []>} : vector<16x128xbf16>, vector<128x128xbf16>, vector<16x128xf32> -> vector<16x128xf32>
    %239 = arith.addf %236, %238 : vector<16x128xf32>
    %240 = vector.broadcast %231 : vector<1x128xf32> to vector<16x128xf32>
    %241 = arith.addf %239, %240 : vector<16x128xf32>
    %242 = vector.extract_strided_slice %0 {offsets = [7, 0], sizes = [1, 128], strides = [1, 1]} : vector<16x128xf32> to vector<1x128xf32>
    %243 = vector.extract_strided_slice %0 {offsets = [8, 0], sizes = [1, 128], strides = [1, 1]} : vector<16x128xf32> to vector<1x128xf32>
    %cst_122 = arith.constant dense<0.000000e+00> : vector<128xf32>
    %244 = vector.multi_reduction <add>, %241, %cst_122 [0] : vector<16x128xf32> to vector<128xf32>
    %245 = vector.shape_cast %244 : vector<128xf32> to vector<1x128xf32>
    %cst_123 = arith.constant 1.600000e+01 : f32
    %246 = vector.broadcast %cst_123 : f32 to vector<1x128xf32>
    %247 = arith.divf %245, %246 : vector<1x128xf32>
    %248 = vector.broadcast %247 : vector<1x128xf32> to vector<16x128xf32>
    %249 = arith.subf %241, %248 : vector<16x128xf32>
    %250 = arith.mulf %249, %249 : vector<16x128xf32>
    %cst_124 = arith.constant dense<0.000000e+00> : vector<128xf32>
    %251 = vector.multi_reduction <add>, %250, %cst_124 [0] : vector<16x128xf32> to vector<128xf32>
    %252 = vector.shape_cast %251 : vector<128xf32> to vector<1x128xf32>
    %cst_125 = arith.constant 1.600000e+01 : f32
    %253 = vector.broadcast %cst_125 : f32 to vector<1x128xf32>
    %254 = arith.divf %252, %253 : vector<1x128xf32>
    %255 = vector.broadcast %247 : vector<1x128xf32> to vector<16x128xf32>
    %256 = arith.subf %241, %255 : vector<16x128xf32>
    %257 = vector.broadcast %242 : vector<1x128xf32> to vector<16x128xf32>
    %258 = arith.mulf %257, %256 : vector<16x128xf32>
    %cst_126 = arith.constant 9.99999974E-6 : f32
    %259 = vector.broadcast %cst_126 : f32 to vector<1x128xf32>
    %260 = arith.addf %254, %259 : vector<1x128xf32>
    %261 = math.rsqrt %260 : vector<1x128xf32>
    %262 = vector.broadcast %261 : vector<1x128xf32> to vector<16x128xf32>
    %263 = arith.mulf %258, %262 : vector<16x128xf32>
    %264 = vector.broadcast %243 : vector<1x128xf32> to vector<16x128xf32>
    %265 = arith.addf %263, %264 : vector<16x128xf32>
    %266 = arith.addf %230, %265 : vector<16x128xf32>
    %cst_127 = arith.constant 0.000000e+00 : f32
    %267 = vector.broadcast %cst_127 : f32 to vector<16x128xf32>
    %268 = arith.cmpf ogt, %266, %267 : vector<16x128xf32>
    %cst_128 = arith.constant 0.000000e+00 : f32
    %269 = vector.broadcast %cst_128 : f32 to vector<16x128xf32>
    %270 = arith.minimumf %266, %269 : vector<16x128xf32>
    %271 = math.exp %270 : vector<16x128xf32>
    %cst_129 = arith.constant 1.000000e+00 : f32
    %272 = vector.broadcast %cst_129 : f32 to vector<16x128xf32>
    %273 = arith.subf %271, %272 : vector<16x128xf32>
    %274 = arith.select %268, %266, %273 : vector<16x128xi1>, vector<16x128xf32>
    %c0_130 = arith.constant 0 : index
    %c0_131 = arith.constant 0 : index
    %275 = vector.load %arg10[%c0_130, %c0_131] : memref<16x128xf32, #tpu.memory_space<vmem>>, vector<16x128xf32>
    tpu.vector_store %arg10[%c0_130, %c0_131], %274 {strides = array<i32>} : memref<16x128xf32, #tpu.memory_space<vmem>>, vector<16x128xf32>,
    return
  }
}

</mosaic_0001>

<bundles_post_ra>
// kernel: residual_block_forward.1
= control target key start
LH: loop header
LB: loop body
LE: loop exit
PB: predicated region body
PF: predicated region fallthrough
CT: control target
= control target key end

     0   :  { %vm221_vm0 = vcmask 130048   ;;  %s10377_s0 = inlined_call_operand.vmem [shape: bf16[16,128], index: 0, kind: input, shape index: {}]   ;;  %s10378_s1 = inlined_call_operand.vmem [shape: bf16[400,16], index: 1, kind: input, shape index: {}]   ;;  %s10379_s4 = inlined_call_operand.vmem [shape: bf16[128,128], index: 4, kind: input, shape index: {}]   ;;  %s10380_s3 = inlined_call_operand.vmem [shape: bf16[3200,128], index: 3, kind: input, shape index: {}]   ;;  %s10381_s9 = inlined_call_operand.vmem [shape: f32[16,128], index: 9, kind: input, shape index: {}]   ;;  %s10382_s6 = inlined_call_operand.vmem [shape: bf16[128,128], index: 6, kind: input, shape index: {}]   ;;  %s10383_s5 = inlined_call_operand.vmem [shape: bf16[3200,128], index: 5, kind: input, shape index: {}]   ;;  %s10384_s2 = inlined_call_operand.vmem [shape: bf16[16,16], index: 2, kind: input, shape index: {}]   ;;  %s10385_s8 = inlined_call_operand.vmem [shape: bf16[128,128], index: 8, kind: input, shape index: {}]   ;;  %s10386_s7 = inlined_call_operand.vmem [shape: bf16[128,128], index: 7, kind: input, shape index: {}]   ;;  %s10387_s10 = inlined_call_operand.vmem [shape: f32[16,128], index: 10, kind: output, shape index: {}]  }
   0x1   :  { %v7913_v0 = vld [vmem:[%s10377_s0] sm:$0xff]  ;;  %v7915_v2 = vld [vmem:[%s10378_s1 + $0x8] sm:$0xff]  ;;  %v7916_v3 = vld [vmem:[%s10378_s1 + $0x10] sm:$0xff] }
   0x2   :  { %v7914_v1 = vld [vmem:[%s10378_s1] sm:$0xff]  ;;  %304 = vmatpush.bf16.msra.mxu0 %v7913_v0  ;;  %v7917_v4 = vld [vmem:[%s10378_s1 + $0x18] sm:$0xff]  ;;  %v8170_v7 = vld [vmem:[%s10379_s4 + $0x30] sm:$0xff] }
   0x3   :  { %v7918_v5 = vld [vmem:[%s10378_s1 + $0x20] sm:$0xff]  ;;  %v8171_v6 = vld [vmem:[%s10379_s4 + $0x38] sm:$0xff]  ;;  %v7919_v8 = vld [vmem:[%s10378_s1 + $0x28] sm:$0xff] }
   0x4   :  { %1021 = vmatpush.bf16.msra.mxu1 %v8171_v6  ;;  %v8169_v9 = vld [vmem:[%s10379_s4 + $0x28] sm:$0xff]  ;;  %v7971_v10 = vld [vmem:[%s10380_s3 + $0x38] sm:$0xff]  ;;  %v8168_v11 = vld [vmem:[%s10379_s4 + $0x20] sm:$0xff] }
   0x5   :  { %5826 = vmatmul.msk.bf16.vlgmr.msra.gmra.mxu0 %vm221_vm0, %v7914_v1  ;;  %2361 = vmatpush.bf16.msra.mxu2 %v7971_v10  ;;  %v8167_v12 = vld [vmem:[%s10379_s4 + $0x18] sm:$0xff]  ;;  %v8166_v13 = vld [vmem:[%s10379_s4 + $0x10] sm:$0xff]  ;;  %v8165_v16 = vld [vmem:[%s10379_s4 + $0x8] sm:$0xff] }
   0x6   :  { %v7920_v14 = vld [vmem:[%s10378_s1 + $0x30] sm:$0xff]  ;;  %v7969_v17 = vld [vmem:[%s10380_s3 + $0x28] sm:$0xff]  ;;  %v8164_v18 = vld [vmem:[%s10379_s4] sm:$0xff] }
   0x7   :  { %v7970_v15 = vld [vmem:[%s10380_s3 + $0x30] sm:$0xff]  ;;  %v7979_v19 = vld [vmem:[%s10380_s3 + $0x78] sm:$0xff]  ;;  %v7968_v20 = vld [vmem:[%s10380_s3 + $0x20] sm:$0xff] }
   0x8   :  { %1022 = vmatpush.bf16.msra.mxu1 %v8170_v7  ;;  %v7978_v21 = vld [vmem:[%s10380_s3 + $0x70] sm:$0xff]  ;;  %v7967_v22 = vld [vmem:[%s10380_s3 + $0x18] sm:$0xff]  ;;  %v7977_v24 = vld [vmem:[%s10380_s3 + $0x68] sm:$0xff] }
   0x9   :  { %2362 = vmatpush.bf16.msra.mxu2 %v7970_v15  ;;  %v7921_v23 = vld [vmem:[%s10378_s1 + $0x38] sm:$0xff]  ;;  %v7966_v25 = vld [vmem:[%s10380_s3 + $0x10] sm:$0xff]  ;;  %v7976_v26 = vld [vmem:[%s10380_s3 + $0x60] sm:$0xff] }
   0xa   :  { %v7965_v27 = vld [vmem:[%s10380_s3 + $0x8] sm:$0xff]  ;;  %v7975_v28 = vld [vmem:[%s10380_s3 + $0x58] sm:$0xff]  ;;  %v7964_v29 = vld [vmem:[%s10380_s3] sm:$0xff] }
   0xb   :  { %v7974_v30 = vld [vmem:[%s10380_s3 + $0x50] sm:$0xff]  ;;  %v7922_v31 = vld [vmem:[%s10378_s1 + $0x40] sm:$0xff]  ;;  %v7973_v32 = vld [vmem:[%s10380_s3 + $0x48] sm:$0xff] }
   0xc   :  { %1023 = vmatpush.bf16.msra.mxu1 %v8169_v9  ;;  %v7972_v34 = vld [vmem:[%s10380_s3 + $0x40] sm:$0xff]  ;;  %v7987_v35 = vld [vmem:[%s10380_s3 + $0xb8] sm:$0xff]  ;;  %v7986_v37 = vld [vmem:[%s10380_s3 + $0xb0] sm:$0xff] }
   0xd   :  { %2363 = vmatpush.bf16.msra.mxu2 %v7969_v17  ;;  %v7985_v39 = vld [vmem:[%s10380_s3 + $0xa8] sm:$0xff]  ;;  %v7984_v42 = vld [vmem:[%s10380_s3 + $0xa0] sm:$0xff]  ;;  %v7983_v44 = vld [vmem:[%s10380_s3 + $0x98] sm:$0xff] }
   0xe   :  { %v7923_v40 = vld [vmem:[%s10378_s1 + $0x48] sm:$0xff]  ;;  %v7995_v45 = vld [vmem:[%s10380_s3 + $0xf8] sm:$0xff]  ;;  %v7982_v47 = vld [vmem:[%s10380_s3 + $0x90] sm:$0xff] }
   0xf   :  { %v7994_v48 = vld [vmem:[%s10380_s3 + $0xf0] sm:$0xff]  ;;  %v8003_v50 = vld [vmem:[%s10380_s3 + $0x138] sm:$0xff]  ;;  %v7981_v52 = vld [vmem:[%s10380_s3 + $0x88] sm:$0xff] }
  0x10   :  { %1024 = vmatpush.bf16.msra.mxu1 %v8168_v11  ;;  %v7993_v53 = vld [vmem:[%s10380_s3 + $0xe8] sm:$0xff]  ;;  %2417 = vmatpush.bf16.msra.mxu3 %v8003_v50  ;;  %v7924_v55 = vld [vmem:[%s10378_s1 + $0x50] sm:$0xff]  ;;  %v7980_v57 = vld [vmem:[%s10380_s3 + $0x80] sm:$0xff] }
  0x11   :  { %2364 = vmatpush.bf16.msra.mxu2 %v7968_v20  ;;  %v7992_v58 = vld [vmem:[%s10380_s3 + $0xe0] sm:$0xff]  ;;  %v8002_v59 = vld [vmem:[%s10380_s3 + $0x130] sm:$0xff]  ;;  %v7991_v60 = vld [vmem:[%s10380_s3 + $0xd8] sm:$0xff] }
  0x12   :  { %v8001_v61 = vld [vmem:[%s10380_s3 + $0x128] sm:$0xff]  ;;  %v7990_v63 = vld [vmem:[%s10380_s3 + $0xd0] sm:$0xff]  ;;  %v7988_v6 = vld [vmem:[%s10380_s3 + $0xc0] sm:$0xff] }
  0x13   :  { %v7998_v7 = vld [vmem:[%s10380_s3 + $0x110] sm:$0xff]  ;;  %v7996_v15 = vld [vmem:[%s10380_s3 + $0x100] sm:$0xff]  ;;  %v8009_v17 = vld [vmem:[%s10380_s3 + $0x168] sm:$0xff] }
  0x14   :  { %1025 = vmatpush.bf16.msra.mxu1 %v8167_v12  ;;  %2418 = vmatpush.bf16.msra.mxu3 %v8002_v59  ;;  %v7997_v12 = vld [vmem:[%s10380_s3 + $0x108] sm:$0xff]  ;;  %v8022_v59 = vld [vmem:[%s10380_s3 + $0x1d0] sm:$0xff] }
  0x15   :  { %5827 = vmatmul.msk.bf16.gmra.mxu0 %vm221_vm0, %v7915_v2  ;;  %2365 = vmatpush.bf16.msra.mxu2 %v7967_v22  ;;  %v7989_v2 = vld [vmem:[%s10380_s3 + $0xc8] sm:$0xff]  ;;  %v8008_v22 = vld [vmem:[%s10380_s3 + $0x160] sm:$0xff] }
  0x16   :  { %v8025_v50 = vld [vmem:[%s10380_s3 + $0x1e8] sm:$0xff] }
  0x18   :  { %1026 = vmatpush.bf16.msra.mxu1 %v8166_v13  ;;  %2419 = vmatpush.bf16.msra.mxu3 %v8001_v61  ;;  %v8011_v13 = vld [vmem:[%s10380_s3 + $0x178] sm:$0xff] }
  0x19   :  { %2366 = vmatpush.bf16.msra.mxu2 %v7966_v25 }
  0x1c   :  { %1027 = vmatpush.bf16.msra.mxu1 %v8165_v16  ;;  %v8010_v16 = vld [vmem:[%s10380_s3 + $0x170] sm:$0xff] }
  0x1d   :  { %2367 = vmatpush.bf16.msra.mxu2 %v7965_v27  ;;  %v8017_v27 = vld [vmem:[%s10380_s3 + $0x1a8] sm:$0xff] }
  0x20   :  { %1028 = vmatpush.bf16.msra.mxu1 %v8164_v18  ;;  %v8019_v18 = vld [vmem:[%s10380_s3 + $0x1b8] sm:$0xff] }
  0x21   :  { %2368 = vmatpush.bf16.msra.mxu2 %v7964_v29  ;;  %v8006_v29 = vld [vmem:[%s10380_s3 + $0x150] sm:$0xff] }
  0x23   :  { %1029 = vmatmul.bf16.vlgmr.msra.gmra.mxu1 %v7913_v0  ;;  %v8000_v0 = vld [vmem:[%s10380_s3 + $0x120] sm:$0xff] }
  0x24   :  { %2375 = vmatpush.bf16.msrb.mxu1 %v7979_v19  ;;  %2420 = vmatpush.bf16.msra.mxu3 %v8000_v0  ;;  %v7926_v19 = vld [vmem:[%s10378_s1 + $0x60] sm:$0xff]  ;;  %v7929_v0 = vld [vmem:[%s10378_s1 + $0x78] sm:$0xff] }
  0x25   :  { %5828 = vmatmul.msk.bf16.gmra.mxu0 %vm221_vm0, %v7916_v3  ;;  %2403 = vmatpush.bf16.msrb.mxu2 %v7995_v45  ;;  %v7999_v3 = vld [vmem:[%s10380_s3 + $0x118] sm:$0xff]  ;;  %v8012_v45 = vld [vmem:[%s10380_s3 + $0x180] sm:$0xff] }
  0x28   :  { %2376 = vmatpush.bf16.msrb.mxu1 %v7978_v21  ;;  %2421 = vmatpush.bf16.msra.mxu3 %v7999_v3  ;;  %v8030_v3 = vld [vmem:[%s10380_s3 + $0x210] sm:$0xff] }
  0x29   :  { %2404 = vmatpush.bf16.msrb.mxu2 %v7994_v48 }
  0x2c   :  { %2377 = vmatpush.bf16.msrb.mxu1 %v7977_v24  ;;  %2422 = vmatpush.bf16.msra.mxu3 %v7998_v7 }
  0x2d   :  { %2405 = vmatpush.bf16.msrb.mxu2 %v7993_v53 }
  0x30   :  { %2378 = vmatpush.bf16.msrb.mxu1 %v7976_v26  ;;  %2423 = vmatpush.bf16.msra.mxu3 %v7997_v12  ;;  %v8007_v26 = vld [vmem:[%s10380_s3 + $0x158] sm:$0xff]  ;;  %v8042_v12 = vld [vmem:[%s10380_s3 + $0x270] sm:$0xff] }
  0x31   :  { %2406 = vmatpush.bf16.msrb.mxu2 %v7992_v58 }
  0x34   :  { %2379 = vmatpush.bf16.msrb.mxu1 %v7975_v28  ;;  %2424 = vmatpush.bf16.msra.mxu3 %v7996_v15 }
  0x35   :  { %5829 = vmatmul.msk.bf16.gmra.mxu0 %vm221_vm0, %v7917_v4  ;;  %2407 = vmatpush.bf16.msrb.mxu2 %v7991_v60  ;;  %v7925_v4 = vld [vmem:[%s10378_s1 + $0x58] sm:$0xff]  ;;  %v8032_v60 = vld [vmem:[%s10380_s3 + $0x220] sm:$0xff] }
  0x38   :  { %2380 = vmatpush.bf16.msrb.mxu1 %v7974_v30  ;;  %v8016_v30 = vld [vmem:[%s10380_s3 + $0x1a0] sm:$0xff] }
  0x39   :  { %2408 = vmatpush.bf16.msrb.mxu2 %v7990_v63  ;;  %v8031_v63 = vld [vmem:[%s10380_s3 + $0x218] sm:$0xff] }
  0x3c   :  { %2381 = vmatpush.bf16.msrb.mxu1 %v7973_v32  ;;  %v8005_v32 = vld [vmem:[%s10380_s3 + $0x148] sm:$0xff] }
  0x3d   :  { %2409 = vmatpush.bf16.msrb.mxu2 %v7989_v2  ;;  %v8020_v2 = vld [vmem:[%s10380_s3 + $0x1c0] sm:$0xff] }
  0x40   :  { %2382 = vmatpush.bf16.msrb.mxu1 %v7972_v34  ;;  %v7927_v34 = vld [vmem:[%s10378_s1 + $0x68] sm:$0xff] }
  0x41   :  { %2410 = vmatpush.bf16.msrb.mxu2 %v7988_v6 }
  0x44   :  { %2389 = vmatpush.bf16.msra.mxu1 %v7987_v35 }
  0x45   :  { %5830 = vmatmul.msk.bf16.gmra.mxu0 %vm221_vm0, %v7918_v5 }
  0x48   :  { %2390 = vmatpush.bf16.msra.mxu1 %v7986_v37  ;;  %v8014_v37 = vld [vmem:[%s10380_s3 + $0x190] sm:$0xff] }
  0x4c   :  { %2391 = vmatpush.bf16.msra.mxu1 %v7985_v39 }
  0x50   :  { %2392 = vmatpush.bf16.msra.mxu1 %v7984_v42  ;;  %v8013_v42 = vld [vmem:[%s10380_s3 + $0x188] sm:$0xff] }
  0x54   :  { %2393 = vmatpush.bf16.msra.mxu1 %v7983_v44 }
  0x55   :  { %5831 = vmatmul.msk.bf16.gmra.mxu0 %vm221_vm0, %v7919_v8 }
  0x58   :  { %2394 = vmatpush.bf16.msra.mxu1 %v7982_v47 }
  0x5c   :  { %2395 = vmatpush.bf16.msra.mxu1 %v7981_v52  ;;  %v7928_v52 = vld [vmem:[%s10378_s1 + $0x70] sm:$0xff] }
  0x60   :  { %2396 = vmatpush.bf16.msra.mxu1 %v7980_v57  ;;  %v8033_v57 = vld [vmem:[%s10380_s3 + $0x228] sm:$0xff] }
  0x65   :  { %5832 = vmatmul.msk.bf16.gmra.mxu0 %vm221_vm0, %v7920_v14 }
  0x75   :  { %5833 = vmatmul.msk.bf16.gmra.mxu0 %vm221_vm0, %v7921_v23  ;;  %v8018_v23 = vld [vmem:[%s10380_s3 + $0x1b0] sm:$0xff] }
  0x82   :  { %v306_v33 = vpop.f32.mrf.mxu0 }
  0x85   :  { %5834 = vmatmul.msk.bf16.gmra.mxu0 %vm221_vm0, %v7922_v31 }
  0x8a   :  { %v308_v36 = vpop.f32.mrf.mxu0 }
  0x8b   :  { %v432_v38 = vpack.c.bf16 %v308_v36, %v308_v36  ;;  %v8004_v36 = vld [vmem:[%s10380_s3 + $0x140] sm:$0xff] }
  0x8d   :  { %434 = vst [vmem:[#allocation2 + $0x64] sm:$0xf] %v432_v38 }
  0x92   :  { %v311_v41 = vpop.f32.mrf.mxu0 }
  0x93   :  { %v8450_v43 = vpack.c.bf16 %v311_v41, %v306_v33  ;;  %v8015_v33 = vld [vmem:[%s10380_s3 + $0x198] sm:$0xff] }
  0x94   :  { %v7951_v49 = vld [vmem:[#allocation2 + $0x60] sm:$0xf0] }
  0x95   :  { %8451 = vst [vmem:[#allocation2] sm:$0xff] %v8450_v43   ;;  %5835 = vmatmul.msk.bf16.gmra.mxu0 %vm221_vm0, %v7923_v40  ;;  %v8027_v43 = vld [vmem:[%s10380_s3 + $0x1f8] sm:$0xff] }
  0x96   :  { %2459 = vmatpush.bf16.msrb.mxu3 %v8027_v43 }
  0x9a   :  { %v313_v46 = vpop.f32.mrf.mxu0 }
  0x9c   :  { %v5885_v51 = vld [vmem:[#allocation2] sm:$0xf]  ;;  %v7939_v9 = vld [vmem:[#allocation2 + $0x4] sm:$0xf] }
  0x9d   :  { %v5886_v54 = vor.u32 %v7951_v49, %v5885_v51  ;;  %v8035_v51 = vld [vmem:[%s10380_s3 + $0x238] sm:$0xff] }
  0x9f   :  { %2369 = vmatmul.bf16.vlgmr.msra.gmra.mxu2 %v5886_v54  ;;  %v8024_v54 = vld [vmem:[%s10380_s3 + $0x1e0] sm:$0xff] }
  0xa0   :  { %2445 = vmatpush.bf16.msra.mxu2 %v8019_v18  ;;  %v7930_v18 = vld [vmem:[%s10378_s1 + $0x80] sm:$0xff] }
  0xa2   :  { %v316_v56 = vpop.f32.mrf.mxu0 }
  0xa4   :  { %2446 = vmatpush.bf16.msra.mxu2 %v8018_v23  ;;  %v8049_v23 = vld [vmem:[%s10380_s3 + $0x2a8] sm:$0xff] }
  0xa5   :  { %5836 = vmatmul.msk.bf16.gmra.mxu0 %vm221_vm0, %v7924_v55  ;;  %v8034_v55 = vld [vmem:[%s10380_s3 + $0x230] sm:$0xff] }
  0xa8   :  { %2447 = vmatpush.bf16.msra.mxu2 %v8017_v27 }
  0xaa   :  { %v318_v62 = vpop.f32.mrf.mxu0 }
  0xab   :  { %v8455_v1 = vpack.c.bf16 %v318_v62, %v313_v46  ;;  %v8026_v46 = vld [vmem:[%s10380_s3 + $0x1f0] sm:$0xff]  ;;  %v8021_v62 = vld [vmem:[%s10380_s3 + $0x1c8] sm:$0xff] }
  0xac   :  { %2448 = vmatpush.bf16.msra.mxu2 %v8016_v30  ;;  %2460 = vmatpush.bf16.msrb.mxu3 %v8026_v46  ;;  %v7931_v30 = vld [vmem:[%s10378_s1 + $0x88] sm:$0xff] }
  0xad   :  { %8687 = vst [vmem:[#allocation2 + $0x68] sm:$0xff] %v8455_v1   ;;  %v8057_v46 = vld [vmem:[%s10380_s3 + $0x2e8] sm:$0xff] }
  0xb0   :  { %2449 = vmatpush.bf16.msra.mxu2 %v8015_v33  ;;  %2461 = vmatpush.bf16.msrb.mxu3 %v8025_v50  ;;  %v8046_v33 = vld [vmem:[%s10380_s3 + $0x290] sm:$0xff] }
  0xb2   :  { %v321_v5 = vpop.f32.mrf.mxu0 }
  0xb3   :  { %v8460_v8 = vpack.c.bf16 %v321_v5, %v316_v56  ;;  %v8023_v56 = vld [vmem:[%s10380_s3 + $0x1d8] sm:$0xff] }
  0xb4   :  { %v5887_v10 = vld [vmem:[#allocation2 + $0x64] sm:$0xf0]  ;;  %v7952_v24 = vld [vmem:[#allocation2 + $0x68] sm:$0xf0]  ;;  %2450 = vmatpush.bf16.msra.mxu2 %v8014_v37  ;;  %2462 = vmatpush.bf16.msrb.mxu3 %v8024_v54 }
  0xb5   :  { %8688 = vst [vmem:[#allocation2 + $0x8] sm:$0xff] %v8460_v8   ;;  %5837 = vmatmul.msk.bf16.gmra.mxu0 %vm221_vm0, %v7925_v4  ;;  %v5890_v11 = vor.u32 %v7939_v9, %v5887_v10  ;;  %v8029_v8 = vld [vmem:[%s10380_s3 + $0x208] sm:$0xff]  ;;  %v8043_v9 = vld [vmem:[%s10380_s3 + $0x278] sm:$0xff] }
  0xb7   :  { %2383 = vmatmul.bf16.vlgmr.msrb.gmra.mxu1 %v5890_v11  ;;  %v8028_v11 = vld [vmem:[%s10380_s3 + $0x200] sm:$0xff] }
  0xb8   :  { %2431 = vmatpush.bf16.msrb.mxu1 %v8011_v13  ;;  %2451 = vmatpush.bf16.msra.mxu2 %v8013_v42  ;;  %v8058_v42 = vld [vmem:[%s10380_s3 + $0x2f0] sm:$0xff] }
  0xb9   :  { %2463 = vmatpush.bf16.msrb.mxu3 %v8023_v56  ;;  %v8065_v56 = vld [vmem:[%s10380_s3 + $0x328] sm:$0xff] }
  0xba   :  { %v323_v14 = vpop.f32.mrf.mxu0 }
  0xbc   :  { %2432 = vmatpush.bf16.msrb.mxu1 %v8010_v16  ;;  %v5893_v21 = vld [vmem:[#allocation2 + $0x8] sm:$0xf]  ;;  %v7940_v39 = vld [vmem:[#allocation2 + $0xc] sm:$0xf]  ;;  %2452 = vmatpush.bf16.msra.mxu2 %v8012_v45 }
  0xbd   :  { %v5894_v25 = vor.u32 %v7952_v24, %v5893_v21  ;;  %2464 = vmatpush.bf16.msrb.mxu3 %v8022_v59  ;;  %v8041_v16 = vld [vmem:[%s10380_s3 + $0x268] sm:$0xff]  ;;  %v8050_v21 = vld [vmem:[%s10380_s3 + $0x2b0] sm:$0xff]  ;;  %v8064_v59 = vld [vmem:[%s10380_s3 + $0x320] sm:$0xff] }
  0xc0   :  { %2433 = vmatpush.bf16.msrb.mxu1 %v8009_v17  ;;  %v8051_v17 = vld [vmem:[%s10380_s3 + $0x2b8] sm:$0xff] }
  0xc1   :  { %2465 = vmatpush.bf16.msrb.mxu3 %v8021_v62  ;;  %v8053_v62 = vld [vmem:[%s10380_s3 + $0x2c8] sm:$0xff] }
  0xc2   :  { %v326_v20 = vpop.f32.mrf.mxu0 }
  0xc4   :  { %2434 = vmatpush.bf16.msrb.mxu1 %v8008_v22  ;;  %v8039_v22 = vld [vmem:[%s10380_s3 + $0x258] sm:$0xff] }
  0xc5   :  { %5838 = vmatmul.msk.bf16.gmra.mxu0 %vm221_vm0, %v7926_v19  ;;  %2466 = vmatpush.bf16.msrb.mxu3 %v8020_v2  ;;  %v8052_v2 = vld [vmem:[%s10380_s3 + $0x2c0] sm:$0xff] }
  0xc7   :  { %2397 = vmatmul.bf16.vlgmr.msra.gmra.mxu1 %v5894_v25  ;;  %v8038_v25 = vld [vmem:[%s10380_s3 + $0x250] sm:$0xff] }
  0xc8   :  { %2435 = vmatpush.bf16.msrb.mxu1 %v8007_v26  ;;  %v8048_v26 = vld [vmem:[%s10380_s3 + $0x2a0] sm:$0xff] }
  0xca   :  { %v328_v28 = vpop.f32.mrf.mxu0 }
  0xcb   :  { %v8465_v31 = vpack.c.bf16 %v328_v28, %v323_v14  ;;  %v8037_v28 = vld [vmem:[%s10380_s3 + $0x248] sm:$0xff] }
  0xcc   :  { %2436 = vmatpush.bf16.msrb.mxu1 %v8006_v29  ;;  %v8047_v29 = vld [vmem:[%s10380_s3 + $0x298] sm:$0xff] }
  0xcd   :  { %8689 = vst [vmem:[#allocation2 + $0x70] sm:$0xff] %v8465_v31  }
  0xd0   :  { %2437 = vmatpush.bf16.msrb.mxu1 %v8005_v32  ;;  %v8036_v32 = vld [vmem:[%s10380_s3 + $0x240] sm:$0xff] }
  0xd2   :  { %v331_v35 = vpop.f32.mrf.mxu0 }
  0xd3   :  { %v8470_v38 = vpack.c.bf16 %v331_v35, %v326_v20  ;;  %v8040_v20 = vld [vmem:[%s10380_s3 + $0x260] sm:$0xff] }
  0xd4   :  { %v5895_v40 = vld [vmem:[#allocation2 + $0x6c] sm:$0xf0]  ;;  %2438 = vmatpush.bf16.msrb.mxu1 %v8004_v36  ;;  %v7953_v48 = vld [vmem:[#allocation2 + $0x70] sm:$0xf0] }
  0xd5   :  { %8690 = vst [vmem:[#allocation2 + $0x10] sm:$0xff] %v8470_v38   ;;  %5839 = vmatmul.msk.bf16.gmra.mxu0 %vm221_vm0, %v7927_v34  ;;  %v5898_v41 = vor.u32 %v7940_v39, %v5895_v40  ;;  %v8045_v38 = vld [vmem:[%s10380_s3 + $0x288] sm:$0xff]  ;;  %v8059_v39 = vld [vmem:[%s10380_s3 + $0x2f8] sm:$0xff] }
  0xd7   :  { %2411 = vmatmul.bf16.vlgmr.msrb.gmra.mxu2 %v5898_v41  ;;  %v8044_v41 = vld [vmem:[%s10380_s3 + $0x280] sm:$0xff] }
  0xd8   :  { %2473 = vmatpush.bf16.msra.mxu1 %v8035_v51  ;;  %2487 = vmatpush.bf16.msrb.mxu2 %v8043_v9 }
  0xda   :  { %v333_v44 = vpop.f32.mrf.mxu0 }
  0xdc   :  { %v5901_v47 = vld [vmem:[#allocation2 + $0x10] sm:$0xf]  ;;  %2474 = vmatpush.bf16.msra.mxu1 %v8034_v55  ;;  %v7941_v5 = vld [vmem:[#allocation2 + $0x14] sm:$0xf]  ;;  %2488 = vmatpush.bf16.msrb.mxu2 %v8042_v12  ;;  %v8055_v55 = vld [vmem:[%s10380_s3 + $0x2d8] sm:$0xff] }
  0xdd   :  { %v5902_v49 = vor.u32 %v7953_v48, %v5901_v47  ;;  %v8067_v47 = vld [vmem:[%s10380_s3 + $0x338] sm:$0xff]  ;;  %v1030_v48 = vpop.f32.mrf.mxu1 }
  0xdf   :  { %2425 = vmatmul.bf16.vlgmr.msra.gmra.mxu3 %v5902_v49  ;;  %v7932_v49 = vld [vmem:[%s10378_s1 + $0x90] sm:$0xff] }
  0xe0   :  { %2475 = vmatpush.bf16.msra.mxu1 %v8033_v57  ;;  %2489 = vmatpush.bf16.msrb.mxu2 %v8041_v16 }
  0xe1   :  { %2501 = vmatpush.bf16.msra.mxu3 %v8051_v17 }
  0xe2   :  { %v336_v53 = vpop.f32.mrf.mxu0 }
  0xe4   :  { %2476 = vmatpush.bf16.msra.mxu1 %v8032_v60  ;;  %2490 = vmatpush.bf16.msrb.mxu2 %v8040_v20  ;;  %v8083_v20 = vld [vmem:[%s10380_s3 + $0x3b8] sm:$0xff] }
  0xe5   :  { %5840 = vmatmul.msk.bf16.gmra.mxu0 %vm221_vm0, %v7928_v52  ;;  %2502 = vmatpush.bf16.msra.mxu3 %v8050_v21  ;;  %v8056_v52 = vld [vmem:[%s10380_s3 + $0x2e0] sm:$0xff] }
  0xe6   :  { %v7934_v21 = vld [vmem:[%s10378_s1 + $0xa0] sm:$0xff] }
  0xe8   :  { %2477 = vmatpush.bf16.msra.mxu1 %v8031_v63  ;;  %2491 = vmatpush.bf16.msrb.mxu2 %v8039_v22  ;;  %v8063_v63 = vld [vmem:[%s10380_s3 + $0x318] sm:$0xff] }
  0xe9   :  { %2503 = vmatpush.bf16.msra.mxu3 %v8049_v23  ;;  %v8072_v23 = vld [vmem:[%s10380_s3 + $0x360] sm:$0xff] }
  0xea   :  { %v338_v58 = vpop.f32.mrf.mxu0 }
  0xeb   :  { %v8475_v61 = vpack.c.bf16 %v338_v58, %v333_v44  ;;  %v8054_v58 = vld [vmem:[%s10380_s3 + $0x2d0] sm:$0xff] }
  0xec   :  { %2478 = vmatpush.bf16.msra.mxu1 %v8030_v3  ;;  %2492 = vmatpush.bf16.msrb.mxu2 %v8038_v25  ;;  %v8062_v3 = vld [vmem:[%s10380_s3 + $0x310] sm:$0xff] }
  0xed   :  { %8691 = vst [vmem:[#allocation2 + $0x78] sm:$0xff] %v8475_v61   ;;  %2504 = vmatpush.bf16.msra.mxu3 %v8048_v26  ;;  %v9205_v61 = vpop.f32.mrf.mxu1 }
  0xf0   :  { %2479 = vmatpush.bf16.msra.mxu1 %v8029_v8  ;;  %2493 = vmatpush.bf16.msrb.mxu2 %v8037_v28  ;;  %v8081_v28 = vld [vmem:[%s10380_s3 + $0x3a8] sm:$0xff] }
  0xf1   :  { %2505 = vmatpush.bf16.msra.mxu3 %v8047_v29 }
  0xf2   :  { %v341_v1 = vpop.f32.mrf.mxu0 }
  0xf3   :  { %v8480_v4 = vpack.c.bf16 %v341_v1, %v336_v53  ;;  %v8066_v53 = vld [vmem:[%s10380_s3 + $0x330] sm:$0xff] }
  0xf4   :  { %v5903_v6 = vld [vmem:[#allocation2 + $0x74] sm:$0xf0]  ;;  %v7954_v14 = vld [vmem:[#allocation2 + $0x78] sm:$0xf0]  ;;  %2480 = vmatpush.bf16.msra.mxu1 %v8028_v11  ;;  %2494 = vmatpush.bf16.msrb.mxu2 %v8036_v32  ;;  %v8080_v32 = vld [vmem:[%s10380_s3 + $0x3a0] sm:$0xff] }
  0xf5   :  { %8692 = vst [vmem:[#allocation2 + $0x18] sm:$0xff] %v8480_v4   ;;  %5841 = vmatmul.msk.bf16.gmra.mxu0 %vm221_vm0, %v7929_v0  ;;  %v5906_v7 = vor.u32 %v7941_v5, %v5903_v6  ;;  %2506 = vmatpush.bf16.msra.mxu3 %v8046_v33  ;;  %v7933_v0 = vld [vmem:[%s10378_s1 + $0x98] sm:$0xff]  ;;  %v8069_v33 = vld [vmem:[%s10380_s3 + $0x348] sm:$0xff] }
  0xf6   :  { %v8075_v11 = vld [vmem:[%s10380_s3 + $0x378] sm:$0xff] }
  0xf7   :  { %2439 = vmatmul.bf16.vlgmr.msrb.gmra.mxu1 %v5906_v7 }
  0xf8   :  { %2515 = vmatpush.bf16.msrb.mxu1 %v8059_v39  ;;  %v8068_v39 = vld [vmem:[%s10380_s3 + $0x340] sm:$0xff] }
  0xf9   :  { %2507 = vmatpush.bf16.msra.mxu3 %v8045_v38 }
  0xfa   :  { %v343_v10 = vpop.f32.mrf.mxu0 }
  0xfc   :  { %v5909_v13 = vld [vmem:[#allocation2 + $0x18] sm:$0xf]  ;;  %v7942_v35 = vld [vmem:[#allocation2 + $0x1c] sm:$0xf]  ;;  %2516 = vmatpush.bf16.msrb.mxu1 %v8058_v42 }
  0xfd   :  { %v5910_v15 = vor.u32 %v7954_v14, %v5909_v13  ;;  %2508 = vmatpush.bf16.msra.mxu3 %v8044_v41  ;;  %v8060_v13 = vld [vmem:[%s10380_s3 + $0x300] sm:$0xff]  ;;  %v8074_v14 = vld [vmem:[%s10380_s3 + $0x370] sm:$0xff] }
  0xff   :  { %2453 = vmatmul.bf16.vlgmr.msra.gmra.mxu2 %v5910_v15 }
 0x100   :  { %2517 = vmatpush.bf16.msrb.mxu1 %v8057_v46  ;;  %2529 = vmatpush.bf16.msra.mxu2 %v8067_v47 }
 0x102   :  { %v346_v19 = vpop.f32.mrf.mxu0 }
 0x104   :  { %2518 = vmatpush.bf16.msrb.mxu1 %v8056_v52  ;;  %2530 = vmatpush.bf16.msra.mxu2 %v8066_v53 }
 0x105   :  { %5842 = vmatmul.msk.bf16.gmra.mxu0 %vm221_vm0, %v7930_v18 }
 0x108   :  { %2519 = vmatpush.bf16.msrb.mxu1 %v8055_v55  ;;  %2531 = vmatpush.bf16.msra.mxu2 %v8065_v56  ;;  %v8099_v55 = vld [vmem:[%s10380_s3 + $0x438] sm:$0xff]  ;;  %v7936_v56 = vld [vmem:[%s10378_s1 + $0xb0] sm:$0xff] }
 0x10a   :  { %v348_v24 = vpop.f32.mrf.mxu0 }
 0x10b   :  { %v8485_v27 = vpack.c.bf16 %v348_v24, %v343_v10  ;;  %v8061_v10 = vld [vmem:[%s10380_s3 + $0x308] sm:$0xff]  ;;  %v8082_v24 = vld [vmem:[%s10380_s3 + $0x3b0] sm:$0xff] }
 0x10c   :  { %2520 = vmatpush.bf16.msrb.mxu1 %v8054_v58  ;;  %2532 = vmatpush.bf16.msra.mxu2 %v8064_v59  ;;  %v8088_v59 = vld [vmem:[%s10380_s3 + $0x3e0] sm:$0xff] }
 0x10d   :  { %8693 = vst [vmem:[#allocation2 + $0x80] sm:$0xff] %v8485_v27   ;;  %v8071_v27 = vld [vmem:[%s10380_s3 + $0x358] sm:$0xff] }
 0x110   :  { %2521 = vmatpush.bf16.msrb.mxu1 %v8053_v62  ;;  %2533 = vmatpush.bf16.msra.mxu2 %v8063_v63  ;;  %v8087_v63 = vld [vmem:[%s10380_s3 + $0x3d8] sm:$0xff] }
 0x112   :  { %v351_v31 = vpop.f32.mrf.mxu0 }
 0x113   :  { %v8490_v34 = vpack.c.bf16 %v351_v31, %v346_v19  ;;  %v8073_v19 = vld [vmem:[%s10380_s3 + $0x368] sm:$0xff]  ;;  %v8070_v31 = vld [vmem:[%s10380_s3 + $0x350] sm:$0xff] }
 0x114   :  { %v5911_v36 = vld [vmem:[#allocation2 + $0x7c] sm:$0xf0]  ;;  %v7955_v44 = vld [vmem:[#allocation2 + $0x80] sm:$0xf0]  ;;  %2522 = vmatpush.bf16.msrb.mxu1 %v8052_v2  ;;  %2534 = vmatpush.bf16.msra.mxu2 %v8062_v3  ;;  %v8086_v3 = vld [vmem:[%s10380_s3 + $0x3d0] sm:$0xff] }
 0x115   :  { %8694 = vst [vmem:[#allocation2 + $0x20] sm:$0xff] %v8490_v34   ;;  %5843 = vmatmul.msk.bf16.gmra.mxu0 %vm221_vm0, %v7931_v30  ;;  %v5914_v37 = vor.u32 %v7942_v35, %v5911_v36  ;;  %v8079_v34 = vld [vmem:[%s10380_s3 + $0x398] sm:$0xff]  ;;  %v7935_v35 = vld [vmem:[%s10378_s1 + $0xa8] sm:$0xff] }
 0x117   :  { %2467 = vmatmul.bf16.vlgmr.msrb.gmra.mxu3 %v5914_v37 }
 0x118   :  { %2535 = vmatpush.bf16.msra.mxu2 %v8061_v10  ;;  %2543 = vmatpush.bf16.msrb.mxu3 %v8075_v11  ;;  %v8084_v11 = vld [vmem:[%s10380_s3 + $0x3c0] sm:$0xff] }
 0x11a   :  { %v353_v40 = vpop.f32.mrf.mxu0 }
 0x11c   :  { %v5917_v43 = vld [vmem:[#allocation2 + $0x20] sm:$0xf]  ;;  %v7943_v6 = vld [vmem:[#allocation2 + $0x24] sm:$0xf]  ;;  %2536 = vmatpush.bf16.msra.mxu2 %v8060_v13  ;;  %2544 = vmatpush.bf16.msrb.mxu3 %v8074_v14 }
 0x11d   :  { %v5918_v45 = vor.u32 %v7955_v44, %v5917_v43  ;;  %v8077_v44 = vld [vmem:[%s10380_s3 + $0x388] sm:$0xff] }
 0x11f   :  { %2481 = vmatmul.bf16.vlgmr.msra.gmra.mxu1 %v5918_v45  ;;  %v8091_v45 = vld [vmem:[%s10380_s3 + $0x3f8] sm:$0xff] }
 0x120   :  { %2545 = vmatpush.bf16.msrb.mxu3 %v8073_v19  ;;  %2557 = vmatpush.bf16.msra.mxu1 %v8083_v20  ;;  %v8093_v19 = vld [vmem:[%s10380_s3 + $0x408] sm:$0xff]  ;;  %v8107_v20 = vld [vmem:[%s10380_s3 + $0x478] sm:$0xff] }
 0x122   :  { %v356_v50 = vpop.f32.mrf.mxu0  ;;  %v2370_v51 = vpop.f32.mrf.mxu2 }
 0x123   :  { %v2371_v54 = vadd.f32 %v2370_v51, %v1030_v48 }
 0x124   :  { %2546 = vmatpush.bf16.msrb.mxu3 %v8072_v23  ;;  %2558 = vmatpush.bf16.msra.mxu1 %v8082_v24  ;;  %v8092_v23 = vld [vmem:[%s10380_s3 + $0x400] sm:$0xff]  ;;  %v8106_v24 = vld [vmem:[%s10380_s3 + $0x470] sm:$0xff] }
 0x125   :  { %5844 = vmatmul.msk.bf16.gmra.mxu0 %vm221_vm0, %v7932_v49  ;;  %v8076_v49 = vld [vmem:[%s10380_s3 + $0x380] sm:$0xff] }
 0x128   :  { %2547 = vmatpush.bf16.msrb.mxu3 %v8071_v27  ;;  %2559 = vmatpush.bf16.msra.mxu1 %v8081_v28  ;;  %v8105_v28 = vld [vmem:[%s10380_s3 + $0x468] sm:$0xff] }
 0x12a   :  { %v358_v57 = vpop.f32.mrf.mxu0  ;;  %v9274_v36 = vpop.f32.mrf.mxu2 }
 0x12b   :  { %v8495_v60 = vpack.c.bf16 %v358_v57, %v353_v40  ;;  %v8078_v40 = vld [vmem:[%s10380_s3 + $0x390] sm:$0xff] }
 0x12c   :  { %2548 = vmatpush.bf16.msrb.mxu3 %v8070_v31  ;;  %2560 = vmatpush.bf16.msra.mxu1 %v8080_v32 }
 0x12d   :  { %8695 = vst [vmem:[#allocation2 + $0x88] sm:$0xff] %v8495_v60   ;;  %v8098_v60 = vld [vmem:[%s10380_s3 + $0x430] sm:$0xff] }
 0x130   :  { %2549 = vmatpush.bf16.msrb.mxu3 %v8069_v33  ;;  %2561 = vmatpush.bf16.msra.mxu1 %v8079_v34  ;;  %v8104_v34 = vld [vmem:[%s10380_s3 + $0x460] sm:$0xff] }
 0x132   :  { %v361_v1 = vpop.f32.mrf.mxu0 }
 0x133   :  { %v8500_v4 = vpack.c.bf16 %v361_v1, %v356_v50  ;;  %v8090_v50 = vld [vmem:[%s10380_s3 + $0x3f0] sm:$0xff] }
 0x134   :  { %v2384_v5 = vpop.f32.mrf.mxu1  ;;  %v5919_v7 = vld [vmem:[#allocation2 + $0x84] sm:$0xf0]  ;;  %v7956_v17 = vld [vmem:[#allocation2 + $0x88] sm:$0xf0]  ;;  %2550 = vmatpush.bf16.msrb.mxu3 %v8068_v39  ;;  %2562 = vmatpush.bf16.msra.mxu1 %v8078_v40 }
 0x135   :  { %8696 = vst [vmem:[#allocation2 + $0x28] sm:$0xff] %v8500_v4   ;;  %v2385_v8 = vadd.f32 %v2384_v5, %v2371_v54  ;;  %5845 = vmatmul.msk.bf16.gmra.mxu0 %vm221_vm0, %v7933_v0  ;;  %v5922_v9 = vor.u32 %v7943_v6, %v5919_v7  ;;  %v8089_v54 = vld [vmem:[%s10380_s3 + $0x3e8] sm:$0xff]  ;;  %v8096_v4 = vld [vmem:[%s10380_s3 + $0x420] sm:$0xff]  ;;  %v8095_v7 = vld [vmem:[%s10380_s3 + $0x418] sm:$0xff] }
 0x136   :  { %v8097_v0 = vld [vmem:[%s10380_s3 + $0x428] sm:$0xff] }
 0x137   :  { %2495 = vmatmul.bf16.vlgmr.msrb.gmra.mxu2 %v5922_v9  ;;  %v8085_v6 = vld [vmem:[%s10380_s3 + $0x3c8] sm:$0xff] }
 0x138   :  { %2571 = vmatpush.bf16.msrb.mxu2 %v8091_v45  ;;  %2563 = vmatpush.bf16.msra.mxu1 %v8077_v44  ;;  %v8111_v44 = vld [vmem:[%s10380_s3 + $0x498] sm:$0xff] }
 0x13a   :  { %v363_v12 = vpop.f32.mrf.mxu0 }
 0x13c   :  { %v9235_v15 = vpop.f32.mrf.mxu1  ;;  %v5925_v16 = vld [vmem:[#allocation2 + $0x28] sm:$0xf]  ;;  %v7944_v41 = vld [vmem:[#allocation2 + $0x2c] sm:$0xf]  ;;  %2572 = vmatpush.bf16.msrb.mxu2 %v8090_v50  ;;  %2564 = vmatpush.bf16.msra.mxu1 %v8076_v49 }
 0x13d   :  { %v5926_v18 = vor.u32 %v7956_v17, %v5925_v16 }
 0x13f   :  { %2509 = vmatmul.bf16.vlgmr.msra.gmra.mxu3 %v5926_v18 }
 0x140   :  { %2573 = vmatpush.bf16.msrb.mxu2 %v8089_v54  ;;  %2585 = vmatpush.bf16.msra.mxu3 %v8099_v55  ;;  %v8108_v55 = vld [vmem:[%s10380_s3 + $0x480] sm:$0xff] }
 0x142   :  { %v366_v22 = vpop.f32.mrf.mxu0 }
 0x144   :  { %v2398_v25 = vpop.f32.mrf.mxu1  ;;  %2574 = vmatpush.bf16.msrb.mxu2 %v8088_v59  ;;  %2586 = vmatpush.bf16.msra.mxu3 %v8098_v60  ;;  %v8121_v60 = vld [vmem:[%s10380_s3 + $0x4e8] sm:$0xff] }
 0x145   :  { %v2399_v26 = vadd.f32 %v2398_v25, %v2385_v8  ;;  %5846 = vmatmul.msk.bf16.gmra.mxu0 %vm221_vm0, %v7934_v21  ;;  %v7937_v8 = vld [vmem:[%s10378_s1 + $0xb8] sm:$0xff] }
 0x148   :  { %2575 = vmatpush.bf16.msrb.mxu2 %v8087_v63  ;;  %2587 = vmatpush.bf16.msra.mxu3 %v8097_v0  ;;  %v8120_v0 = vld [vmem:[%s10380_s3 + $0x4e0] sm:$0xff] }
 0x14a   :  { %v368_v29 = vpop.f32.mrf.mxu0 }
 0x14b   :  { %v8505_v30 = vpack.c.bf16 %v368_v29, %v363_v12  ;;  %v8094_v12 = vld [vmem:[%s10380_s3 + $0x410] sm:$0xff]  ;;  %v8115_v29 = vld [vmem:[%s10380_s3 + $0x4b8] sm:$0xff] }
 0x14c   :  { %v9323_v5 = vpop.f32.mrf.mxu1  ;;  %2576 = vmatpush.bf16.msrb.mxu2 %v8086_v3  ;;  %2588 = vmatpush.bf16.msra.mxu3 %v8096_v4  ;;  %v8129_v3 = vld [vmem:[%s10380_s3 + $0x528] sm:$0xff] }
 0x14d   :  { %8697 = vst [vmem:[#allocation2 + $0x90] sm:$0xff] %v8505_v30   ;;  %v7938_v30 = vld [vmem:[%s10378_s1 + $0xc0] sm:$0xff] }
 0x150   :  { %2577 = vmatpush.bf16.msrb.mxu2 %v8085_v6  ;;  %2589 = vmatpush.bf16.msra.mxu3 %v8095_v7  ;;  %v8118_v7 = vld [vmem:[%s10380_s3 + $0x4d0] sm:$0xff] }
 0x152   :  { %v371_v37 = vpop.f32.mrf.mxu0 }
 0x153   :  { %v8510_v38 = vpack.c.bf16 %v371_v37, %v366_v22  ;;  %v8103_v37 = vld [vmem:[%s10380_s3 + $0x458] sm:$0xff] }
 0x154   :  { %v5927_v42 = vld [vmem:[#allocation2 + $0x8c] sm:$0xf0]  ;;  %v7957_v52 = vld [vmem:[#allocation2 + $0x90] sm:$0xf0]  ;;  %2578 = vmatpush.bf16.msrb.mxu2 %v8084_v11  ;;  %2590 = vmatpush.bf16.msra.mxu3 %v8094_v12 }
 0x155   :  { %8698 = vst [vmem:[#allocation2 + $0x30] sm:$0xff] %v8510_v38   ;;  %5847 = vmatmul.msk.bf16.gmra.mxu0 %vm221_vm0, %v7935_v35  ;;  %v5930_v43 = vor.u32 %v7944_v41, %v5927_v42  ;;  %v8114_v35 = vld [vmem:[%s10380_s3 + $0x4b0] sm:$0xff]  ;;  %v8113_v38 = vld [vmem:[%s10380_s3 + $0x4a8] sm:$0xff]  ;;  %v8112_v42 = vld [vmem:[%s10380_s3 + $0x4a0] sm:$0xff] }
 0x156   :  { %v8102_v41 = vld [vmem:[%s10380_s3 + $0x450] sm:$0xff] }
 0x157   :  { %2523 = vmatmul.bf16.vlgmr.msrb.gmra.mxu1 %v5930_v43  ;;  %v8101_v43 = vld [vmem:[%s10380_s3 + $0x448] sm:$0xff] }
 0x158   :  { %2599 = vmatpush.bf16.msrb.mxu1 %v8107_v20  ;;  %2591 = vmatpush.bf16.msra.mxu3 %v8093_v19  ;;  %v8125_v19 = vld [vmem:[%s10380_s3 + $0x508] sm:$0xff]  ;;  %v8139_v20 = vld [vmem:[%s10380_s3 + $0x578] sm:$0xff] }
 0x15a   :  { %v373_v46 = vpop.f32.mrf.mxu0  ;;  %v2412_v47 = vpop.f32.mrf.mxu2 }
 0x15b   :  { %v2413_v48 = vadd.f32 %v2412_v47, %v2399_v26  ;;  %v8100_v47 = vld [vmem:[%s10380_s3 + $0x440] sm:$0xff] }
 0x15c   :  { %v5933_v51 = vld [vmem:[#allocation2 + $0x30] sm:$0xf]  ;;  %v7945_v14 = vld [vmem:[#allocation2 + $0x34] sm:$0xf]  ;;  %2600 = vmatpush.bf16.msrb.mxu1 %v8106_v24  ;;  %2592 = vmatpush.bf16.msra.mxu3 %v8092_v23  ;;  %v8124_v23 = vld [vmem:[%s10380_s3 + $0x500] sm:$0xff] }
 0x15d   :  { %v5934_v53 = vor.u32 %v7957_v52, %v5933_v51  ;;  %v8109_v52 = vld [vmem:[%s10380_s3 + $0x488] sm:$0xff]  ;;  %v8138_v24 = vld [vmem:[%s10380_s3 + $0x570] sm:$0xff] }
 0x15f   :  { %2537 = vmatmul.bf16.vlgmr.msra.gmra.mxu2 %v5934_v53  ;;  %v8123_v53 = vld [vmem:[%s10380_s3 + $0x4f8] sm:$0xff] }
 0x160   :  { %2601 = vmatpush.bf16.msrb.mxu1 %v8105_v28  ;;  %2613 = vmatpush.bf16.msra.mxu2 %v8115_v29  ;;  %v8137_v28 = vld [vmem:[%s10380_s3 + $0x568] sm:$0xff]  ;;  %v8147_v29 = vld [vmem:[%s10380_s3 + $0x5b8] sm:$0xff] }
 0x162   :  { %v376_v57 = vpop.f32.mrf.mxu0  ;;  %v2426_v58 = vpop.f32.mrf.mxu3 }
 0x163   :  { %v2427_v62 = vadd.f32 %v2426_v58, %v2413_v48  ;;  %v9347_v21 = vpop.f32.mrf.mxu2  ;;  %v8110_v48 = vld [vmem:[%s10380_s3 + $0x490] sm:$0xff] }
 0x164   :  { %2602 = vmatpush.bf16.msrb.mxu1 %v8104_v34  ;;  %2614 = vmatpush.bf16.msra.mxu2 %v8114_v35  ;;  %v8135_v34 = vld [vmem:[%s10380_s3 + $0x558] sm:$0xff]  ;;  %v8145_v35 = vld [vmem:[%s10380_s3 + $0x5a8] sm:$0xff] }
 0x165   :  { %5848 = vmatmul.msk.bf16.gmra.mxu0 %vm221_vm0, %v7936_v56  ;;  %v8122_v56 = vld [vmem:[%s10380_s3 + $0x4f0] sm:$0xff] }
 0x168   :  { %2603 = vmatpush.bf16.msrb.mxu1 %v8103_v37  ;;  %2615 = vmatpush.bf16.msra.mxu2 %v8113_v38 }
 0x16a   :  { %v378_v1 = vpop.f32.mrf.mxu0 }
 0x16b   :  { %v8515_v2 = vpack.c.bf16 %v378_v1, %v373_v46  ;;  %v8130_v1 = vld [vmem:[%s10380_s3 + $0x530] sm:$0xff] }
 0x16c   :  { %2604 = vmatpush.bf16.msrb.mxu1 %v8102_v41  ;;  %2616 = vmatpush.bf16.msra.mxu2 %v8112_v42  ;;  %v8133_v41 = vld [vmem:[%s10380_s3 + $0x548] sm:$0xff]  ;;  %v8143_v42 = vld [vmem:[%s10380_s3 + $0x598] sm:$0xff] }
 0x16d   :  { %8699 = vst [vmem:[#allocation2 + $0x98] sm:$0xff] %v8515_v2   ;;  %v8119_v2 = vld [vmem:[%s10380_s3 + $0x4d8] sm:$0xff] }
 0x170   :  { %2605 = vmatpush.bf16.msrb.mxu1 %v8101_v43  ;;  %2617 = vmatpush.bf16.msra.mxu2 %v8111_v44 }
 0x172   :  { %v381_v9 = vpop.f32.mrf.mxu0 }
 0x173   :  { %v8520_v10 = vpack.c.bf16 %v381_v9, %v376_v57  ;;  %v8117_v9 = vld [vmem:[%s10380_s3 + $0x4c8] sm:$0xff] }
 0x174   :  { %v2440_v13 = vpop.f32.mrf.mxu1  ;;  %v5935_v16 = vld [vmem:[#allocation2 + $0x94] sm:$0xf0]  ;;  %v7958_v26 = vld [vmem:[#allocation2 + $0x98] sm:$0xf0]  ;;  %2606 = vmatpush.bf16.msrb.mxu1 %v8100_v47  ;;  %2618 = vmatpush.bf16.msra.mxu2 %v8110_v48 }
 0x175   :  { %8700 = vst [vmem:[#allocation2 + $0x38] sm:$0xff] %v8520_v10   ;;  %v2441_v17 = vadd.f32 %v2440_v13, %v2427_v62  ;;  %5849 = vmatmul.msk.bf16.gmra.mxu0 %vm221_vm0, %v7937_v8  ;;  %v5938_v18 = vor.u32 %v7945_v14, %v5935_v16  ;;  %v8131_v62 = vld [vmem:[%s10380_s3 + $0x538] sm:$0xff]  ;;  %v8128_v8 = vld [vmem:[%s10380_s3 + $0x520] sm:$0xff]  ;;  %v8126_v14 = vld [vmem:[%s10380_s3 + $0x510] sm:$0xff] }
 0x176   :  { %v8127_v10 = vld [vmem:[%s10380_s3 + $0x518] sm:$0xff]  ;;  %v8116_v13 = vld [vmem:[%s10380_s3 + $0x4c0] sm:$0xff] }
 0x177   :  { %2551 = vmatmul.bf16.vlgmr.msrb.gmra.mxu3 %v5938_v18 }
 0x178   :  { %2627 = vmatpush.bf16.msrb.mxu3 %v8123_v53  ;;  %2619 = vmatpush.bf16.msra.mxu2 %v8109_v52  ;;  %v8163_v52 = vld [vmem:[%s10380_s3 + $0x638] sm:$0xff] }
 0x17a   :  { %v383_v22 = vpop.f32.mrf.mxu0 }
 0x17c   :  { %v5941_v25 = vld [vmem:[#allocation2 + $0x38] sm:$0xf]  ;;  %v7946_v49 = vld [vmem:[#allocation2 + $0x3c] sm:$0xf]  ;;  %2628 = vmatpush.bf16.msrb.mxu3 %v8122_v56  ;;  %2620 = vmatpush.bf16.msra.mxu2 %v8108_v55  ;;  %v8154_v55 = vld [vmem:[%s10380_s3 + $0x5f0] sm:$0xff] }
 0x17d   :  { %v5942_v27 = vor.u32 %v7958_v26, %v5941_v25  ;;  %v8162_v56 = vld [vmem:[%s10380_s3 + $0x630] sm:$0xff] }
 0x17f   :  { %2565 = vmatmul.bf16.vlgmr.msra.gmra.mxu1 %v5942_v27 }
 0x180   :  { %2629 = vmatpush.bf16.msrb.mxu3 %v8121_v60  ;;  %2641 = vmatpush.bf16.msra.mxu1 %v8131_v62  ;;  %v8153_v60 = vld [vmem:[%s10380_s3 + $0x5e8] sm:$0xff] }
 0x181   :  { %v8161_v62 = vld [vmem:[%s10380_s3 + $0x628] sm:$0xff] }
 0x182   :  { %v386_v31 = vpop.f32.mrf.mxu0  ;;  %v2454_v32 = vpop.f32.mrf.mxu2 }
 0x183   :  { %v9364_v33 = vadd.f32 %v2454_v32, %v2441_v17  ;;  %v8146_v32 = vld [vmem:[%s10380_s3 + $0x5b0] sm:$0xff] }
 0x184   :  { %2630 = vmatpush.bf16.msrb.mxu3 %v8120_v0  ;;  %2642 = vmatpush.bf16.msra.mxu1 %v8130_v1  ;;  %v8152_v0 = vld [vmem:[%s10380_s3 + $0x5e0] sm:$0xff] }
 0x185   :  { %5850 = vmatmul.msk.bf16.gmra.mxu0 %vm221_vm0, %v7938_v30  ;;  %v8160_v1 = vld [vmem:[%s10380_s3 + $0x620] sm:$0xff] }
 0x188   :  { %2631 = vmatpush.bf16.msrb.mxu3 %v8119_v2  ;;  %2643 = vmatpush.bf16.msra.mxu1 %v8129_v3  ;;  %v8151_v2 = vld [vmem:[%s10380_s3 + $0x5d8] sm:$0xff] }
 0x189   :  { %v8159_v3 = vld [vmem:[%s10380_s3 + $0x618] sm:$0xff] }
 0x18a   :  { %v388_v39 = vpop.f32.mrf.mxu0 }
 0x18b   :  { %v8525_v40 = vpack.c.bf16 %v388_v39, %v383_v22  ;;  %v8134_v39 = vld [vmem:[%s10380_s3 + $0x550] sm:$0xff] }
 0x18c   :  { %2632 = vmatpush.bf16.msrb.mxu3 %v8118_v7  ;;  %2644 = vmatpush.bf16.msra.mxu1 %v8128_v8  ;;  %v8150_v7 = vld [vmem:[%s10380_s3 + $0x5d0] sm:$0xff] }
 0x18d   :  { %8701 = vst [vmem:[#allocation2 + $0xa0] sm:$0xff] %v8525_v40   ;;  %v8144_v40 = vld [vmem:[%s10380_s3 + $0x5a0] sm:$0xff]  ;;  %v8158_v8 = vld [vmem:[%s10380_s3 + $0x610] sm:$0xff] }
 0x190   :  { %2633 = vmatpush.bf16.msrb.mxu3 %v8117_v9  ;;  %2645 = vmatpush.bf16.msra.mxu1 %v8127_v10  ;;  %v8149_v9 = vld [vmem:[%s10380_s3 + $0x5c8] sm:$0xff] }
 0x191   :  { %v8157_v10 = vld [vmem:[%s10380_s3 + $0x608] sm:$0xff] }
 0x192   :  { %v391_v45 = vpop.f32.mrf.mxu0 }
 0x193   :  { %v8530_v46 = vpack.c.bf16 %v391_v45, %v386_v31  ;;  %v8136_v31 = vld [vmem:[%s10380_s3 + $0x560] sm:$0xff] }
 0x194   :  { %v5943_v50 = vld [vmem:[#allocation2 + $0x9c] sm:$0xf0]  ;;  %v7959_v58 = vld [vmem:[#allocation2 + $0xa0] sm:$0xf0]  ;;  %2634 = vmatpush.bf16.msrb.mxu3 %v8116_v13  ;;  %2646 = vmatpush.bf16.msra.mxu1 %v8126_v14 }
 0x195   :  { %8702 = vst [vmem:[#allocation2 + $0x40] sm:$0xff] %v8530_v46   ;;  %v5946_v51 = vor.u32 %v7946_v49, %v5943_v50  ;;  %v8132_v45 = vld [vmem:[%s10380_s3 + $0x540] sm:$0xff]  ;;  %v8142_v46 = vld [vmem:[%s10380_s3 + $0x590] sm:$0xff]  ;;  %v8141_v50 = vld [vmem:[%s10380_s3 + $0x588] sm:$0xff] }
 0x196   :  { %v8156_v13 = vld [vmem:[%s10380_s3 + $0x600] sm:$0xff] }
 0x197   :  { %2579 = vmatmul.bf16.vlgmr.msrb.gmra.mxu2 %v5946_v51  ;;  %v8155_v51 = vld [vmem:[%s10380_s3 + $0x5f8] sm:$0xff] }
 0x198   :  { %2647 = vmatpush.bf16.msra.mxu1 %v8125_v19  ;;  %2655 = vmatpush.bf16.msrb.mxu2 %v8139_v20 }
 0x19a   :  { %v393_v54 = vpop.f32.mrf.mxu0 }
 0x19c   :  { %v5949_v57 = vld [vmem:[#allocation2 + $0x40] sm:$0xf]  ;;  %v7947_v16 = vld [vmem:[#allocation2 + $0x44] sm:$0xf]  ;;  %2648 = vmatpush.bf16.msra.mxu1 %v8124_v23  ;;  %2656 = vmatpush.bf16.msrb.mxu2 %v8138_v24 }
 0x19d   :  { %v5950_v59 = vor.u32 %v7959_v58, %v5949_v57 }
 0x19f   :  { %2593 = vmatmul.bf16.vlgmr.msra.gmra.mxu3 %v5950_v59 }
 0x1a0   :  { %2657 = vmatpush.bf16.msrb.mxu2 %v8137_v28  ;;  %2669 = vmatpush.bf16.msra.mxu3 %v8147_v29 }
 0x1a2   :  { %v396_v63 = vpop.f32.mrf.mxu0 }
 0x1a4   :  { %2658 = vmatpush.bf16.msrb.mxu2 %v8136_v31  ;;  %2670 = vmatpush.bf16.msra.mxu3 %v8146_v32 }
 0x1a8   :  { %2659 = vmatpush.bf16.msrb.mxu2 %v8135_v34  ;;  %2671 = vmatpush.bf16.msra.mxu3 %v8145_v35  ;;  %v2428_v35 = vpop.f32.mrf.mxu3 }
 0x1aa   :  { %v398_v4 = vpop.f32.mrf.mxu0 }
 0x1ab   :  { %v8535_v6 = vpack.c.bf16 %v398_v4, %v393_v54  ;;  %v8140_v54 = vld [vmem:[%s10380_s3 + $0x580] sm:$0xff] }
 0x1ac   :  { %2660 = vmatpush.bf16.msrb.mxu2 %v8134_v39  ;;  %2672 = vmatpush.bf16.msra.mxu3 %v8144_v40 }
 0x1ad   :  { %8703 = vst [vmem:[#allocation2 + $0xa8] sm:$0xff] %v8535_v6  }
 0x1b0   :  { %2661 = vmatpush.bf16.msrb.mxu2 %v8133_v41  ;;  %2673 = vmatpush.bf16.msra.mxu3 %v8143_v42  ;;  %v2468_v39 = vpop.f32.mrf.mxu3 }
 0x1b2   :  { %v401_v11 = vpop.f32.mrf.mxu0 }
 0x1b3   :  { %v8540_v12 = vpack.c.bf16 %v401_v11, %v396_v63  ;;  %v8148_v11 = vld [vmem:[%s10380_s3 + $0x5c0] sm:$0xff] }
 0x1b4   :  { %v5951_v17 = vld [vmem:[#allocation2 + $0xa4] sm:$0xf0]  ;;  %v7960_v26 = vld [vmem:[#allocation2 + $0xa8] sm:$0xf0]  ;;  %2662 = vmatpush.bf16.msrb.mxu2 %v8132_v45  ;;  %2674 = vmatpush.bf16.msra.mxu3 %v8142_v46 }
 0x1b5   :  { %8704 = vst [vmem:[#allocation2 + $0x48] sm:$0xff] %v8540_v12   ;;  %v5954_v18 = vor.u32 %v7947_v16, %v5951_v17 }
 0x1b7   :  { %2607 = vmatmul.bf16.vlgmr.msrb.gmra.mxu1 %v5954_v18 }
 0x1b8   :  { %2675 = vmatpush.bf16.msra.mxu3 %v8141_v50  ;;  %2683 = vmatpush.bf16.msrb.mxu1 %v8155_v51  ;;  %v2470_v42 = vpop.f32.mrf.mxu3 }
 0x1ba   :  { %v403_v22 = vpop.f32.mrf.mxu0 }
 0x1bc   :  { %v5957_v25 = vld [vmem:[#allocation2 + $0x48] sm:$0xf]  ;;  %v7948_v47 = vld [vmem:[#allocation2 + $0x4c] sm:$0xf]  ;;  %2676 = vmatpush.bf16.msra.mxu3 %v8140_v54  ;;  %2684 = vmatpush.bf16.msrb.mxu1 %v8154_v55 }
 0x1bd   :  { %v5958_v27 = vor.u32 %v7960_v26, %v5957_v25 }
 0x1bf   :  { %2621 = vmatmul.bf16.vlgmr.msra.gmra.mxu2 %v5958_v27 }
 0x1c0   :  { %2697 = vmatpush.bf16.msra.mxu2 %v8163_v52  ;;  %2685 = vmatpush.bf16.msrb.mxu1 %v8153_v60 }
 0x1c2   :  { %v406_v30 = vpop.f32.mrf.mxu0  ;;  %v2510_v45 = vpop.f32.mrf.mxu3 }
 0x1c4   :  { %2698 = vmatpush.bf16.msra.mxu2 %v8162_v56  ;;  %2686 = vmatpush.bf16.msrb.mxu1 %v8152_v0  ;;  %v2373_v56 = vadd.f32 %v9274_v36, %v9205_v61 }
 0x1c8   :  { %2699 = vmatpush.bf16.msra.mxu2 %v8161_v62  ;;  %2687 = vmatpush.bf16.msrb.mxu1 %v8151_v2 }
 0x1ca   :  { %v408_v37 = vpop.f32.mrf.mxu0 }
 0x1cb   :  { %v8545_v38 = vpack.c.bf16 %v408_v37, %v403_v22  ;;  %v2442_v37 = vpop.f32.mrf.mxu1 }
 0x1cc   :  { %2700 = vmatpush.bf16.msra.mxu2 %v8160_v1  ;;  %2688 = vmatpush.bf16.msrb.mxu1 %v8150_v7 }
 0x1cd   :  { %8705 = vst [vmem:[#allocation2 + $0xb0] sm:$0xff] %v8545_v38   ;;  %v2456_v38 = vpop.f32.mrf.mxu2 }
 0x1d0   :  { %2701 = vmatpush.bf16.msra.mxu2 %v8159_v3  ;;  %2689 = vmatpush.bf16.msrb.mxu1 %v8149_v9 }
 0x1d2   :  { %v411_v43 = vpop.f32.mrf.mxu0 }
 0x1d3   :  { %v8550_v44 = vpack.c.bf16 %v411_v43, %v406_v30  ;;  %v2482_v40 = vpop.f32.mrf.mxu1 }
 0x1d4   :  { %v5959_v48 = vld [vmem:[#allocation2 + $0xac] sm:$0xf0]  ;;  %v7961_v58 = vld [vmem:[#allocation2 + $0xb0] sm:$0xf0]  ;;  %2702 = vmatpush.bf16.msra.mxu2 %v8158_v8  ;;  %2690 = vmatpush.bf16.msrb.mxu1 %v8148_v11 }
 0x1d5   :  { %8706 = vst [vmem:[#allocation2 + $0x50] sm:$0xff] %v8550_v44   ;;  %v5962_v49 = vor.u32 %v7948_v47, %v5959_v48  ;;  %v2496_v41 = vpop.f32.mrf.mxu2  ;;  %v2512_v48 = vpop.f32.mrf.mxu3 }
 0x1d7   :  { %2635 = vmatmul.bf16.vlgmr.msrb.gmra.mxu3 %v5962_v49 }
 0x1d8   :  { %2703 = vmatpush.bf16.msra.mxu2 %v8157_v10 }
 0x1da   :  { %v413_v53 = vpop.f32.mrf.mxu0 }
 0x1db   :  { %v2484_v43 = vpop.f32.mrf.mxu1 }
 0x1dc   :  { %v5965_v57 = vld [vmem:[#allocation2 + $0x50] sm:$0xf]  ;;  %v7949_v16 = vld [vmem:[#allocation2 + $0x54] sm:$0xf]  ;;  %2704 = vmatpush.bf16.msra.mxu2 %v8156_v13 }
 0x1dd   :  { %v5966_v59 = vor.u32 %v7961_v58, %v5965_v57  ;;  %v2498_v44 = vpop.f32.mrf.mxu2 }
 0x1df   :  { %2649 = vmatmul.bf16.vlgmr.msra.gmra.mxu1 %v5966_v59  ;;  %v2387_v59 = vadd.f32 %v9235_v15, %v2373_v56 }
 0x1e1   :  { %v2401_v62 = vadd.f32 %v9323_v5, %v2387_v59 }
 0x1e2   :  { %v416_v63 = vpop.f32.mrf.mxu0 }
 0x1e3   :  { %v2524_v46 = vpop.f32.mrf.mxu1 }
 0x1e5   :  { %v2538_v47 = vpop.f32.mrf.mxu2 }
 0x1ea   :  { %v418_v4 = vpop.f32.mrf.mxu0 }
 0x1eb   :  { %v8555_v6 = vpack.c.bf16 %v418_v4, %v413_v53  ;;  %v2526_v49 = vpop.f32.mrf.mxu1 }
 0x1ed   :  { %8707 = vst [vmem:[#allocation2 + $0xb8] sm:$0xff] %v8555_v6   ;;  %v2540_v50 = vpop.f32.mrf.mxu2  ;;  %v2469_v6 = vadd.f32 %v2468_v39, %v9364_v33 }
 0x1ef   :  { %v2483_v9 = vadd.f32 %v2482_v40, %v2469_v6 }
 0x1f1   :  { %v2497_v36 = vadd.f32 %v2496_v41, %v2483_v9  ;;  %v8752_v41 = vmov 16.0  }
 0x1f2   :  { %v421_v12 = vpop.f32.mrf.mxu0  ;;  %8734 = vrcp.f32 %v8752_v41 }
 0x1f3   :  { %v8560_v14 = vpack.c.bf16 %v421_v12, %v416_v63  ;;  %v2415_v63 = vadd.f32 %v9347_v21, %v2401_v62  ;;  %v2511_v12 = vadd.f32 %v2510_v45, %v2497_v36 }
 0x1f4   :  { %v5967_v17 = vld [vmem:[#allocation2 + $0xb4] sm:$0xf0]  ;;  %v7962_v22 = vld [vmem:[#allocation2 + $0xb8] sm:$0xf0] }
 0x1f5   :  { %8708 = vst [vmem:[#allocation2 + $0x58] sm:$0xff] %v8560_v14   ;;  %v5970_v18 = vor.u32 %v7949_v16, %v5967_v17  ;;  %v2429_v0 = vadd.f32 %v2428_v35, %v2415_v63  ;;  %v2525_v14 = vadd.f32 %v2524_v46, %v2511_v12 }
 0x1f7   :  { %2663 = vmatmul.bf16.vlgmr.msrb.gmra.mxu2 %v5970_v18  ;;  %v2443_v2 = vadd.f32 %v2442_v37, %v2429_v0  ;;  %v2539_v16 = vadd.f32 %v2538_v47, %v2525_v14  ;;  %v8427_v14 = vld [vmem:[%s10382_s6 + $0x28] sm:$0xff] }
 0x1f9   :  { %v2457_v4 = vadd.f32 %v2456_v38, %v2443_v2 }
 0x1fa   :  { %v423_v19 = vpop.f32.mrf.mxu0  ;;  %v2552_v51 = vpop.f32.mrf.mxu3 }
 0x1fb   :  { %v2471_v8 = vadd.f32 %v2470_v42, %v2457_v4  ;;  %v2553_v18 = vadd.f32 %v2552_v51, %v2539_v16 }
 0x1fc   :  { %v5973_v20 = vld [vmem:[#allocation2 + $0x58] sm:$0xf]  ;;  %v7950_v28 = vld [vmem:[#allocation2 + $0x5c] sm:$0xf]  ;;  %v2566_v52 = vpop.f32.mrf.mxu1 }
 0x1fd   :  { %v5974_v23 = vor.u32 %v7962_v22, %v5973_v20  ;;  %v2485_v61 = vadd.f32 %v2484_v43, %v2471_v8  ;;  %v2567_v33 = vadd.f32 %v2566_v52, %v2553_v18 }
 0x1ff   :  { %2677 = vmatmul.bf16.vlgmr.msra.gmra.mxu3 %v5974_v23  ;;  %v2499_v15 = vadd.f32 %v2498_v44, %v2485_v61  ;;  %v8429_v61 = vld [vmem:[%s10382_s6 + $0x38] sm:$0xff] }
 0x200   :  { %3747 = vmatpush.bf16.msra.mxu1 %v8429_v61  ;;  %v8237_v61 = vld [vmem:[%s10383_s5 + $0x78] sm:$0xff] }
 0x201   :  { %v2513_v5 = vadd.f32 %v2512_v48, %v2499_v15  ;;  %v9556_v48 = vld [vmem:[%s10381_s9] sm:$0xff]  ;;  %v8428_v15 = vld [vmem:[%s10382_s6 + $0x30] sm:$0xff] }
 0x202   :  { %v426_v24 = vpop.f32.mrf.mxu0  ;;  %v2554_v54 = vpop.f32.mrf.mxu3 }
 0x203   :  { %v527_v25 = vpack.c.bf16 %v426_v24, %v426_v24  ;;  %v2527_v21 = vadd.f32 %v2526_v49, %v2513_v5 }
 0x204   :  { %v2568_v55 = vpop.f32.mrf.mxu1  ;;  %3748 = vmatpush.bf16.msra.mxu1 %v8428_v15  ;;  %v8235_v15 = vld [vmem:[%s10383_s5 + $0x68] sm:$0xff] }
 0x205   :  { %529 = vst [vmem:[#allocation2 + $0x60] sm:$0xf] %v527_v25  ;;  %v2541_v17 = vadd.f32 %v2540_v50, %v2527_v21  ;;  %v8735_v50 = vpop.eup %8734 }
 0x206   :  { %vm2726_vm1 = vweird.f32 %v8735_v50 }
 0x207   :  { %v2555_v20 = vadd.f32 %v2554_v54, %v2541_v17  ;;  %v2711_v54 = vperm.slane %v9556_v48, 0  ;;  %v8426_v17 = vld [vmem:[%s10382_s6 + $0x20] sm:$0xff] }
 0x208   :  { %3749 = vmatpush.bf16.msra.mxu1 %v8427_v14  ;;  %v8244_v14 = vld [vmem:[%s10383_s5 + $0xb0] sm:$0xff] }
 0x209   :  { %v2569_v24 = vadd.f32 %v2568_v55, %v2555_v20  ;;  %v8425_v20 = vld [vmem:[%s10382_s6 + $0x18] sm:$0xff] }
 0x20a   :  { %v428_v26 = vpop.f32.mrf.mxu0 }
 0x20b   :  { %v8565_v27 = vpack.c.bf16 %v428_v26, %v423_v19 }
 0x20c   :  { %v5981_v30 = vld [vmem:[#allocation2 + $0x60] sm:$0xf]  ;;  %3750 = vmatpush.bf16.msra.mxu1 %v8426_v17 }
 0x20d   :  { %8709 = vst [vmem:[#allocation2 + $0xc0] sm:$0xff] %v8565_v27  }
 0x210   :  { %3751 = vmatpush.bf16.msra.mxu1 %v8425_v20 }
 0x214   :  { %v5975_v29 = vld [vmem:[#allocation2 + $0xbc] sm:$0xf0]  ;;  %v7963_v31 = vld [vmem:[#allocation2 + $0xc0] sm:$0xf0] }
 0x215   :  { %v5978_v32 = vor.u32 %v7950_v28, %v5975_v29  ;;  %v5982_v34 = vor.u32 %v7963_v31, %v5981_v30 }
 0x217   :  { %2691 = vmatmul.bf16.vlgmr.msrb.gmra.mxu1 %v5978_v32  ;;  %2705 = vmatmul.bf16.vlgmr.msra.gmra.mxu2 %v5982_v34 }
 0x21a   :  { %v2580_v53 = vpop.f32.mrf.mxu2 }
 0x21b   :  { %v2581_v25 = vadd.f32 %v2580_v53, %v2567_v33  ;;  %v8424_v33 = vld [vmem:[%s10382_s6 + $0x10] sm:$0xff] }
 0x21c   :  { %3752 = vmatpush.bf16.msra.mxu1 %v8424_v33  ;;  %v8269_v33 = vld [vmem:[%s10383_s5 + $0x178] sm:$0xff] }
 0x21d   :  { %5157 = vmatpush.bf16.msrb.mxu0 %v8269_v33 }
 0x222   :  { %v2582_v57 = vpop.f32.mrf.mxu2  ;;  %v2594_v58 = vpop.f32.mrf.mxu3 }
 0x223   :  { %v2583_v26 = vadd.f32 %v2582_v57, %v2569_v24  ;;  %v2595_v27 = vadd.f32 %v2594_v58, %v2581_v25  ;;  %v2722_v57 = vmul.f32 16.0, %v8735_v50  ;;  %v8423_v25 = vld [vmem:[%s10382_s6 + $0x8] sm:$0xff] }
 0x224   :  { %3753 = vmatpush.bf16.msra.mxu1 %v8423_v25 }
 0x225   :  { %v2723_v62 = vsub.f32 1.0, %v2722_v57  ;;  %v8173_v57 = vld [vmem:[%s10378_s1 + $0x8] sm:$0xff] }
 0x22a   :  { %v2596_v3 = vpop.f32.mrf.mxu3 }
 0x22b   :  { %v2597_v28 = vadd.f32 %v2596_v3, %v2583_v26 }
 0x234   :  { %v2608_v60 = vpop.f32.mrf.mxu1 }
 0x235   :  { %v2609_v29 = vadd.f32 %v2608_v60, %v2595_v27  ;;  %v8422_v27 = vld [vmem:[%s10382_s6] sm:$0xff] }
 0x236   :  { %3754 = vmatpush.bf16.msra.mxu1 %v8422_v27  ;;  %v8240_v27 = vld [vmem:[%s10383_s5 + $0x90] sm:$0xff] }
 0x23a   :  { %5101 = vmatpush.bf16.msrb.mxu1 %v8237_v61 }
 0x23c   :  { %v2610_v7 = vpop.f32.mrf.mxu1 }
 0x23d   :  { %v2611_v32 = vadd.f32 %v2610_v7, %v2597_v28 }
 0x242   :  { %v2622_v1 = vpop.f32.mrf.mxu2 }
 0x243   :  { %v2623_v34 = vadd.f32 %v2622_v1, %v2609_v29  ;;  %v2724_v1 = vmul.f32 %v8735_v50, %v2723_v62  ;;  %v8177_v62 = vld [vmem:[%s10378_s1 + $0x28] sm:$0xff] }
 0x245   :  { %v2725_v4 = vadd.f32 %v8735_v50, %v2724_v1  ;;  %v8228_v1 = vld [vmem:[%s10383_s5 + $0x30] sm:$0xff] }
 0x247   :  { %v9559_v8 = vsel %vm2726_vm1, %v8735_v50, %v2725_v4  ;;  %v8179_v4 = vld [vmem:[%s10378_s1 + $0x38] sm:$0xff] }
 0x24a   :  { %v2624_v10 = vpop.f32.mrf.mxu2 }
 0x24b   :  { %v2625_v37 = vadd.f32 %v2624_v10, %v2611_v32  ;;  %v2741_v32 = vperm.slane %v9556_v48, 1 }
 0x25a   :  { %v2636_v11 = vpop.f32.mrf.mxu3 }
 0x25b   :  { %v2637_v38 = vadd.f32 %v2636_v11, %v2623_v34 }
 0x25c   :  { %v2650_v13 = vpop.f32.mrf.mxu1 }
 0x25d   :  { %v2651_v40 = vadd.f32 %v2650_v13, %v2637_v38 }
 0x262   :  { %v2638_v22 = vpop.f32.mrf.mxu3 }
 0x263   :  { %v2639_v39 = vadd.f32 %v2638_v22, %v2625_v37 }
 0x264   :  { %v2652_v23 = vpop.f32.mrf.mxu1 }
 0x265   :  { %v2653_v43 = vadd.f32 %v2652_v23, %v2639_v39  ;;  %v2757_v39 = vperm.slane %v9556_v48, 2 }
 0x27a   :  { %v2664_v19 = vpop.f32.mrf.mxu2 }
 0x27b   :  { %v2665_v44 = vadd.f32 %v2664_v19, %v2651_v40 }
 0x282   :  { %v2666_v30 = vpop.f32.mrf.mxu2  ;;  %v2678_v31 = vpop.f32.mrf.mxu3 }
 0x283   :  { %v2667_v46 = vadd.f32 %v2666_v30, %v2653_v43  ;;  %v2679_v47 = vadd.f32 %v2678_v31, %v2665_v44 }
 0x28a   :  { %v2680_v45 = vpop.f32.mrf.mxu3 }
 0x28b   :  { %v2681_v51 = vadd.f32 %v2680_v45, %v2667_v46 }
 0x294   :  { %v2692_v35 = vpop.f32.mrf.mxu1 }
 0x295   :  { %v2693_v52 = vadd.f32 %v2692_v35, %v2679_v47 }
 0x29a   :  { %v2706_v42 = vpop.f32.mrf.mxu2 }
 0x29b   :  { %v2707_v53 = vadd.f32 %v2706_v42, %v2693_v52 }
 0x29c   :  { %v2694_v49 = vpop.f32.mrf.mxu1 }
 0x29d   :  { %v2695_v55 = vadd.f32 %v2694_v49, %v2681_v51  ;;  %v2712_v59 = vadd.f32 %v2711_v54, %v2707_v53 }
 0x2a2   :  { %v2708_v56 = vpop.f32.mrf.mxu2 }
 0x2a3   :  { %v2709_v58 = vadd.f32 %v2708_v56, %v2695_v55  ;;  %v8172_v56 = vld [vmem:[%s10378_s1] sm:$0xff] }
 0x2a5   :  { %v2713_v60 = vadd.f32 %v2711_v54, %v2709_v58  ;;  %v8174_v58 = vld [vmem:[%s10378_s1 + $0x10] sm:$0xff] }
 0x2a7   :  { %v2714_v63 = vadd.f32 %v2713_v60, %v2712_v59 }
 0x2a9   :  { %v2715_v0 = vrot.slane %v2714_v63, 4 }
 0x2ab   :  { %v2716_v2 = vadd.f32 %v2715_v0, %v2714_v63  ;;  %v8178_v63 = vld [vmem:[%s10378_s1 + $0x30] sm:$0xff]  ;;  %v8229_v0 = vld [vmem:[%s10383_s5 + $0x38] sm:$0xff] }
 0x2ac   :  { %5087 = vmatpush.bf16.msrb.mxu2 %v8229_v0  ;;  %v8254_v0 = vld [vmem:[%s10383_s5 + $0x100] sm:$0xff] }
 0x2ad   :  { %v2717_v3 = vrot.slane %v2716_v2, 2 }
 0x2af   :  { %v2718_v6 = vadd.f32 %v2717_v3, %v2716_v2  ;;  %v8227_v2 = vld [vmem:[%s10383_s5 + $0x28] sm:$0xff]  ;;  %v8226_v3 = vld [vmem:[%s10383_s5 + $0x20] sm:$0xff] }
 0x2b0   :  { %5088 = vmatpush.bf16.msrb.mxu2 %v8228_v1  ;;  %v8268_v1 = vld [vmem:[%s10383_s5 + $0x170] sm:$0xff] }
 0x2b1   :  { %v2719_v7 = vrot.slane %v2718_v6, 1  ;;  %5158 = vmatpush.bf16.msrb.mxu0 %v8268_v1 }
 0x2b3   :  { %v2720_v9 = vadd.f32 %v2719_v7, %v2718_v6  ;;  %v8225_v6 = vld [vmem:[%s10383_s5 + $0x18] sm:$0xff]  ;;  %v8224_v7 = vld [vmem:[%s10383_s5 + $0x10] sm:$0xff] }
 0x2b4   :  { %5089 = vmatpush.bf16.msrb.mxu2 %v8227_v2  ;;  %v8184_v2 = vld [vmem:[%s10378_s1 + $0x60] sm:$0xff] }
 0x2b5   :  { %v2728_v36 = vmul.f32 %v9559_v8, %v2720_v9  ;;  %v8223_v9 = vld [vmem:[%s10383_s5 + $0x8] sm:$0xff] }
 0x2b7   :  { %v2729_v10 = vsub.f32 %v2712_v59, %v2728_v36  ;;  %v2730_v11 = vsub.f32 %v2713_v60, %v2728_v36  ;;  %v8175_v59 = vld [vmem:[%s10378_s1 + $0x18] sm:$0xff]  ;;  %v8176_v60 = vld [vmem:[%s10378_s1 + $0x20] sm:$0xff] }
 0x2b8   :  { %5090 = vmatpush.bf16.msrb.mxu2 %v8226_v3  ;;  %v8222_v36 = vld [vmem:[%s10383_s5] sm:$0xff] }
 0x2b9   :  { %v2731_v12 = vmul.f32 %v2729_v10, %v2729_v10  ;;  %v2732_v13 = vmul.f32 %v2730_v11, %v2730_v11  ;;  %v2742_v37 = vmul.f32 %v2741_v32, %v2729_v10  ;;  %v2743_v38 = vmul.f32 %v2741_v32, %v2730_v11  ;;  %v8236_v10 = vld [vmem:[%s10383_s5 + $0x70] sm:$0xff]  ;;  %v8180_v11 = vld [vmem:[%s10378_s1 + $0x40] sm:$0xff] }
 0x2ba   :  { %5102 = vmatpush.bf16.msrb.mxu1 %v8236_v10  ;;  %v8238_v32 = vld [vmem:[%s10383_s5 + $0x80] sm:$0xff]  ;;  %v8276_v10 = vld [vmem:[%s10383_s5 + $0x1b0] sm:$0xff] }
 0x2bb   :  { %v2733_v5 = vadd.f32 %v2732_v13, %v2731_v12  ;;  %v8245_v12 = vld [vmem:[%s10383_s5 + $0xb8] sm:$0xff] }
 0x2bc   :  { %5091 = vmatpush.bf16.msrb.mxu2 %v8225_v6 }
 0x2bd   :  { %v2734_v21 = vrot.slane %v2733_v5, 4 }
 0x2be   :  { %5103 = vmatpush.bf16.msrb.mxu1 %v8235_v15  ;;  %v8275_v15 = vld [vmem:[%s10383_s5 + $0x1a8] sm:$0xff] }
 0x2bf   :  { %v2735_v16 = vadd.f32 %v2734_v21, %v2733_v5  ;;  %v8234_v5 = vld [vmem:[%s10383_s5 + $0x60] sm:$0xff]  ;;  %v8233_v21 = vld [vmem:[%s10383_s5 + $0x58] sm:$0xff] }
 0x2c0   :  { %5092 = vmatpush.bf16.msrb.mxu2 %v8224_v7  ;;  %v8267_v7 = vld [vmem:[%s10383_s5 + $0x168] sm:$0xff] }
 0x2c1   :  { %v2736_v18 = vrot.slane %v2735_v16, 2  ;;  %5159 = vmatpush.bf16.msrb.mxu0 %v8267_v7  ;;  %v8298_v7 = vld [vmem:[%s10383_s5 + $0x260] sm:$0xff] }
 0x2c2   :  { %5104 = vmatpush.bf16.msrb.mxu1 %v8234_v5  ;;  %v8274_v5 = vld [vmem:[%s10383_s5 + $0x1a0] sm:$0xff] }
 0x2c3   :  { %v2737_v19 = vadd.f32 %v2736_v18, %v2735_v16  ;;  %v8243_v16 = vld [vmem:[%s10383_s5 + $0xa8] sm:$0xff]  ;;  %v8232_v18 = vld [vmem:[%s10383_s5 + $0x50] sm:$0xff] }
 0x2c4   :  { %5093 = vmatpush.bf16.msrb.mxu2 %v8223_v9  ;;  %v8277_v9 = vld [vmem:[%s10383_s5 + $0x1b8] sm:$0xff] }
 0x2c5   :  { %v2738_v22 = vrot.slane %v2737_v19, 1 }
 0x2c6   :  { %5105 = vmatpush.bf16.msrb.mxu1 %v8233_v21  ;;  %v8185_v21 = vld [vmem:[%s10378_s1 + $0x68] sm:$0xff] }
 0x2c7   :  { %v2739_v23 = vadd.f32 %v2738_v22, %v2737_v19  ;;  %v8242_v19 = vld [vmem:[%s10383_s5 + $0xa0] sm:$0xff]  ;;  %v8181_v22 = vld [vmem:[%s10378_s1 + $0x48] sm:$0xff] }
 0x2c8   :  { %5094 = vmatpush.bf16.msrb.mxu2 %v8222_v36  ;;  %v8266_v36 = vld [vmem:[%s10383_s5 + $0x160] sm:$0xff] }
 0x2c9   :  { %v2740_v24 = vmul.f32 %v2739_v23, %v9559_v8  ;;  %v8231_v23 = vld [vmem:[%s10383_s5 + $0x48] sm:$0xff]  ;;  %5160 = vmatpush.bf16.msrb.mxu0 %v8266_v36 }
 0x2ca   :  { %5106 = vmatpush.bf16.msrb.mxu1 %v8232_v18  ;;  %v8307_v36 = vld [vmem:[%s10383_s5 + $0x2a8] sm:$0xff] }
 0x2cb   :  { %v2744_v26 = vadd.f32 1e-05, %v2740_v24  ;;  %v8241_v24 = vld [vmem:[%s10383_s5 + $0x98] sm:$0xff] }
 0x2cc   :  { %5115 = vmatpush.bf16.msra.mxu2 %v8245_v12 }
 0x2cd   :  { %8736 = vrsqrt.f32 %v2744_v26  ;;  %vm2751_vm3 = vweird.f32 %v2744_v26 }
 0x2ce   :  { %5107 = vmatpush.bf16.msrb.mxu1 %v8231_v23 }
 0x2d0   :  { %5116 = vmatpush.bf16.msra.mxu2 %v8244_v14 }
 0x2d3   :  { %v8737_v28 = vpop.eup %8736 }
 0x2d4   :  { %v2746_v29 = vmul.f32 %v8737_v28, %v2744_v26  ;;  %vm2752_vm2 = vweird.f32 %v8737_v28  ;;  %5117 = vmatpush.bf16.msra.mxu2 %v8243_v16  ;;  %v8230_v26 = vld [vmem:[%s10383_s5 + $0x40] sm:$0xff]  ;;  %v8263_v16 = vld [vmem:[%s10383_s5 + $0x148] sm:$0xff] }
 0x2d5   :  { %vm2753_vm4 = vmor %vm2751_vm3, %vm2752_vm2  ;;  %5108 = vmatpush.bf16.msrb.mxu1 %v8230_v26  ;;  %v8285_v26 = vld [vmem:[%s10383_s5 + $0x1f8] sm:$0xff] }
 0x2d6   :  { %v2747_v30 = vmul.f32 %v8737_v28, %v2746_v29  ;;  %v8239_v29 = vld [vmem:[%s10383_s5 + $0x88] sm:$0xff] }
 0x2d8   :  { %v2748_v31 = vmul.f32 0.5, %v2747_v30  ;;  %5118 = vmatpush.bf16.msra.mxu2 %v8242_v19  ;;  %v8253_v30 = vld [vmem:[%s10383_s5 + $0xf8] sm:$0xff]  ;;  %v8262_v19 = vld [vmem:[%s10383_s5 + $0x140] sm:$0xff] }
 0x2da   :  { %v2749_v34 = vsub.f32 1.5, %v2748_v31 }
 0x2dc   :  { %v2750_v35 = vmul.f32 %v8737_v28, %v2749_v34  ;;  %5119 = vmatpush.bf16.msra.mxu2 %v8241_v24  ;;  %v8252_v34 = vld [vmem:[%s10383_s5 + $0xf0] sm:$0xff] }
 0x2de   :  { %v2754_v40 = vsel %vm2753_vm4, %v8737_v28, %v2750_v35  ;;  %v8182_v35 = vld [vmem:[%s10378_s1 + $0x50] sm:$0xff] }
 0x2df   :  { %v2755_v41 = vmul.f32 %v2754_v40, %v2742_v37  ;;  %v2756_v42 = vmul.f32 %v2754_v40, %v2743_v38  ;;  %v8251_v40 = vld [vmem:[%s10383_s5 + $0xe8] sm:$0xff] }
 0x2e0   :  { %5120 = vmatpush.bf16.msra.mxu2 %v8240_v27 }
 0x2e1   :  { %v2758_v43 = vadd.f32 %v2757_v39, %v2755_v41  ;;  %v2759_v44 = vadd.f32 %v2757_v39, %v2756_v42  ;;  %v8261_v41 = vld [vmem:[%s10383_s5 + $0x138] sm:$0xff] }
 0x2e3   :  { %v2763_v45 = vmin.f32 %v2759_v44, 0.0  ;;  %v2762_v46 = vmin.f32 %v2758_v43, 0.0  ;;  %vm2760_vm5 = vcmp.gt.f32.partialorder %v2758_v43, 0.0  ;;  %vm2761_vm6 = vcmp.gt.f32.partialorder %v2759_v44, 0.0 }
 0x2e4   :  { %5121 = vmatpush.bf16.msra.mxu2 %v8239_v29  ;;  %v8284_v29 = vld [vmem:[%s10383_s5 + $0x1f0] sm:$0xff] }
 0x2e5   :  { %v2764_v47 = vmul.f32 1.442695, %v2762_v46  ;;  %v2766_v49 = vmul.f32 1.442695, %v2763_v45  ;;  %v8249_v45 = vld [vmem:[%s10383_s5 + $0xd8] sm:$0xff]  ;;  %v8259_v46 = vld [vmem:[%s10383_s5 + $0x128] sm:$0xff] }
 0x2e7   :  { %8738 = vpow2.f32 %v2764_v47 }
 0x2e8   :  { %8740 = vpow2.f32 %v2766_v49  ;;  %5122 = vmatpush.bf16.msra.mxu2 %v8238_v32  ;;  %v8248_v49 = vld [vmem:[%s10383_s5 + $0xd0] sm:$0xff] }
 0x2ed   :  { %v8739_v50 = vpop.eup %8738 }
 0x2ee   :  { %v8741_v51 = vpop.eup %8740  ;;  %v6783_v52 = vadd.f32 -1.0, %v8739_v50  ;;  %v8258_v50 = vld [vmem:[%s10383_s5 + $0x120] sm:$0xff] }
 0x2ef   :  { %v6784_v53 = vadd.f32 -1.0, %v8741_v51 }
 0x2f0   :  { %v2770_v54 = vsel %vm2760_vm5, %v2758_v43, %v6783_v52  ;;  %v8250_v43 = vld [vmem:[%s10383_s5 + $0xe0] sm:$0xff]  ;;  %v8183_v52 = vld [vmem:[%s10378_s1 + $0x58] sm:$0xff] }
 0x2f1   :  { %v2771_v55 = vsel %vm2761_vm6, %v2759_v44, %v6784_v53  ;;  %v8260_v44 = vld [vmem:[%s10383_s5 + $0x130] sm:$0xff]  ;;  %v8247_v53 = vld [vmem:[%s10383_s5 + $0xc8] sm:$0xff] }
 0x2f2   :  { %v2772_v48 = vpack.c.bf16 %v2771_v55, %v2770_v54  ;;  %v8257_v54 = vld [vmem:[%s10383_s5 + $0x118] sm:$0xff] }
 0x2f4   :  { %3030 = vmatpush.bf16.msrb.mxu3 %v2772_v48  ;;  %3755 = vmatmul.bf16.vlgmr.msra.gmra.mxu1 %v2772_v48  ;;  %v8246_v48 = vld [vmem:[%s10383_s5 + $0xc0] sm:$0xff] }
 0x2f5   :  { %5129 = vmatpush.bf16.msra.mxu1 %v8253_v30  ;;  %v8186_v30 = vld [vmem:[%s10378_s1 + $0x70] sm:$0xff] }
 0x2f7   :  { %6885 = vmatmul.msk.bf16.vlgmr.msrb.gmra.mxu3 %vm221_vm0, %v8172_v56  ;;  %v8256_v56 = vld [vmem:[%s10383_s5 + $0x110] sm:$0xff] }
 0x2f9   :  { %5130 = vmatpush.bf16.msra.mxu1 %v8252_v34 }
 0x2fd   :  { %5131 = vmatpush.bf16.msra.mxu1 %v8251_v40  ;;  %v8292_v40 = vld [vmem:[%s10383_s5 + $0x230] sm:$0xff] }
 0x301   :  { %5132 = vmatpush.bf16.msra.mxu1 %v8250_v43 }
 0x305   :  { %5133 = vmatpush.bf16.msra.mxu1 %v8249_v45  ;;  %v8290_v45 = vld [vmem:[%s10383_s5 + $0x220] sm:$0xff] }
 0x307   :  { %6886 = vmatmul.msk.bf16.gmra.mxu3 %vm221_vm0, %v8173_v57 }
 0x309   :  { %5134 = vmatpush.bf16.msra.mxu1 %v8248_v49  ;;  %v8279_v49 = vld [vmem:[%s10383_s5 + $0x1c8] sm:$0xff] }
 0x30d   :  { %5135 = vmatpush.bf16.msra.mxu1 %v8247_v53  ;;  %v8288_v53 = vld [vmem:[%s10383_s5 + $0x210] sm:$0xff] }
 0x311   :  { %5136 = vmatpush.bf16.msra.mxu1 %v8246_v48 }
 0x317   :  { %6887 = vmatmul.msk.bf16.gmra.mxu3 %vm221_vm0, %v8174_v58 }
 0x327   :  { %6888 = vmatmul.msk.bf16.gmra.mxu3 %vm221_vm0, %v8175_v59 }
 0x337   :  { %6889 = vmatmul.msk.bf16.gmra.mxu3 %vm221_vm0, %v8176_v60 }
 0x347   :  { %6890 = vmatmul.msk.bf16.gmra.mxu3 %vm221_vm0, %v8177_v62  ;;  %v8255_v62 = vld [vmem:[%s10383_s5 + $0x108] sm:$0xff] }
 0x357   :  { %6891 = vmatmul.msk.bf16.gmra.mxu3 %vm221_vm0, %v8178_v63 }
 0x367   :  { %6892 = vmatmul.msk.bf16.gmra.mxu3 %vm221_vm0, %v8179_v4 }
 0x377   :  { %6893 = vmatmul.msk.bf16.gmra.mxu3 %vm221_vm0, %v8180_v11  ;;  %v8265_v11 = vld [vmem:[%s10383_s5 + $0x158] sm:$0xff] }
 0x378   :  { %5161 = vmatpush.bf16.msrb.mxu0 %v8265_v11  ;;  %v8296_v11 = vld [vmem:[%s10383_s5 + $0x250] sm:$0xff] }
 0x37a   :  { %v3032_v13 = vpop.f32.mrf.mxu3 }
 0x382   :  { %v3034_v17 = vpop.f32.mrf.mxu3 }
 0x383   :  { %v3158_v20 = vpack.c.bf16 %v3034_v17, %v3034_v17  ;;  %v8273_v17 = vld [vmem:[%s10383_s5 + $0x198] sm:$0xff] }
 0x385   :  { %3160 = vst [vmem:[#allocation2 + $0x64] sm:$0xf] %v3158_v20  ;;  %v8272_v20 = vld [vmem:[%s10383_s5 + $0x190] sm:$0xff] }
 0x387   :  { %6894 = vmatmul.msk.bf16.gmra.mxu3 %vm221_vm0, %v8181_v22 }
 0x38a   :  { %v3037_v25 = vpop.f32.mrf.mxu3 }
 0x38b   :  { %v8570_v28 = vpack.c.bf16 %v3037_v25, %v3032_v13  ;;  %v8264_v13 = vld [vmem:[%s10383_s5 + $0x150] sm:$0xff]  ;;  %v8271_v25 = vld [vmem:[%s10383_s5 + $0x188] sm:$0xff] }
 0x38c   :  { %v8209_v38 = vld [vmem:[#allocation2 + $0x60] sm:$0xf0]  ;;  %5162 = vmatpush.bf16.msrb.mxu0 %v8264_v13  ;;  %v8189_v13 = vld [vmem:[%s10378_s1 + $0x88] sm:$0xff] }
 0x38d   :  { %8571 = vst [vmem:[#allocation2] sm:$0xff] %v8570_v28   ;;  %v8270_v28 = vld [vmem:[%s10383_s5 + $0x180] sm:$0xff] }
 0x390   :  { %5163 = vmatpush.bf16.msrb.mxu0 %v8263_v16  ;;  %v8294_v16 = vld [vmem:[%s10383_s5 + $0x240] sm:$0xff] }
 0x392   :  { %v3039_v31 = vpop.f32.mrf.mxu3 }
 0x394   :  { %v6944_v37 = vld [vmem:[#allocation2] sm:$0xf]  ;;  %v8197_v58 = vld [vmem:[#allocation2 + $0x4] sm:$0xf]  ;;  %5164 = vmatpush.bf16.msrb.mxu0 %v8262_v19 }
 0x395   :  { %v6945_v39 = vor.u32 %v8209_v38, %v6944_v37  ;;  %v8293_v37 = vld [vmem:[%s10383_s5 + $0x238] sm:$0xff] }
 0x397   :  { %6895 = vmatmul.msk.bf16.gmra.mxu3 %vm221_vm0, %v8182_v35  ;;  %5095 = vmatmul.bf16.vlgmr.msrb.gmra.mxu2 %v6945_v39  ;;  %v8283_v35 = vld [vmem:[%s10383_s5 + $0x1e8] sm:$0xff]  ;;  %v8282_v39 = vld [vmem:[%s10383_s5 + $0x1e0] sm:$0xff] }
 0x398   :  { %5143 = vmatpush.bf16.msrb.mxu2 %v8261_v41  ;;  %5199 = vmatpush.bf16.msra.mxu0 %v8293_v37  ;;  %v8281_v41 = vld [vmem:[%s10383_s5 + $0x1d8] sm:$0xff] }
 0x39a   :  { %v3042_v42 = vpop.f32.mrf.mxu3 }
 0x39c   :  { %5144 = vmatpush.bf16.msrb.mxu2 %v8260_v44  ;;  %5200 = vmatpush.bf16.msra.mxu0 %v8292_v40  ;;  %v8280_v44 = vld [vmem:[%s10383_s5 + $0x1d0] sm:$0xff]  ;;  %v8313_v40 = vld [vmem:[%s10383_s5 + $0x2d8] sm:$0xff] }
 0x3a0   :  { %5145 = vmatpush.bf16.msrb.mxu2 %v8259_v46 }
 0x3a2   :  { %v3044_v47 = vpop.f32.mrf.mxu3 }
 0x3a3   :  { %v8575_v51 = vpack.c.bf16 %v3044_v47, %v3039_v31  ;;  %v8187_v47 = vld [vmem:[%s10378_s1 + $0x78] sm:$0xff] }
 0x3a4   :  { %5146 = vmatpush.bf16.msrb.mxu2 %v8258_v50  ;;  %v8289_v50 = vld [vmem:[%s10383_s5 + $0x218] sm:$0xff] }
 0x3a5   :  { %8710 = vst [vmem:[#allocation2 + $0x68] sm:$0xff] %v8575_v51  }
 0x3a7   :  { %6896 = vmatmul.msk.bf16.gmra.mxu3 %vm221_vm0, %v8183_v52  ;;  %v8278_v52 = vld [vmem:[%s10383_s5 + $0x1c0] sm:$0xff] }
 0x3a8   :  { %5147 = vmatpush.bf16.msrb.mxu2 %v8257_v54 }
 0x3aa   :  { %v3047_v55 = vpop.f32.mrf.mxu3 }
 0x3ab   :  { %v8580_v57 = vpack.c.bf16 %v3047_v55, %v3042_v42  ;;  %v8291_v42 = vld [vmem:[%s10383_s5 + $0x228] sm:$0xff] }
 0x3ac   :  { %v6946_v59 = vld [vmem:[#allocation2 + $0x64] sm:$0xf0]  ;;  %5148 = vmatpush.bf16.msrb.mxu2 %v8256_v56  ;;  %v8210_v4 = vld [vmem:[#allocation2 + $0x68] sm:$0xf0]  ;;  %5201 = vmatpush.bf16.msra.mxu0 %v8291_v42 }
 0x3ad   :  { %8711 = vst [vmem:[#allocation2 + $0x8] sm:$0xff] %v8580_v57   ;;  %v6949_v60 = vor.u32 %v8197_v58, %v6946_v59  ;;  %v8287_v57 = vld [vmem:[%s10383_s5 + $0x208] sm:$0xff]  ;;  %v8301_v58 = vld [vmem:[%s10383_s5 + $0x278] sm:$0xff] }
 0x3af   :  { %5109 = vmatmul.bf16.vlgmr.msrb.gmra.mxu1 %v6949_v60  ;;  %v8286_v60 = vld [vmem:[%s10383_s5 + $0x200] sm:$0xff] }
 0x3b0   :  { %5149 = vmatpush.bf16.msrb.mxu2 %v8255_v62  ;;  %5171 = vmatpush.bf16.msrb.mxu1 %v8277_v9  ;;  %v8300_v62 = vld [vmem:[%s10383_s5 + $0x270] sm:$0xff] }
 0x3b1   :  { %5202 = vmatpush.bf16.msra.mxu0 %v8290_v45  ;;  %v8308_v9 = vld [vmem:[%s10383_s5 + $0x2b0] sm:$0xff] }
 0x3b2   :  { %v3049_v63 = vpop.f32.mrf.mxu3  ;;  %v8312_v45 = vld [vmem:[%s10383_s5 + $0x2d0] sm:$0xff] }
 0x3b4   :  { %v6952_v3 = vld [vmem:[#allocation2 + $0x8] sm:$0xf]  ;;  %5150 = vmatpush.bf16.msrb.mxu2 %v8254_v0  ;;  %5172 = vmatpush.bf16.msrb.mxu1 %v8276_v10  ;;  %v8198_v33 = vld [vmem:[#allocation2 + $0xc] sm:$0xf] }
 0x3b5   :  { %v6953_v6 = vor.u32 %v8210_v4, %v6952_v3  ;;  %5203 = vmatpush.bf16.msra.mxu0 %v8289_v50  ;;  %v8299_v3 = vld [vmem:[%s10383_s5 + $0x268] sm:$0xff]  ;;  %v8309_v4 = vld [vmem:[%s10383_s5 + $0x2b8] sm:$0xff] }
 0x3b6   :  { %v8191_v50 = vld [vmem:[%s10378_s1 + $0x98] sm:$0xff] }
 0x3b7   :  { %6897 = vmatmul.msk.bf16.gmra.mxu3 %vm221_vm0, %v8184_v2  ;;  %5123 = vmatmul.bf16.vlgmr.msra.gmra.mxu2 %v6953_v6 }
 0x3b8   :  { %5173 = vmatpush.bf16.msrb.mxu1 %v8275_v15  ;;  %5185 = vmatpush.bf16.msra.mxu2 %v8285_v26  ;;  %v8306_v15 = vld [vmem:[%s10383_s5 + $0x2a0] sm:$0xff]  ;;  %v8316_v26 = vld [vmem:[%s10383_s5 + $0x2f0] sm:$0xff] }
 0x3b9   :  { %5204 = vmatpush.bf16.msra.mxu0 %v8288_v53 }
 0x3ba   :  { %v3052_v61 = vpop.f32.mrf.mxu3 }
 0x3bc   :  { %5174 = vmatpush.bf16.msrb.mxu1 %v8274_v5  ;;  %5186 = vmatpush.bf16.msra.mxu2 %v8284_v29  ;;  %v8295_v5 = vld [vmem:[%s10383_s5 + $0x248] sm:$0xff] }
 0x3bd   :  { %5205 = vmatpush.bf16.msra.mxu0 %v8287_v57 }
 0x3c0   :  { %5175 = vmatpush.bf16.msrb.mxu1 %v8273_v17  ;;  %5187 = vmatpush.bf16.msra.mxu2 %v8283_v35  ;;  %v8304_v17 = vld [vmem:[%s10383_s5 + $0x290] sm:$0xff] }
 0x3c1   :  { %5206 = vmatpush.bf16.msra.mxu0 %v8286_v60 }
 0x3c2   :  { %v3054_v12 = vpop.f32.mrf.mxu3 }
 0x3c3   :  { %v8585_v14 = vpack.c.bf16 %v3054_v12, %v3049_v63  ;;  %v8188_v63 = vld [vmem:[%s10378_s1 + $0x80] sm:$0xff] }
 0x3c4   :  { %5176 = vmatpush.bf16.msrb.mxu1 %v8272_v20  ;;  %5188 = vmatpush.bf16.msra.mxu2 %v8282_v39  ;;  %v8324_v39 = vld [vmem:[%s10383_s5 + $0x330] sm:$0xff] }
 0x3c5   :  { %8712 = vst [vmem:[#allocation2 + $0x70] sm:$0xff] %v8585_v14   ;;  %v8305_v14 = vld [vmem:[%s10383_s5 + $0x298] sm:$0xff] }
 0x3c7   :  { %6898 = vmatmul.msk.bf16.gmra.mxu3 %vm221_vm0, %v8185_v21 }
 0x3c8   :  { %5177 = vmatpush.bf16.msrb.mxu1 %v8271_v25  ;;  %5189 = vmatpush.bf16.msra.mxu2 %v8281_v41  ;;  %v8302_v25 = vld [vmem:[%s10383_s5 + $0x280] sm:$0xff]  ;;  %v8323_v41 = vld [vmem:[%s10383_s5 + $0x328] sm:$0xff] }
 0x3ca   :  { %v3057_v18 = vpop.f32.mrf.mxu3 }
 0x3cb   :  { %v8590_v22 = vpack.c.bf16 %v3057_v18, %v3052_v61  ;;  %v8297_v61 = vld [vmem:[%s10383_s5 + $0x258] sm:$0xff] }
 0x3cc   :  { %v6954_v23 = vld [vmem:[#allocation2 + $0x6c] sm:$0xf0]  ;;  %v8211_v32 = vld [vmem:[#allocation2 + $0x70] sm:$0xf0]  ;;  %5178 = vmatpush.bf16.msrb.mxu1 %v8270_v28  ;;  %5190 = vmatpush.bf16.msra.mxu2 %v8280_v44 }
 0x3cd   :  { %8713 = vst [vmem:[#allocation2 + $0x10] sm:$0xff] %v8590_v22   ;;  %v6957_v24 = vor.u32 %v8198_v33, %v6954_v23  ;;  %v8303_v33 = vld [vmem:[%s10383_s5 + $0x288] sm:$0xff]  ;;  %v8317_v23 = vld [vmem:[%s10383_s5 + $0x2f8] sm:$0xff] }
 0x3cf   :  { %5137 = vmatmul.bf16.vlgmr.msra.gmra.mxu1 %v6957_v24 }
 0x3d0   :  { %5191 = vmatpush.bf16.msra.mxu2 %v8279_v49  ;;  %5213 = vmatpush.bf16.msra.mxu1 %v8301_v58 }
 0x3d2   :  { %v3059_v27 = vpop.f32.mrf.mxu3 }
 0x3d4   :  { %v6960_v31 = vld [vmem:[#allocation2 + $0x10] sm:$0xf]  ;;  %v8199_v55 = vld [vmem:[#allocation2 + $0x14] sm:$0xf]  ;;  %5192 = vmatpush.bf16.msra.mxu2 %v8278_v52  ;;  %5214 = vmatpush.bf16.msra.mxu1 %v8300_v62  ;;  %v8321_v52 = vld [vmem:[%s10383_s5 + $0x318] sm:$0xff] }
 0x3d5   :  { %v6961_v34 = vor.u32 %v8211_v32, %v6960_v31  ;;  %v8315_v31 = vld [vmem:[%s10383_s5 + $0x2e8] sm:$0xff]  ;;  %v8325_v32 = vld [vmem:[%s10383_s5 + $0x338] sm:$0xff] }
 0x3d7   :  { %6899 = vmatmul.msk.bf16.gmra.mxu3 %vm221_vm0, %v8186_v30  ;;  %5151 = vmatmul.bf16.vlgmr.msrb.gmra.mxu2 %v6961_v34  ;;  %v3756_v34 = vpop.f32.mrf.mxu1 }
 0x3d8   :  { %5215 = vmatpush.bf16.msra.mxu1 %v8299_v3  ;;  %5227 = vmatpush.bf16.msrb.mxu2 %v8309_v4  ;;  %v8332_v3 = vld [vmem:[%s10383_s5 + $0x370] sm:$0xff]  ;;  %v8192_v4 = vld [vmem:[%s10378_s1 + $0xa0] sm:$0xff] }
 0x3da   :  { %v3062_v38 = vpop.f32.mrf.mxu3 }
 0x3dc   :  { %5216 = vmatpush.bf16.msra.mxu1 %v8298_v7  ;;  %5228 = vmatpush.bf16.msrb.mxu2 %v8308_v9 }
 0x3df   :  { %v3758_v42 = vpop.f32.mrf.mxu1 }
 0x3e0   :  { %5217 = vmatpush.bf16.msra.mxu1 %v8297_v61  ;;  %5229 = vmatpush.bf16.msrb.mxu2 %v8307_v36 }
 0x3e2   :  { %v3064_v43 = vpop.f32.mrf.mxu3 }
 0x3e3   :  { %v8595_v46 = vpack.c.bf16 %v3064_v43, %v3059_v27  ;;  %v8190_v27 = vld [vmem:[%s10378_s1 + $0x90] sm:$0xff] }
 0x3e4   :  { %5218 = vmatpush.bf16.msra.mxu1 %v8296_v11  ;;  %5230 = vmatpush.bf16.msrb.mxu2 %v8306_v15  ;;  %v8341_v11 = vld [vmem:[%s10383_s5 + $0x3b8] sm:$0xff] }
 0x3e5   :  { %8714 = vst [vmem:[#allocation2 + $0x78] sm:$0xff] %v8595_v46   ;;  %v8322_v46 = vld [vmem:[%s10383_s5 + $0x320] sm:$0xff] }
 0x3e7   :  { %6900 = vmatmul.msk.bf16.gmra.mxu3 %vm221_vm0, %v8187_v47 }
 0x3e8   :  { %5219 = vmatpush.bf16.msra.mxu1 %v8295_v5  ;;  %5231 = vmatpush.bf16.msrb.mxu2 %v8305_v14  ;;  %v8340_v5 = vld [vmem:[%s10383_s5 + $0x3b0] sm:$0xff] }
 0x3ea   :  { %v3067_v51 = vpop.f32.mrf.mxu3 }
 0x3eb   :  { %v8600_v54 = vpack.c.bf16 %v3067_v51, %v3062_v38  ;;  %v8314_v38 = vld [vmem:[%s10383_s5 + $0x2e0] sm:$0xff]  ;;  %v8311_v51 = vld [vmem:[%s10383_s5 + $0x2c8] sm:$0xff] }
 0x3ec   :  { %v6962_v48 = vld [vmem:[#allocation2 + $0x74] sm:$0xf0]  ;;  %v8212_v1 = vld [vmem:[#allocation2 + $0x78] sm:$0xf0]  ;;  %5220 = vmatpush.bf16.msra.mxu1 %v8294_v16  ;;  %5232 = vmatpush.bf16.msrb.mxu2 %v8304_v17  ;;  %v8339_v16 = vld [vmem:[%s10383_s5 + $0x3a8] sm:$0xff] }
 0x3ed   :  { %8715 = vst [vmem:[#allocation2 + $0x18] sm:$0xff] %v8600_v54   ;;  %v6965_v56 = vor.u32 %v8199_v55, %v6962_v48  ;;  %v8310_v54 = vld [vmem:[%s10383_s5 + $0x2c0] sm:$0xff]  ;;  %v8320_v55 = vld [vmem:[%s10383_s5 + $0x310] sm:$0xff] }
 0x3ef   :  { %5165 = vmatmul.bf16.vlgmr.msrb.gmra.mxu0 %v6965_v56 }
 0x3f0   :  { %5233 = vmatpush.bf16.msrb.mxu2 %v8303_v33  ;;  %5241 = vmatpush.bf16.msrb.mxu0 %v8317_v23  ;;  %v8193_v23 = vld [vmem:[%s10378_s1 + $0xa8] sm:$0xff] }
 0x3f2   :  { %v3069_v59 = vpop.f32.mrf.mxu3 }
 0x3f4   :  { %v6968_v0 = vld [vmem:[#allocation2 + $0x18] sm:$0xf]  ;;  %v8200_v19 = vld [vmem:[#allocation2 + $0x1c] sm:$0xf]  ;;  %5234 = vmatpush.bf16.msrb.mxu2 %v8302_v25  ;;  %5242 = vmatpush.bf16.msrb.mxu0 %v8316_v26 }
 0x3f5   :  { %v6969_v2 = vor.u32 %v8212_v1, %v6968_v0  ;;  %v8333_v0 = vld [vmem:[%s10383_s5 + $0x378] sm:$0xff] }
 0x3f6   :  { %v8337_v25 = vld [vmem:[%s10383_s5 + $0x398] sm:$0xff] }
 0x3f7   :  { %6901 = vmatmul.msk.bf16.gmra.mxu3 %vm221_vm0, %v8188_v63  ;;  %5179 = vmatmul.bf16.vlgmr.msrb.gmra.mxu1 %v6969_v2  ;;  %v8319_v63 = vld [vmem:[%s10383_s5 + $0x308] sm:$0xff]  ;;  %v8318_v2 = vld [vmem:[%s10383_s5 + $0x300] sm:$0xff] }
 0x3f8   :  { %5243 = vmatpush.bf16.msrb.mxu0 %v8315_v31  ;;  %5255 = vmatpush.bf16.msrb.mxu1 %v8325_v32 }
 0x3fa   :  { %v3072_v6 = vpop.f32.mrf.mxu3 }
 0x3fc   :  { %5244 = vmatpush.bf16.msrb.mxu0 %v8314_v38  ;;  %5256 = vmatpush.bf16.msrb.mxu1 %v8324_v39  ;;  %v8349_v38 = vld [vmem:[%s10383_s5 + $0x3f8] sm:$0xff] }
 0x400   :  { %5245 = vmatpush.bf16.msrb.mxu0 %v8313_v40  ;;  %5257 = vmatpush.bf16.msrb.mxu1 %v8323_v41  ;;  %v8334_v40 = vld [vmem:[%s10383_s5 + $0x380] sm:$0xff]  ;;  %v8348_v41 = vld [vmem:[%s10383_s5 + $0x3f0] sm:$0xff] }
 0x402   :  { %v3074_v10 = vpop.f32.mrf.mxu3 }
 0x403   :  { %v8605_v12 = vpack.c.bf16 %v3074_v10, %v3069_v59  ;;  %v8331_v10 = vld [vmem:[%s10383_s5 + $0x368] sm:$0xff] }
 0x404   :  { %5246 = vmatpush.bf16.msrb.mxu0 %v8312_v45  ;;  %5258 = vmatpush.bf16.msrb.mxu1 %v8322_v46 }
 0x405   :  { %8716 = vst [vmem:[#allocation2 + $0x80] sm:$0xff] %v8605_v12  }
 0x407   :  { %6902 = vmatmul.msk.bf16.gmra.mxu3 %vm221_vm0, %v8189_v13  ;;  %v8330_v13 = vld [vmem:[%s10383_s5 + $0x360] sm:$0xff] }
 0x408   :  { %5247 = vmatpush.bf16.msrb.mxu0 %v8311_v51  ;;  %5259 = vmatpush.bf16.msrb.mxu1 %v8321_v52 }
 0x40a   :  { %v3077_v21 = vpop.f32.mrf.mxu3 }
 0x40b   :  { %v8610_v18 = vpack.c.bf16 %v3077_v21, %v3072_v6  ;;  %v8329_v21 = vld [vmem:[%s10383_s5 + $0x358] sm:$0xff] }
 0x40c   :  { %v6970_v20 = vld [vmem:[#allocation2 + $0x7c] sm:$0xf0]  ;;  %v8213_v29 = vld [vmem:[#allocation2 + $0x80] sm:$0xf0]  ;;  %5248 = vmatpush.bf16.msrb.mxu0 %v8310_v54  ;;  %5260 = vmatpush.bf16.msrb.mxu1 %v8320_v55  ;;  %v8356_v54 = vld [vmem:[%s10383_s5 + $0x430] sm:$0xff] }
 0x40d   :  { %8717 = vst [vmem:[#allocation2 + $0x20] sm:$0xff] %v8610_v18   ;;  %v6973_v22 = vor.u32 %v8200_v19, %v6970_v20  ;;  %v8328_v19 = vld [vmem:[%s10383_s5 + $0x350] sm:$0xff]  ;;  %v8338_v20 = vld [vmem:[%s10383_s5 + $0x3a0] sm:$0xff] }
 0x40f   :  { %5193 = vmatmul.bf16.vlgmr.msra.gmra.mxu2 %v6973_v22 }
 0x410   :  { %5261 = vmatpush.bf16.msrb.mxu1 %v8319_v63  ;;  %5269 = vmatpush.bf16.msra.mxu2 %v8333_v0  ;;  %v8195_v0 = vld [vmem:[%s10378_s1 + $0xb8] sm:$0xff] }
 0x412   :  { %v3079_v24 = vpop.f32.mrf.mxu3 }
 0x414   :  { %v6976_v28 = vld [vmem:[#allocation2 + $0x20] sm:$0xf]  ;;  %v8201_v58 = vld [vmem:[#allocation2 + $0x24] sm:$0xf]  ;;  %5262 = vmatpush.bf16.msrb.mxu1 %v8318_v2  ;;  %5270 = vmatpush.bf16.msra.mxu2 %v8332_v3  ;;  %v8353_v2 = vld [vmem:[%s10383_s5 + $0x418] sm:$0xff] }
 0x415   :  { %v6977_v30 = vor.u32 %v8213_v29, %v6976_v28  ;;  %v8336_v28 = vld [vmem:[%s10383_s5 + $0x390] sm:$0xff] }
 0x417   :  { %6903 = vmatmul.msk.bf16.gmra.mxu3 %vm221_vm0, %v8190_v27  ;;  %5207 = vmatmul.bf16.vlgmr.msra.gmra.mxu0 %v6977_v30  ;;  %v8326_v27 = vld [vmem:[%s10383_s5 + $0x340] sm:$0xff] }
 0x418   :  { %5271 = vmatpush.bf16.msra.mxu2 %v8331_v10  ;;  %5283 = vmatpush.bf16.msra.mxu0 %v8341_v11 }
 0x41a   :  { %v3082_v35 = vpop.f32.mrf.mxu3  ;;  %v5096_v37 = vpop.f32.mrf.mxu2 }
 0x41b   :  { %v5097_v48 = vadd.f32 %v5096_v37, %v3756_v34  ;;  %v8335_v37 = vld [vmem:[%s10383_s5 + $0x388] sm:$0xff] }
 0x41c   :  { %5272 = vmatpush.bf16.msra.mxu2 %v8330_v13  ;;  %5284 = vmatpush.bf16.msra.mxu0 %v8340_v5  ;;  %v8350_v5 = vld [vmem:[%s10383_s5 + $0x400] sm:$0xff] }
 0x420   :  { %5273 = vmatpush.bf16.msra.mxu2 %v8329_v21  ;;  %5285 = vmatpush.bf16.msra.mxu0 %v8339_v16  ;;  %v8196_v21 = vld [vmem:[%s10378_s1 + $0xc0] sm:$0xff] }
 0x422   :  { %v3084_v43 = vpop.f32.mrf.mxu3  ;;  %v5098_v44 = vpop.f32.mrf.mxu2 }
 0x423   :  { %v8615_v47 = vpack.c.bf16 %v3084_v43, %v3079_v24  ;;  %v5099_v49 = vadd.f32 %v5098_v44, %v3758_v42  ;;  %v8327_v24 = vld [vmem:[%s10383_s5 + $0x348] sm:$0xff]  ;;  %v8194_v42 = vld [vmem:[%s10378_s1 + $0xb0] sm:$0xff] }
 0x424   :  { %5274 = vmatpush.bf16.msra.mxu2 %v8328_v19  ;;  %5286 = vmatpush.bf16.msra.mxu0 %v8338_v20 }
 0x425   :  { %8718 = vst [vmem:[#allocation2 + $0x88] sm:$0xff] %v8615_v47  }
 0x427   :  { %6904 = vmatmul.msk.bf16.gmra.mxu3 %vm221_vm0, %v8191_v50  ;;  %v8357_v50 = vld [vmem:[%s10383_s5 + $0x438] sm:$0xff] }
 0x428   :  { %5275 = vmatpush.bf16.msra.mxu2 %v8327_v24  ;;  %5287 = vmatpush.bf16.msra.mxu0 %v8337_v25  ;;  %v8373_v24 = vld [vmem:[%s10383_s5 + $0x4b8] sm:$0xff] }
 0x42a   :  { %v3087_v53 = vpop.f32.mrf.mxu3 }
 0x42b   :  { %v8620_v56 = vpack.c.bf16 %v3087_v53, %v3082_v35  ;;  %v8346_v53 = vld [vmem:[%s10383_s5 + $0x3e0] sm:$0xff] }
 0x42c   :  { %v5110_v57 = vpop.f32.mrf.mxu1  ;;  %v6978_v59 = vld [vmem:[#allocation2 + $0x84] sm:$0xf0]  ;;  %v8214_v9 = vld [vmem:[#allocation2 + $0x88] sm:$0xf0]  ;;  %5276 = vmatpush.bf16.msra.mxu2 %v8326_v27  ;;  %5288 = vmatpush.bf16.msra.mxu0 %v8336_v28  ;;  %v8372_v27 = vld [vmem:[%s10383_s5 + $0x4b0] sm:$0xff] }
 0x42d   :  { %8719 = vst [vmem:[#allocation2 + $0x28] sm:$0xff] %v8620_v56   ;;  %v5111_v60 = vadd.f32 %v5110_v57, %v5097_v48  ;;  %v6981_v62 = vor.u32 %v8201_v58, %v6978_v59  ;;  %v8345_v48 = vld [vmem:[%s10383_s5 + $0x3d8] sm:$0xff]  ;;  %v8355_v56 = vld [vmem:[%s10383_s5 + $0x428] sm:$0xff]  ;;  %v8344_v59 = vld [vmem:[%s10383_s5 + $0x3d0] sm:$0xff] }
 0x42e   :  { %v8361_v28 = vld [vmem:[%s10383_s5 + $0x458] sm:$0xff] }
 0x42f   :  { %5221 = vmatmul.bf16.vlgmr.msra.gmra.mxu1 %v6981_v62 }
 0x430   :  { %5289 = vmatpush.bf16.msra.mxu0 %v8335_v37  ;;  %5297 = vmatpush.bf16.msra.mxu1 %v8349_v38  ;;  %v8369_v37 = vld [vmem:[%s10383_s5 + $0x498] sm:$0xff] }
 0x432   :  { %v3089_v1 = vpop.f32.mrf.mxu3 }
 0x434   :  { %v5112_v6 = vpop.f32.mrf.mxu1  ;;  %v6984_v7 = vld [vmem:[#allocation2 + $0x28] sm:$0xf]  ;;  %v8202_v31 = vld [vmem:[#allocation2 + $0x2c] sm:$0xf]  ;;  %5290 = vmatpush.bf16.msra.mxu0 %v8334_v40  ;;  %5298 = vmatpush.bf16.msra.mxu1 %v8348_v41  ;;  %v8368_v40 = vld [vmem:[%s10383_s5 + $0x490] sm:$0xff] }
 0x435   :  { %v5113_v61 = vadd.f32 %v5112_v6, %v5099_v49  ;;  %v6985_v36 = vor.u32 %v8214_v9, %v6984_v7  ;;  %v8347_v49 = vld [vmem:[%s10383_s5 + $0x3e8] sm:$0xff]  ;;  %v8352_v6 = vld [vmem:[%s10383_s5 + $0x410] sm:$0xff] }
 0x437   :  { %6905 = vmatmul.msk.bf16.gmra.mxu3 %vm221_vm0, %v8192_v4  ;;  %5235 = vmatmul.bf16.vlgmr.msrb.gmra.mxu2 %v6985_v36  ;;  %v8342_v4 = vld [vmem:[%s10383_s5 + $0x3c0] sm:$0xff] }
 0x438   :  { %5299 = vmatpush.bf16.msra.mxu1 %v8347_v49  ;;  %5311 = vmatpush.bf16.msrb.mxu2 %v8357_v50  ;;  %v8366_v50 = vld [vmem:[%s10383_s5 + $0x480] sm:$0xff] }
 0x43a   :  { %v3092_v15 = vpop.f32.mrf.mxu3  ;;  %v5124_v12 = vpop.f32.mrf.mxu2 }
 0x43b   :  { %v5125_v14 = vadd.f32 %v5124_v12, %v5111_v60  ;;  %v8354_v60 = vld [vmem:[%s10383_s5 + $0x420] sm:$0xff]  ;;  %v8365_v12 = vld [vmem:[%s10383_s5 + $0x478] sm:$0xff] }
 0x43c   :  { %5300 = vmatpush.bf16.msra.mxu1 %v8346_v53  ;;  %5312 = vmatpush.bf16.msrb.mxu2 %v8356_v54 }
 0x440   :  { %5301 = vmatpush.bf16.msra.mxu1 %v8345_v48  ;;  %5313 = vmatpush.bf16.msrb.mxu2 %v8355_v56 }
 0x442   :  { %v3094_v17 = vpop.f32.mrf.mxu3  ;;  %v5126_v18 = vpop.f32.mrf.mxu2 }
 0x443   :  { %v8625_v22 = vpack.c.bf16 %v3094_v17, %v3089_v1  ;;  %v5127_v33 = vadd.f32 %v5126_v18, %v5113_v61  ;;  %v8343_v1 = vld [vmem:[%s10383_s5 + $0x3c8] sm:$0xff] }
 0x444   :  { %5302 = vmatpush.bf16.msra.mxu1 %v8344_v59  ;;  %5314 = vmatpush.bf16.msrb.mxu2 %v8354_v60  ;;  %v8389_v59 = vld [vmem:[%s10383_s5 + $0x538] sm:$0xff] }
 0x445   :  { %8720 = vst [vmem:[#allocation2 + $0x90] sm:$0xff] %v8625_v22  }
 0x447   :  { %6906 = vmatmul.msk.bf16.gmra.mxu3 %vm221_vm0, %v8193_v23  ;;  %v8363_v23 = vld [vmem:[%s10383_s5 + $0x468] sm:$0xff] }
 0x448   :  { %5303 = vmatpush.bf16.msra.mxu1 %v8343_v1  ;;  %5315 = vmatpush.bf16.msrb.mxu2 %v8353_v2  ;;  %v8388_v1 = vld [vmem:[%s10383_s5 + $0x530] sm:$0xff] }
 0x44a   :  { %v3097_v26 = vpop.f32.mrf.mxu3 }
 0x44b   :  { %v8630_v29 = vpack.c.bf16 %v3097_v26, %v3092_v15  ;;  %v8351_v15 = vld [vmem:[%s10383_s5 + $0x408] sm:$0xff]  ;;  %v8362_v26 = vld [vmem:[%s10383_s5 + $0x460] sm:$0xff] }
 0x44c   :  { %v5138_v30 = vpop.f32.mrf.mxu1  ;;  %v6986_v32 = vld [vmem:[#allocation2 + $0x8c] sm:$0xf0]  ;;  %v8215_v45 = vld [vmem:[#allocation2 + $0x90] sm:$0xf0]  ;;  %5304 = vmatpush.bf16.msra.mxu1 %v8342_v4  ;;  %5316 = vmatpush.bf16.msrb.mxu2 %v8352_v6  ;;  %v8377_v4 = vld [vmem:[%s10383_s5 + $0x4d8] sm:$0xff] }
 0x44d   :  { %8721 = vst [vmem:[#allocation2 + $0x30] sm:$0xff] %v8630_v29   ;;  %v5139_v34 = vadd.f32 %v5138_v30, %v5125_v14  ;;  %v6989_v35 = vor.u32 %v8202_v31, %v6986_v32  ;;  %v8364_v14 = vld [vmem:[%s10383_s5 + $0x470] sm:$0xff]  ;;  %v8371_v29 = vld [vmem:[%s10383_s5 + $0x4a8] sm:$0xff]  ;;  %v8370_v32 = vld [vmem:[%s10383_s5 + $0x4a0] sm:$0xff] }
 0x44e   :  { %v8360_v31 = vld [vmem:[%s10383_s5 + $0x450] sm:$0xff]  ;;  %v8387_v6 = vld [vmem:[%s10383_s5 + $0x528] sm:$0xff] }
 0x44f   :  { %5249 = vmatmul.bf16.vlgmr.msrb.gmra.mxu0 %v6989_v35  ;;  %v8359_v35 = vld [vmem:[%s10383_s5 + $0x448] sm:$0xff] }
 0x450   :  { %5317 = vmatpush.bf16.msrb.mxu2 %v8351_v15  ;;  %5325 = vmatpush.bf16.msrb.mxu0 %v8365_v12  ;;  %v8385_v15 = vld [vmem:[%s10383_s5 + $0x518] sm:$0xff] }
 0x452   :  { %v3099_v39 = vpop.f32.mrf.mxu3 }
 0x454   :  { %v5140_v43 = vpop.f32.mrf.mxu1  ;;  %v6992_v44 = vld [vmem:[#allocation2 + $0x30] sm:$0xf]  ;;  %v8203_v61 = vld [vmem:[#allocation2 + $0x34] sm:$0xf]  ;;  %5318 = vmatpush.bf16.msrb.mxu2 %v8350_v5  ;;  %5326 = vmatpush.bf16.msrb.mxu0 %v8364_v14 }
 0x455   :  { %v5141_v46 = vadd.f32 %v5140_v43, %v5127_v33  ;;  %v6993_v47 = vor.u32 %v8215_v45, %v6992_v44  ;;  %v8367_v45 = vld [vmem:[%s10383_s5 + $0x488] sm:$0xff]  ;;  %v8384_v5 = vld [vmem:[%s10383_s5 + $0x510] sm:$0xff] }
 0x457   :  { %6907 = vmatmul.msk.bf16.gmra.mxu3 %vm221_vm0, %v8194_v42  ;;  %5263 = vmatmul.bf16.vlgmr.msrb.gmra.mxu1 %v6993_v47 }
 0x458   :  { %5327 = vmatpush.bf16.msrb.mxu0 %v8363_v23  ;;  %5339 = vmatpush.bf16.msrb.mxu1 %v8373_v24 }
 0x45a   :  { %v3102_v51 = vpop.f32.mrf.mxu3  ;;  %v5152_v52 = vpop.f32.mrf.mxu2 }
 0x45b   :  { %v5153_v55 = vadd.f32 %v5152_v52, %v5139_v34 }
 0x45c   :  { %5328 = vmatpush.bf16.msrb.mxu0 %v8362_v26  ;;  %5340 = vmatpush.bf16.msrb.mxu1 %v8372_v27  ;;  %v8395_v27 = vld [vmem:[%s10383_s5 + $0x568] sm:$0xff] }
 0x460   :  { %5329 = vmatpush.bf16.msrb.mxu0 %v8361_v28  ;;  %5341 = vmatpush.bf16.msrb.mxu1 %v8371_v29  ;;  %v8405_v28 = vld [vmem:[%s10383_s5 + $0x5b8] sm:$0xff] }
 0x462   :  { %v3104_v57 = vpop.f32.mrf.mxu3  ;;  %v5154_v58 = vpop.f32.mrf.mxu2 }
 0x463   :  { %v8635_v62 = vpack.c.bf16 %v3104_v57, %v3099_v39  ;;  %v5155_v63 = vadd.f32 %v5154_v58, %v5141_v46  ;;  %v8358_v39 = vld [vmem:[%s10383_s5 + $0x440] sm:$0xff]  ;;  %v8381_v46 = vld [vmem:[%s10383_s5 + $0x4f8] sm:$0xff]  ;;  %v8379_v58 = vld [vmem:[%s10383_s5 + $0x4e8] sm:$0xff] }
 0x464   :  { %5330 = vmatpush.bf16.msrb.mxu0 %v8360_v31  ;;  %5342 = vmatpush.bf16.msrb.mxu1 %v8370_v32  ;;  %v8394_v32 = vld [vmem:[%s10383_s5 + $0x560] sm:$0xff] }
 0x465   :  { %8722 = vst [vmem:[#allocation2 + $0x98] sm:$0xff] %v8635_v62  }
 0x467   :  { %6908 = vmatmul.msk.bf16.gmra.mxu3 %vm221_vm0, %v8195_v0  ;;  %v8378_v0 = vld [vmem:[%s10383_s5 + $0x4e0] sm:$0xff] }
 0x468   :  { %5331 = vmatpush.bf16.msrb.mxu0 %v8359_v35  ;;  %5343 = vmatpush.bf16.msrb.mxu1 %v8369_v37  ;;  %v8393_v37 = vld [vmem:[%s10383_s5 + $0x558] sm:$0xff] }
 0x46a   :  { %v3107_v3 = vpop.f32.mrf.mxu3 }
 0x46b   :  { %v8640_v7 = vpack.c.bf16 %v3107_v3, %v3102_v51  ;;  %v8380_v51 = vld [vmem:[%s10383_s5 + $0x4f0] sm:$0xff] }
 0x46c   :  { %v5166_v9 = vpop.f32.mrf.mxu0  ;;  %v6994_v36 = vld [vmem:[#allocation2 + $0x94] sm:$0xf0]  ;;  %v8216_v19 = vld [vmem:[#allocation2 + $0x98] sm:$0xf0]  ;;  %5332 = vmatpush.bf16.msrb.mxu0 %v8358_v39  ;;  %5344 = vmatpush.bf16.msrb.mxu1 %v8368_v40 }
 0x46d   :  { %8723 = vst [vmem:[#allocation2 + $0x38] sm:$0xff] %v8640_v7   ;;  %v5167_v10 = vadd.f32 %v5166_v9, %v5153_v55  ;;  %v6997_v11 = vor.u32 %v8203_v61, %v6994_v36  ;;  %v8376_v61 = vld [vmem:[%s10383_s5 + $0x4d0] sm:$0xff]  ;;  %v8386_v36 = vld [vmem:[%s10383_s5 + $0x520] sm:$0xff] }
 0x46f   :  { %5277 = vmatmul.bf16.vlgmr.msra.gmra.mxu2 %v6997_v11  ;;  %v8375_v11 = vld [vmem:[%s10383_s5 + $0x4c8] sm:$0xff] }
 0x470   :  { %5345 = vmatpush.bf16.msrb.mxu1 %v8367_v45  ;;  %5353 = vmatpush.bf16.msra.mxu2 %v8381_v46 }
 0x472   :  { %v3109_v13 = vpop.f32.mrf.mxu3 }
 0x474   :  { %v5168_v16 = vpop.f32.mrf.mxu0  ;;  %v5180_v17 = vpop.f32.mrf.mxu1  ;;  %v7000_v18 = vld [vmem:[#allocation2 + $0x38] sm:$0xf]  ;;  %v8204_v42 = vld [vmem:[#allocation2 + $0x3c] sm:$0xf]  ;;  %5346 = vmatpush.bf16.msrb.mxu1 %v8366_v50  ;;  %5354 = vmatpush.bf16.msra.mxu2 %v8380_v51  ;;  %v8390_v51 = vld [vmem:[%s10383_s5 + $0x540] sm:$0xff] }
 0x475   :  { %v5169_v20 = vadd.f32 %v5168_v16, %v5155_v63  ;;  %v5181_v22 = vadd.f32 %v5180_v17, %v5167_v10  ;;  %v7001_v33 = vor.u32 %v8216_v19, %v7000_v18  ;;  %v8383_v18 = vld [vmem:[%s10383_s5 + $0x508] sm:$0xff]  ;;  %v8397_v19 = vld [vmem:[%s10383_s5 + $0x578] sm:$0xff] }
 0x477   :  { %6909 = vmatmul.msk.bf16.gmra.mxu3 %vm221_vm0, %v8196_v21  ;;  %5291 = vmatmul.bf16.vlgmr.msra.gmra.mxu0 %v7001_v33  ;;  %v8396_v33 = vld [vmem:[%s10383_s5 + $0x570] sm:$0xff] }
 0x478   :  { %5355 = vmatpush.bf16.msra.mxu2 %v8379_v58  ;;  %5367 = vmatpush.bf16.msra.mxu0 %v8389_v59  ;;  %v8421_v58 = vld [vmem:[%s10383_s5 + $0x638] sm:$0xff] }
 0x47a   :  { %v3112_v25 = vpop.f32.mrf.mxu3 }
 0x47c   :  { %v5182_v57 = vpop.f32.mrf.mxu1  ;;  %5356 = vmatpush.bf16.msra.mxu2 %v8378_v0  ;;  %5368 = vmatpush.bf16.msra.mxu0 %v8388_v1 }
 0x47d   :  { %v5183_v60 = vadd.f32 %v5182_v57, %v5169_v20  ;;  %v8413_v57 = vld [vmem:[%s10383_s5 + $0x5f8] sm:$0xff] }
 0x480   :  { %5357 = vmatpush.bf16.msra.mxu2 %v8377_v4  ;;  %5369 = vmatpush.bf16.msra.mxu0 %v8387_v6  ;;  %v8411_v4 = vld [vmem:[%s10383_s5 + $0x5e8] sm:$0xff] }
 0x481   :  { %v8419_v6 = vld [vmem:[%s10383_s5 + $0x628] sm:$0xff] }
 0x482   :  { %v3114_v30 = vpop.f32.mrf.mxu3 }
 0x483   :  { %v8645_v34 = vpack.c.bf16 %v3114_v30, %v3109_v13  ;;  %v8374_v13 = vld [vmem:[%s10383_s5 + $0x4c0] sm:$0xff] }
 0x484   :  { %5358 = vmatpush.bf16.msra.mxu2 %v8376_v61  ;;  %5370 = vmatpush.bf16.msra.mxu0 %v8386_v36  ;;  %v8418_v61 = vld [vmem:[%s10383_s5 + $0x620] sm:$0xff]  ;;  %v8409_v36 = vld [vmem:[%s10383_s5 + $0x5d8] sm:$0xff] }
 0x485   :  { %8724 = vst [vmem:[#allocation2 + $0xa0] sm:$0xff] %v8645_v34   ;;  %v8404_v34 = vld [vmem:[%s10383_s5 + $0x5b0] sm:$0xff] }
 0x488   :  { %5359 = vmatpush.bf16.msra.mxu2 %v8375_v11  ;;  %5371 = vmatpush.bf16.msra.mxu0 %v8385_v15  ;;  %v8408_v15 = vld [vmem:[%s10383_s5 + $0x5d0] sm:$0xff] }
 0x48a   :  { %v3117_v38 = vpop.f32.mrf.mxu3 }
 0x48b   :  { %v8650_v41 = vpack.c.bf16 %v3117_v38, %v3112_v25  ;;  %v8403_v38 = vld [vmem:[%s10383_s5 + $0x5a8] sm:$0xff] }
 0x48c   :  { %v7002_v43 = vld [vmem:[#allocation2 + $0x9c] sm:$0xf0]  ;;  %v8217_v55 = vld [vmem:[#allocation2 + $0xa0] sm:$0xf0]  ;;  %5360 = vmatpush.bf16.msra.mxu2 %v8374_v13  ;;  %5372 = vmatpush.bf16.msra.mxu0 %v8384_v5  ;;  %v8407_v5 = vld [vmem:[%s10383_s5 + $0x5c8] sm:$0xff] }
 0x48d   :  { %8725 = vst [vmem:[#allocation2 + $0x40] sm:$0xff] %v8650_v41   ;;  %v7005_v44 = vor.u32 %v8204_v42, %v7002_v43  ;;  %v8392_v43 = vld [vmem:[%s10383_s5 + $0x550] sm:$0xff] }
 0x48f   :  { %5305 = vmatmul.bf16.vlgmr.msra.gmra.mxu1 %v7005_v44  ;;  %v8402_v44 = vld [vmem:[%s10383_s5 + $0x5a0] sm:$0xff] }
 0x490   :  { %5373 = vmatpush.bf16.msra.mxu0 %v8383_v18  ;;  %5381 = vmatpush.bf16.msra.mxu1 %v8397_v19  ;;  %v8414_v18 = vld [vmem:[%s10383_s5 + $0x600] sm:$0xff] }
 0x492   :  { %v3119_v47 = vpop.f32.mrf.mxu3  ;;  %v5194_v49 = vpop.f32.mrf.mxu2 }
 0x493   :  { %v5195_v52 = vadd.f32 %v5194_v49, %v5181_v22  ;;  %v8382_v22 = vld [vmem:[%s10383_s5 + $0x500] sm:$0xff]  ;;  %v8401_v49 = vld [vmem:[%s10383_s5 + $0x598] sm:$0xff] }
 0x494   :  { %v5208_v53 = vpop.f32.mrf.mxu0  ;;  %v7008_v54 = vld [vmem:[#allocation2 + $0x40] sm:$0xf]  ;;  %v8205_v21 = vld [vmem:[#allocation2 + $0x44] sm:$0xf]  ;;  %5374 = vmatpush.bf16.msra.mxu0 %v8382_v22  ;;  %5382 = vmatpush.bf16.msra.mxu1 %v8396_v33 }
 0x495   :  { %v5209_v48 = vadd.f32 %v5208_v53, %v5195_v52  ;;  %v7009_v56 = vor.u32 %v8217_v55, %v7008_v54  ;;  %v8400_v52 = vld [vmem:[%s10383_s5 + $0x590] sm:$0xff] }
 0x497   :  { %5319 = vmatmul.bf16.vlgmr.msrb.gmra.mxu2 %v7009_v56  ;;  %v8399_v56 = vld [vmem:[%s10383_s5 + $0x588] sm:$0xff] }
 0x498   :  { %5383 = vmatpush.bf16.msra.mxu1 %v8395_v27  ;;  %5395 = vmatpush.bf16.msrb.mxu2 %v8405_v28 }
 0x49a   :  { %v3122_v62 = vpop.f32.mrf.mxu3  ;;  %v5196_v63 = vpop.f32.mrf.mxu2 }
 0x49b   :  { %v5197_v2 = vadd.f32 %v5196_v63, %v5183_v60  ;;  %v8398_v60 = vld [vmem:[%s10383_s5 + $0x580] sm:$0xff]  ;;  %v8420_v63 = vld [vmem:[%s10383_s5 + $0x630] sm:$0xff] }
 0x49c   :  { %v5210_v3 = vpop.f32.mrf.mxu0  ;;  %5384 = vmatpush.bf16.msra.mxu1 %v8394_v32  ;;  %5396 = vmatpush.bf16.msrb.mxu2 %v8404_v34 }
 0x49d   :  { %v5211_v7 = vadd.f32 %v5210_v3, %v5197_v2  ;;  %v10260_v3 = vld [vmem:[%s10377_s0] sm:$0xff] }
 0x4a0   :  { %5385 = vmatpush.bf16.msra.mxu1 %v8393_v37  ;;  %5397 = vmatpush.bf16.msrb.mxu2 %v8403_v38 }
 0x4a2   :  { %v3124_v9 = vpop.f32.mrf.mxu3 }
 0x4a3   :  { %v8655_v10 = vpack.c.bf16 %v3124_v9, %v3119_v47  ;;  %v8391_v47 = vld [vmem:[%s10383_s5 + $0x548] sm:$0xff]  ;;  %v8410_v9 = vld [vmem:[%s10383_s5 + $0x5e0] sm:$0xff] }
 0x4a4   :  { %5386 = vmatpush.bf16.msra.mxu1 %v8392_v43  ;;  %5398 = vmatpush.bf16.msrb.mxu2 %v8402_v44  ;;  %v8430_v44 = vld [vmem:[%s10384_s2] sm:$0xff] }
 0x4a5   :  { %8726 = vst [vmem:[#allocation2 + $0xa8] sm:$0xff] %v8655_v10   ;;  %v8417_v10 = vld [vmem:[%s10383_s5 + $0x618] sm:$0xff] }
 0x4a8   :  { %5387 = vmatpush.bf16.msra.mxu1 %v8391_v47  ;;  %5399 = vmatpush.bf16.msrb.mxu2 %v8401_v49 }
 0x4aa   :  { %v3127_v12 = vpop.f32.mrf.mxu3 }
 0x4ab   :  { %v8660_v14 = vpack.c.bf16 %v3127_v12, %v3122_v62  ;;  %v8412_v62 = vld [vmem:[%s10383_s5 + $0x5f0] sm:$0xff] }
 0x4ac   :  { %v7010_v16 = vld [vmem:[#allocation2 + $0xa4] sm:$0xf0]  ;;  %v5222_v23 = vpop.f32.mrf.mxu1  ;;  %v8218_v25 = vld [vmem:[#allocation2 + $0xa8] sm:$0xf0]  ;;  %5388 = vmatpush.bf16.msra.mxu1 %v8390_v51  ;;  %5400 = vmatpush.bf16.msrb.mxu2 %v8400_v52  ;;  %v8416_v12 = vld [vmem:[%s10383_s5 + $0x610] sm:$0xff] }
 0x4ad   :  { %8727 = vst [vmem:[#allocation2 + $0x48] sm:$0xff] %v8660_v14   ;;  %v7013_v17 = vor.u32 %v8205_v21, %v7010_v16  ;;  %v5223_v29 = vadd.f32 %v5222_v23, %v5209_v48  ;;  %v8415_v14 = vld [vmem:[%s10383_s5 + $0x608] sm:$0xff] }
 0x4af   :  { %5333 = vmatmul.bf16.vlgmr.msrb.gmra.mxu0 %v7013_v17  ;;  %v8406_v17 = vld [vmem:[%s10383_s5 + $0x5c0] sm:$0xff] }
 0x4b0   :  { %5401 = vmatpush.bf16.msrb.mxu2 %v8399_v56  ;;  %5409 = vmatpush.bf16.msrb.mxu0 %v8413_v57 }
 0x4b2   :  { %v3129_v20 = vpop.f32.mrf.mxu3 }
 0x4b4   :  { %v7016_v24 = vld [vmem:[#allocation2 + $0x48] sm:$0xf]  ;;  %v5224_v39 = vpop.f32.mrf.mxu1  ;;  %v8206_v54 = vld [vmem:[#allocation2 + $0x4c] sm:$0xf]  ;;  %5402 = vmatpush.bf16.msrb.mxu2 %v8398_v60  ;;  %5410 = vmatpush.bf16.msrb.mxu0 %v8412_v62 }
 0x4b5   :  { %v7017_v26 = vor.u32 %v8218_v25, %v7016_v24  ;;  %v5225_v40 = vadd.f32 %v5224_v39, %v5211_v7 }
 0x4b7   :  { %5347 = vmatmul.bf16.vlgmr.msrb.gmra.mxu1 %v7017_v26 }
 0x4b8   :  { %5423 = vmatpush.bf16.msrb.mxu1 %v8421_v58  ;;  %5411 = vmatpush.bf16.msrb.mxu0 %v8411_v4 }
 0x4ba   :  { %v3132_v30 = vpop.f32.mrf.mxu3  ;;  %v5236_v31 = vpop.f32.mrf.mxu2 }
 0x4bb   :  { %v10211_v35 = vadd.f32 %v5236_v31, %v5223_v29 }
 0x4bc   :  { %5424 = vmatpush.bf16.msrb.mxu1 %v8420_v63  ;;  %5412 = vmatpush.bf16.msrb.mxu0 %v8410_v9 }
 0x4c0   :  { %5425 = vmatpush.bf16.msrb.mxu1 %v8419_v6  ;;  %5413 = vmatpush.bf16.msrb.mxu0 %v8409_v36  ;;  %v8444_v6 = vld [vmem:[%s10385_s8 + $0x28] sm:$0xff]  ;;  %v8443_v36 = vld [vmem:[%s10385_s8 + $0x20] sm:$0xff] }
 0x4c2   :  { %v3134_v41 = vpop.f32.mrf.mxu3  ;;  %v5238_v42 = vpop.f32.mrf.mxu2 }
 0x4c3   :  { %v8665_v45 = vpack.c.bf16 %v3134_v41, %v3129_v20  ;;  %v10225_v46 = vadd.f32 %v5238_v42, %v5225_v40 }
 0x4c4   :  { %5426 = vmatpush.bf16.msrb.mxu1 %v8418_v61  ;;  %5414 = vmatpush.bf16.msrb.mxu0 %v8408_v15  ;;  %v8438_v15 = vld [vmem:[%s10386_s7 + $0x38] sm:$0xff] }
 0x4c5   :  { %8728 = vst [vmem:[#allocation2 + $0xb0] sm:$0xff] %v8665_v45  }
 0x4c8   :  { %5427 = vmatpush.bf16.msrb.mxu1 %v8417_v10  ;;  %5415 = vmatpush.bf16.msrb.mxu0 %v8407_v5 }
 0x4ca   :  { %v3137_v50 = vpop.f32.mrf.mxu3 }
 0x4cb   :  { %v8670_v53 = vpack.c.bf16 %v3137_v50, %v3132_v30 }
 0x4cc   :  { %v7018_v55 = vld [vmem:[#allocation2 + $0xac] sm:$0xf0]  ;;  %v8219_v1 = vld [vmem:[#allocation2 + $0xb0] sm:$0xf0]  ;;  %5428 = vmatpush.bf16.msrb.mxu1 %v8416_v12  ;;  %v5250_v21 = vpop.f32.mrf.mxu0  ;;  %5416 = vmatpush.bf16.msrb.mxu0 %v8406_v17 }
 0x4cd   :  { %8729 = vst [vmem:[#allocation2 + $0x50] sm:$0xff] %v8670_v53   ;;  %v7021_v48 = vor.u32 %v8206_v54, %v7018_v55  ;;  %v5251_v24 = vadd.f32 %v5250_v21, %v10211_v35  ;;  %v8441_v17 = vld [vmem:[%s10385_s8 + $0x10] sm:$0xff] }
 0x4cf   :  { %5361 = vmatmul.bf16.vlgmr.msra.gmra.mxu2 %v7021_v48 }
 0x4d0   :  { %5496 = vmatpush.bf16.msra.mxu2 %v10260_v3  ;;  %5429 = vmatpush.bf16.msrb.mxu1 %v8415_v14  ;;  %v8437_v14 = vld [vmem:[%s10386_s7 + $0x30] sm:$0xff] }
 0x4d2   :  { %v3139_v59 = vpop.f32.mrf.mxu3 }
 0x4d4   :  { %v7024_v0 = vld [vmem:[#allocation2 + $0x50] sm:$0xf]  ;;  %v5264_v20 = vpop.f32.mrf.mxu1  ;;  %v8207_v22 = vld [vmem:[#allocation2 + $0x54] sm:$0xf]  ;;  %5430 = vmatpush.bf16.msrb.mxu1 %v8414_v18  ;;  %v5252_v29 = vpop.f32.mrf.mxu0 }
 0x4d5   :  { %v7025_v2 = vor.u32 %v8219_v1, %v7024_v0  ;;  %v5265_v25 = vadd.f32 %v5264_v20, %v5251_v24  ;;  %v5253_v37 = vadd.f32 %v5252_v29, %v10225_v46  ;;  %v8446_v0 = vld [vmem:[%s10385_s8 + $0x38] sm:$0xff]  ;;  %v8440_v20 = vld [vmem:[%s10385_s8 + $0x8] sm:$0xff]  ;;  %v8433_v24 = vld [vmem:[%s10386_s7 + $0x10] sm:$0xff] }
 0x4d7   :  { %5375 = vmatmul.bf16.vlgmr.msra.gmra.mxu0 %v7025_v2  ;;  %v8445_v2 = vld [vmem:[%s10385_s8 + $0x30] sm:$0xff] }
 0x4d8   :  { %5646 = vmatpush.bf16.msra.mxu0 %v8438_v15 }
 0x4da   :  { %v3142_v7 = vpop.f32.mrf.mxu3 }
 0x4dc   :  { %v5266_v34 = vpop.f32.mrf.mxu1  ;;  %5647 = vmatpush.bf16.msra.mxu0 %v8437_v14 }
 0x4dd   :  { %v5267_v38 = vadd.f32 %v5266_v34, %v5253_v37 }
 0x4e2   :  { %v3144_v11 = vpop.f32.mrf.mxu3 }
 0x4e3   :  { %v8675_v13 = vpack.c.bf16 %v3144_v11, %v3139_v59 }
 0x4e5   :  { %8730 = vst [vmem:[#allocation2 + $0xb8] sm:$0xff] %v8675_v13   ;;  %v8442_v13 = vld [vmem:[%s10385_s8 + $0x18] sm:$0xff] }
 0x4ea   :  { %v3147_v16 = vpop.f32.mrf.mxu3 }
 0x4eb   :  { %v8680_v19 = vpack.c.bf16 %v3147_v16, %v3142_v7 }
 0x4ec   :  { %v7026_v33 = vld [vmem:[#allocation2 + $0xb4] sm:$0xf0]  ;;  %v8220_v31 = vld [vmem:[#allocation2 + $0xb8] sm:$0xf0] }
 0x4ed   :  { %8731 = vst [vmem:[#allocation2 + $0x58] sm:$0xff] %v8680_v19   ;;  %v7029_v23 = vor.u32 %v8207_v22, %v7026_v33  ;;  %v8436_v19 = vld [vmem:[%s10386_s7 + $0x28] sm:$0xff]  ;;  %v8435_v22 = vld [vmem:[%s10386_s7 + $0x20] sm:$0xff] }
 0x4ee   :  { %5648 = vmatpush.bf16.msra.mxu0 %v8436_v19  ;;  %v8439_v33 = vld [vmem:[%s10385_s8] sm:$0xff] }
 0x4ef   :  { %5389 = vmatmul.bf16.vlgmr.msra.gmra.mxu1 %v7029_v23  ;;  %v8434_v23 = vld [vmem:[%s10386_s7 + $0x18] sm:$0xff] }
 0x4f2   :  { %v3149_v26 = vpop.f32.mrf.mxu3  ;;  %v5278_v27 = vpop.f32.mrf.mxu2  ;;  %5649 = vmatpush.bf16.msra.mxu0 %v8435_v22 }
 0x4f3   :  { %v5279_v28 = vadd.f32 %v5278_v27, %v5265_v25  ;;  %v8432_v25 = vld [vmem:[%s10386_s7 + $0x8] sm:$0xff] }
 0x4f4   :  { %v7032_v30 = vld [vmem:[#allocation2 + $0x58] sm:$0xf]  ;;  %v8208_v47 = vld [vmem:[#allocation2 + $0x5c] sm:$0xf]  ;;  %v5292_v52 = vpop.f32.mrf.mxu0 }
 0x4f5   :  { %v7033_v32 = vor.u32 %v8220_v31, %v7032_v30  ;;  %v5293_v54 = vadd.f32 %v5292_v52, %v5279_v28 }
 0x4f6   :  { %5650 = vmatpush.bf16.msra.mxu0 %v8434_v23 }
 0x4f7   :  { %5403 = vmatmul.bf16.vlgmr.msrb.gmra.mxu2 %v7033_v32 }
 0x4f8   :  { %5584 = vmatpush.bf16.msrb.mxu2 %v8446_v0 }
 0x4fa   :  { %v3152_v39 = vpop.f32.mrf.mxu3  ;;  %v5280_v40 = vpop.f32.mrf.mxu2  ;;  %5651 = vmatpush.bf16.msra.mxu0 %v8433_v24 }
 0x4fb   :  { %v3253_v41 = vpack.c.bf16 %v3152_v39, %v3152_v39  ;;  %v5281_v42 = vadd.f32 %v5280_v40, %v5267_v38 }
 0x4fc   :  { %v5294_v57 = vpop.f32.mrf.mxu0  ;;  %5585 = vmatpush.bf16.msrb.mxu2 %v8445_v2 }
 0x4fd   :  { %3255 = vst [vmem:[#allocation2 + $0x60] sm:$0xf] %v3253_v41  ;;  %v5295_v59 = vadd.f32 %v5294_v57, %v5281_v42 }
 0x4fe   :  { %5652 = vmatpush.bf16.msra.mxu0 %v8432_v25 }
 0x500   :  { %5586 = vmatpush.bf16.msrb.mxu2 %v8444_v6 }
 0x502   :  { %v3154_v35 = vpop.f32.mrf.mxu3 }
 0x503   :  { %v8685_v43 = vpack.c.bf16 %v3154_v35, %v3149_v26  ;;  %v8431_v26 = vld [vmem:[%s10386_s7] sm:$0xff] }
 0x504   :  { %v7040_v45 = vld [vmem:[#allocation2 + $0x60] sm:$0xf]  ;;  %5587 = vmatpush.bf16.msrb.mxu2 %v8443_v36  ;;  %5653 = vmatpush.bf16.msra.mxu0 %v8431_v26 }
 0x505   :  { %8732 = vst [vmem:[#allocation2 + $0xc0] sm:$0xff] %v8685_v43  }
 0x507   :  { %7846 = vmatmul.msk.bf16.vlgmr.msra.gmra.mxu2 %vm221_vm0, %v8430_v44 }
 0x508   :  { %5588 = vmatpush.bf16.msrb.mxu2 %v8442_v13 }
 0x50c   :  { %v7034_v49 = vld [vmem:[#allocation2 + $0xbc] sm:$0xf0]  ;;  %v8221_v46 = vld [vmem:[#allocation2 + $0xc0] sm:$0xf0]  ;;  %v5306_v53 = vpop.f32.mrf.mxu1  ;;  %5589 = vmatpush.bf16.msrb.mxu2 %v8441_v17 }
 0x50d   :  { %v7037_v50 = vor.u32 %v8208_v47, %v7034_v49  ;;  %v7041_v51 = vor.u32 %v8221_v46, %v7040_v45  ;;  %v5307_v55 = vadd.f32 %v5306_v53, %v5293_v54  ;;  %v10357_v46 = vld [vmem:[%s10381_s9] sm:$0xff] }
 0x50f   :  { %5417 = vmatmul.bf16.vlgmr.msrb.gmra.mxu0 %v7037_v50  ;;  %5431 = vmatmul.bf16.vlgmr.msrb.gmra.mxu1 %v7041_v51  ;;  %v5437_v50 = vperm.slane %v10357_v46, 3 }
 0x510   :  { %5590 = vmatpush.bf16.msrb.mxu2 %v8440_v20 }
 0x514   :  { %v5308_v58 = vpop.f32.mrf.mxu1  ;;  %5591 = vmatpush.bf16.msrb.mxu2 %v8439_v33 }
 0x515   :  { %v5309_v60 = vadd.f32 %v5308_v58, %v5295_v59 }
 0x517   :  { %5592 = vmatmul.bf16.vlgmr.msrb.gmra.mxu2 %v10260_v3 }
 0x51a   :  { %v5320_v48 = vpop.f32.mrf.mxu2 }
 0x51b   :  { %v5321_v56 = vadd.f32 %v5320_v48, %v5307_v55 }
 0x522   :  { %v5322_v62 = vpop.f32.mrf.mxu2 }
 0x523   :  { %v5323_v63 = vadd.f32 %v5322_v62, %v5309_v60 }
 0x52c   :  { %v5334_v1 = vpop.f32.mrf.mxu0 }
 0x52d   :  { %v5335_v7 = vadd.f32 %v5334_v1, %v5321_v56 }
 0x534   :  { %v5348_v4 = vpop.f32.mrf.mxu1  ;;  %v5336_v11 = vpop.f32.mrf.mxu0 }
 0x535   :  { %v5349_v9 = vadd.f32 %v5348_v4, %v5335_v7  ;;  %v5337_v5 = vadd.f32 %v5336_v11, %v5323_v63 }
 0x53c   :  { %v5350_v12 = vpop.f32.mrf.mxu1 }
 0x53d   :  { %v5351_v21 = vadd.f32 %v5350_v12, %v5337_v5 }
 0x552   :  { %v5362_v61 = vpop.f32.mrf.mxu2 }
 0x553   :  { %v5363_v10 = vadd.f32 %v5362_v61, %v5349_v9 }
 0x554   :  { %v5376_v27 = vpop.f32.mrf.mxu0 }
 0x555   :  { %v5377_v29 = vadd.f32 %v5376_v27, %v5363_v10  ;;  %v5660_v27 = vperm.slane %v10357_v46, 6 }
 0x55a   :  { %v5364_v16 = vpop.f32.mrf.mxu2 }
 0x55b   :  { %v5365_v18 = vadd.f32 %v5364_v16, %v5351_v21  ;;  %v5460_v16 = vperm.slane %v10357_v46, 4 }
 0x55c   :  { %v5378_v32 = vpop.f32.mrf.mxu0 }
 0x55d   :  { %v5379_v37 = vadd.f32 %v5378_v32, %v5365_v18 }
 0x56c   :  { %v5390_v28 = vpop.f32.mrf.mxu1 }
 0x56d   :  { %v5391_v30 = vadd.f32 %v5390_v28, %v5377_v29 }
 0x574   :  { %v5392_v34 = vpop.f32.mrf.mxu1 }
 0x575   :  { %v5393_v38 = vadd.f32 %v5392_v34, %v5379_v37 }
 0x57a   :  { %v5404_v3 = vpop.f32.mrf.mxu2 }
 0x57b   :  { %v5405_v31 = vadd.f32 %v5404_v3, %v5391_v30 }
 0x582   :  { %v5406_v39 = vpop.f32.mrf.mxu2 }
 0x583   :  { %v5407_v40 = vadd.f32 %v5406_v39, %v5393_v38 }
 0x58a   :  { %v5498_v41 = vpop.f32.mrf.mxu2 }
 0x58c   :  { %v5418_v42 = vpop.f32.mrf.mxu0  ;;  %v5432_v35 = vpop.f32.mrf.mxu1 }
 0x58d   :  { %v5419_v43 = vadd.f32 %v5418_v42, %v5405_v31 }
 0x58f   :  { %v5433_v49 = vadd.f32 %v5432_v35, %v5419_v43 }
 0x591   :  { %v5438_v54 = vadd.f32 %v5437_v50, %v5433_v49 }
 0x592   :  { %v5500_v44 = vpop.f32.mrf.mxu2 }
 0x593   :  { %v5503_v45 = vpack.c.bf16 %v5500_v44, %v5498_v41 }
 0x594   :  { %v5420_v47 = vpop.f32.mrf.mxu0  ;;  %v5434_v52 = vpop.f32.mrf.mxu1 }
 0x595   :  { %v5421_v51 = vadd.f32 %v5420_v47, %v5407_v40  ;;  %5654 = vmatmul.bf16.vlgmr.msra.gmra.mxu0 %v5503_v45 }
 0x597   :  { %v5435_v53 = vadd.f32 %v5434_v52, %v5421_v51 }
 0x599   :  { %v5439_v55 = vadd.f32 %v5437_v50, %v5435_v53 }
 0x59a   :  { %v5593_v24 = vpop.f32.mrf.mxu2 }
 0x59b   :  { %v5440_v48 = vadd.f32 %v5439_v55, %v5438_v54 }
 0x59d   :  { %v5441_v56 = vrot.slane %v5440_v48, 4 }
 0x59f   :  { %v5442_v57 = vadd.f32 %v5441_v56, %v5440_v48 }
 0x5a1   :  { %v5443_v58 = vrot.slane %v5442_v57, 2 }
 0x5a2   :  { %v5595_v28 = vpop.f32.mrf.mxu2 }
 0x5a3   :  { %v5444_v59 = vadd.f32 %v5443_v58, %v5442_v57 }
 0x5a5   :  { %v5445_v60 = vrot.slane %v5444_v59, 1 }
 0x5a7   :  { %v5446_v62 = vadd.f32 %v5445_v60, %v5444_v59  ;;  %v5683_v60 = vperm.slane %v10357_v46, 7 }
 0x5a9   :  { %v5447_v63 = vmul.f32 %v5446_v62, %v9559_v8  ;;  %v37_v62 = vld [vmem:[%s10381_s9 + $0x8] sm:$0xff] }
 0x5ab   :  { %v5448_v0 = vsub.f32 %v5438_v54, %v5447_v63  ;;  %v5449_v1 = vsub.f32 %v5439_v55, %v5447_v63 }
 0x5ad   :  { %v5450_v2 = vmul.f32 %v5448_v0, %v5448_v0  ;;  %v5451_v4 = vmul.f32 %v5449_v1, %v5449_v1  ;;  %v5461_v19 = vmul.f32 %v5460_v16, %v5448_v0  ;;  %v5462_v20 = vmul.f32 %v5460_v16, %v5449_v1 }
 0x5ae   :  { %v5476_v1 = vperm.slane %v10357_v46, 5 }
 0x5af   :  { %v5452_v6 = vadd.f32 %v5451_v4, %v5450_v2  ;;  %v5699_v4 = vperm.slane %v37_v62, 0 }
 0x5b1   :  { %v5453_v7 = vrot.slane %v5452_v6, 4 }
 0x5b3   :  { %v5454_v9 = vadd.f32 %v5453_v7, %v5452_v6 }
 0x5b5   :  { %v5455_v61 = vrot.slane %v5454_v9, 2 }
 0x5b7   :  { %v5456_v36 = vadd.f32 %v5455_v61, %v5454_v9 }
 0x5b9   :  { %v5457_v10 = vrot.slane %v5456_v36, 1 }
 0x5bb   :  { %v5458_v11 = vadd.f32 %v5457_v10, %v5456_v36 }
 0x5bd   :  { %v5459_v15 = vmul.f32 %v5458_v11, %v9559_v8 }
 0x5bf   :  { %v5463_v12 = vadd.f32 1e-05, %v5459_v15 }
 0x5c1   :  { %8742 = vrsqrt.f32 %v5463_v12  ;;  %vm5470_vm8 = vweird.f32 %v5463_v12 }
 0x5c7   :  { %v8743_v13 = vpop.eup %8742 }
 0x5c8   :  { %v5465_v5 = vmul.f32 %v8743_v13, %v5463_v12  ;;  %vm5471_vm7 = vweird.f32 %v8743_v13 }
 0x5c9   :  { %vm5472_vm9 = vmor %vm5470_vm8, %vm5471_vm7 }
 0x5ca   :  { %v5466_v14 = vmul.f32 %v8743_v13, %v5465_v5 }
 0x5cc   :  { %v5467_v21 = vmul.f32 0.5, %v5466_v14 }
 0x5ce   :  { %v5468_v17 = vsub.f32 1.5, %v5467_v21 }
 0x5d0   :  { %v5469_v18 = vmul.f32 %v8743_v13, %v5468_v17 }
 0x5d2   :  { %v5473_v22 = vsel %vm5472_vm9, %v8743_v13, %v5469_v18 }
 0x5d3   :  { %v5474_v33 = vmul.f32 %v5473_v22, %v5461_v19  ;;  %v5475_v23 = vmul.f32 %v5473_v22, %v5462_v20 }
 0x5d5   :  { %v5477_v61 = vadd.f32 %v5476_v1, %v5474_v33  ;;  %v5478_v36 = vadd.f32 %v5476_v1, %v5475_v23 }
 0x612   :  { %v5655_v25 = vpop.f32.mrf.mxu0 }
 0x613   :  { %v5656_v26 = vadd.f32 %v5655_v25, %v5593_v24 }
 0x615   :  { %v5661_v3 = vadd.f32 %v5660_v27, %v5656_v26 }
 0x61a   :  { %v5657_v29 = vpop.f32.mrf.mxu0 }
 0x61b   :  { %v5658_v30 = vadd.f32 %v5657_v29, %v5595_v28 }
 0x61d   :  { %v5662_v31 = vadd.f32 %v5660_v27, %v5658_v30 }
 0x61f   :  { %v5663_v32 = vadd.f32 %v5662_v31, %v5661_v3 }
 0x621   :  { %v5664_v34 = vrot.slane %v5663_v32, 4 }
 0x623   :  { %v5665_v37 = vadd.f32 %v5664_v34, %v5663_v32 }
 0x625   :  { %v5666_v38 = vrot.slane %v5665_v37, 2 }
 0x627   :  { %v5667_v39 = vadd.f32 %v5666_v38, %v5665_v37 }
 0x629   :  { %v5668_v40 = vrot.slane %v5667_v39, 1 }
 0x62b   :  { %v5669_v41 = vadd.f32 %v5668_v40, %v5667_v39 }
 0x62d   :  { %v5670_v42 = vmul.f32 %v5669_v41, %v9559_v8 }
 0x62f   :  { %v5671_v35 = vsub.f32 %v5661_v3, %v5670_v42  ;;  %v5672_v43 = vsub.f32 %v5662_v31, %v5670_v42 }
 0x631   :  { %v5673_v44 = vmul.f32 %v5671_v35, %v5671_v35  ;;  %v5674_v45 = vmul.f32 %v5672_v43, %v5672_v43  ;;  %v5684_v2 = vmul.f32 %v5683_v60, %v5671_v35 }
 0x633   :  { %v5675_v47 = vadd.f32 %v5674_v45, %v5673_v44 }
 0x635   :  { %v5676_v49 = vrot.slane %v5675_v47, 4 }
 0x637   :  { %v5677_v50 = vadd.f32 %v5676_v49, %v5675_v47 }
 0x639   :  { %v5678_v51 = vrot.slane %v5677_v50, 2 }
 0x63b   :  { %v5679_v52 = vadd.f32 %v5678_v51, %v5677_v50 }
 0x63d   :  { %v5680_v53 = vrot.slane %v5679_v52, 1 }
 0x63f   :  { %v5681_v54 = vadd.f32 %v5680_v53, %v5679_v52 }
 0x641   :  { %v5682_v55 = vmul.f32 %v5681_v54, %v9559_v8  ;;  %v5685_v8 = vmul.f32 %v5683_v60, %v5672_v43 }
 0x643   :  { %v5686_v48 = vadd.f32 1e-05, %v5682_v55 }
 0x645   :  { %8744 = vrsqrt.f32 %v5686_v48  ;;  %vm5693_vm11 = vweird.f32 %v5686_v48 }
 0x64b   :  { %v8745_v56 = vpop.eup %8744 }
 0x64c   :  { %v5688_v57 = vmul.f32 %v8745_v56, %v5686_v48  ;;  %vm5694_vm10 = vweird.f32 %v8745_v56 }
 0x64d   :  { %vm5695_vm12 = vmor %vm5693_vm11, %vm5694_vm10 }
 0x64e   :  { %v5689_v58 = vmul.f32 %v8745_v56, %v5688_v57 }
 0x650   :  { %v5690_v59 = vmul.f32 0.5, %v5689_v58 }
 0x652   :  { %v5691_v63 = vsub.f32 1.5, %v5690_v59 }
 0x654   :  { %v5692_v0 = vmul.f32 %v8745_v56, %v5691_v63 }
 0x656   :  { %v5696_v6 = vsel %vm5695_vm12, %v8745_v56, %v5692_v0 }
 0x657   :  { %v5697_v7 = vmul.f32 %v5696_v6, %v5684_v2  ;;  %v5698_v9 = vmul.f32 %v5696_v6, %v5685_v8 }
 0x659   :  { %v5700_v10 = vadd.f32 %v5699_v4, %v5697_v7  ;;  %v5701_v11 = vadd.f32 %v5699_v4, %v5698_v9 }
 0x65b   :  { %v5702_v15 = vadd.f32 %v5700_v10, %v5477_v61  ;;  %v5703_v12 = vadd.f32 %v5701_v11, %v5478_v36 }
 0x65d   :  { %v5706_v13 = vmin.f32 %v5702_v15, 0.0  ;;  %v5707_v5 = vmin.f32 %v5703_v12, 0.0  ;;  %vm5704_vm13 = vcmp.gt.f32.partialorder %v5702_v15, 0.0  ;;  %vm5705_vm14 = vcmp.gt.f32.partialorder %v5703_v12, 0.0 }
 0x65f   :  { %v5708_v14 = vmul.f32 1.442695, %v5706_v13  ;;  %v5710_v21 = vmul.f32 1.442695, %v5707_v5 }
 0x661   :  { %8746 = vpow2.f32 %v5708_v14 }
 0x662   :  { %8748 = vpow2.f32 %v5710_v21 }
 0x667   :  { %v8747_v46 = vpop.eup %8746 }
 0x668   :  { %v8749_v16 = vpop.eup %8748  ;;  %v7911_v17 = vadd.f32 -1.0, %v8747_v46 }
 0x669   :  { %v7912_v18 = vadd.f32 -1.0, %v8749_v16 }
 0x66a   :  { %v5714_v19 = vsel %vm5704_vm13, %v5702_v15, %v7911_v17 }
 0x66b   :  { %v5715_v20 = vsel %vm5705_vm14, %v5703_v12, %v7912_v18  ;;  %5716 = vst [vmem:[%s10387_s10] sm:$0xff] %v5714_v19 }
 0x66c   :  { %5717 = vst [vmem:[%s10387_s10 + $0x8] sm:$0xff] %v5715_v20 }

</bundles_post_ra>
